<compile_context>
chip_gen: v7x
topology: tpu7x:2x2x1
jax: 0.10.0
libtpu: 0.0.40
codegen_flags: <defaults>
</compile_context>

<pallas_src>
import functools

import numpy as np
import jax
import jax.numpy as jnp
from jax.experimental import pallas as pl
from jax.experimental.pallas import tpu as pltpu

GROUPS = 32
EPS = 1e-6
# Explicit scoped-VMEM budget: generous for these band sizes, and still below
# v7x's 64 MiB physical VMEM.  Re-derive per generation for production tiles.
VMEM_LIMIT = 48 * 1024 * 1024


# ---------------------------------------------------------------------------
# Kernel 1: GroupNorm statistics (per-channel sum / sum-of-squares)
# ---------------------------------------------------------------------------
def _gn_stats_kernel(x_ref, o_ref):
    """x_ref: (TH*W, C) f32 tile.  o_ref: (2, C) f32 accumulator [sum; sumsq]."""
    @pl.when(pl.program_id(1) == 0)
    def _():
        o_ref[...] = jnp.zeros_like(o_ref)

    xt = x_ref[...].astype(jnp.float32)
    s = jnp.sum(xt, axis=0, keepdims=True)                       # (1, C)
    ss = jnp.sum(xt * xt, axis=0, keepdims=True)                 # (1, C)
    o_ref[...] += jnp.concatenate([s, ss], axis=0)


def _gn_stats(xf, th, width):
    b, hw, c = xf.shape
    nt = hw // (th * width)
    grid_spec = pltpu.PrefetchScalarGridSpec(
        num_scalar_prefetch=0,
        grid=(b, nt),
        in_specs=[pl.BlockSpec((None, th * width, c), lambda bi, ti: (bi, ti, 0))],
        out_specs=pl.BlockSpec((None, 2, c), lambda bi, ti: (bi, 0, 0)),
    )
    return pl.pallas_call(
        _gn_stats_kernel,
        out_shape=jax.ShapeDtypeStruct((b, 2, c), jnp.float32),
        grid_spec=grid_spec,
        compiler_params=pltpu.CompilerParams(
            dimension_semantics=("parallel", "arbitrary"),
            vmem_limit_bytes=VMEM_LIMIT),
    )(xf)


def _stats_to_affine(stats, gamma, beta, hw):
    """Fold GroupNorm(32) stats + gamma/beta into per-channel scale/shift."""
    b, _, c = stats.shape
    cg = c // GROUPS
    n = float(hw * cg)
    s = stats[:, 0, :].reshape(b, GROUPS, cg).sum(axis=-1)        # (B, G)
    ss = stats[:, 1, :].reshape(b, GROUPS, cg).sum(axis=-1)
    mean = s / n
    var = ss / n - mean * mean          # fused single-pass variance (f32 sums)
    rstd = jax.lax.rsqrt(var + EPS)
    scale = jnp.repeat(rstd, cg, axis=1) * gamma[None, :]         # (B, C)
    shift = beta[None, :] - jnp.repeat(mean, cg, axis=1) * scale
    return scale.reshape(b, 1, c), shift.reshape(b, 1, c)


def _build_halo(flat, th, h, width):
    """(B, nT, 2*W, C): for each H-band, the image row just above and just
    below it (zero rows at the image boundary)."""
    b, hw, c = flat.shape
    nt = h // th
    img = flat.reshape(b, nt, th * width, c)
    zero = jnp.zeros((b, 1, width, c), flat.dtype)
    above = jnp.concatenate([zero, img[:, :-1, -width:, :]], axis=1)
    below = jnp.concatenate([img[:, 1:, :width, :], zero], axis=1)
    return jnp.concatenate([above, below], axis=2)


# ---------------------------------------------------------------------------
# Kernel 2: per-(batch, H-band) norm + SiLU + 3x3 conv (+ optional shortcut)
# ---------------------------------------------------------------------------
def _norm_silu_conv_kernel(*refs, width, shortcut):
    if shortcut == "conv":
        (h_ref, halo_ref, sc_ref, sh_ref, ml_ref, mr_ref, w_ref, b_ref,
         x_ref, ws_ref, sb_ref, o_ref) = refs
    elif shortcut == "identity":
        (h_ref, halo_ref, sc_ref, sh_ref, ml_ref, mr_ref, w_ref, b_ref,
         x_ref, o_ref) = refs
    else:
        (h_ref, halo_ref, sc_ref, sh_ref, ml_ref, mr_ref, w_ref, b_ref,
         o_ref) = refs

    tr, cin = h_ref.shape                 # tile rows = TH*W
    w = width
    rows = tr + 2 * w                     # slab = [halo_above | tile | halo_below]
    f32, bf16 = jnp.float32, jnp.bfloat16

    scale = sc_ref[...]                   # (1, Cin)
    shift = sh_ref[...]

    def norm_silu(v):
        hn = v.astype(f32) * scale + shift
        # exp and reciprocal both ride the EUP slot; f32 VPU math (v5e-safe).
        return hn * pl.reciprocal(1.0 + jnp.exp(-hn), approx=True)

    ht = norm_silu(h_ref[...])            # (tr, Cin) f32
    hal = norm_silu(halo_ref[...])        # (2W, Cin) f32

    # Conv zero-pads AFTER norm+SiLU, so halo rows outside the image must be
    # exactly zero (norm_silu of the wrapper's zero rows is not zero).
    ti = pl.program_id(1)
    top = jnp.where(ti > 0, hal[:w], 0.0)
    bot = jnp.where(ti < pl.num_programs(1) - 1, hal[w:], 0.0)
    slab = jnp.concatenate([top, ht, bot], axis=0)               # (rows, Cin)

    # kw = -1 / +1 taps: whole-array sublane rolls (XLU slot, jnp.roll
    # semantics) + 0/1 masks for the W edges of the image.
    left = pltpu.roll(slab, 1, 0) * ml_ref[...]                  # in[h, w-1]
    right = pltpu.roll(slab, rows - 1, 0) * mr_ref[...]          # in[h, w+1]
    patch = jnp.concatenate(
        [left.astype(bf16), slab.astype(bf16), right.astype(bf16)],
        axis=-1)                                                 # (rows, 3*Cin)

    # kh taps: output row j corresponds to slab row j + W, so the three taps
    # are aligned static row-windows of the SAME patch (no shifted full-size
    # copies, no zero rows fed to the MXU).  K = 3*Cin, f32 accumulation.
    acc = jnp.dot(patch[0:tr], w_ref[0], preferred_element_type=f32)
    acc = acc + jnp.dot(patch[w:w + tr], w_ref[1], preferred_element_type=f32)
    acc = acc + jnp.dot(patch[2 * w:2 * w + tr], w_ref[2],
                        preferred_element_type=f32)
    acc = acc + b_ref[...]

    if shortcut == "conv":
        acc = acc + jnp.dot(x_ref[...].astype(bf16), ws_ref[...],
                            preferred_element_type=f32) + sb_ref[...]
    elif shortcut == "identity":
        acc = acc + x_ref[...].astype(f32)

    # TODO(synk): at toy Cout=64 this store is lane-masked; at production
    # SDXL sizes (Cout >= 128) it is naturally lane-dense.
    o_ref[...] = acc.astype(o_ref.dtype)


def _norm_silu_conv_pass(hf, halo, scale, shift, mask_l, mask_r, w, bias,
                         th, width, cout, *, shortcut=None, x=None,
                         ws=None, sb=None):
    b, hw, cin = hf.shape
    nt = hw // (th * width)
    rows = (th + 2) * width

    def const(shape):
        # Grid-invariant inputs: single-buffered -- double-buffering a block
        # whose index never changes only wastes VMEM.
        return pl.BlockSpec(shape, lambda bi, ti: (0,) * len(shape),
                            pipeline_mode=pl.Buffered(1))

    in_specs = [
        pl.BlockSpec((None, th * width, cin), lambda bi, ti: (bi, ti, 0)),      # band
        pl.BlockSpec((None, None, 2 * width, cin), lambda bi, ti: (bi, ti, 0, 0)),  # halo
        pl.BlockSpec((None, 1, cin), lambda bi, ti: (bi, 0, 0)),                # scale
        pl.BlockSpec((None, 1, cin), lambda bi, ti: (bi, 0, 0)),                # shift
        const((rows, 1)),                                                       # mask w!=0
        const((rows, 1)),                                                       # mask w!=W-1
        const((3, 3 * cin, cout)),                                              # fused conv w
        const((1, cout)),                                                       # conv bias
    ]
    args = [hf, halo, scale, shift, mask_l, mask_r, w, bias]
    if shortcut is not None:
        xc = x.shape[-1]
        in_specs.append(pl.BlockSpec((None, th * width, xc),
                                     lambda bi, ti: (bi, ti, 0)))               # raw x band
        args.append(x)
        if shortcut == "conv":
            in_specs += [const((xc, cout)), const((1, cout))]                   # 1x1 w, b
            args += [ws, sb]

    grid_spec = pltpu.PrefetchScalarGridSpec(
        num_scalar_prefetch=0,
        grid=(b, nt),
        in_specs=in_specs,
        out_specs=pl.BlockSpec((None, th * width, cout),
                               lambda bi, ti: (bi, ti, 0)),
    )
    kernel = functools.partial(_norm_silu_conv_kernel,
                               width=width, shortcut=shortcut)
    return pl.pallas_call(
        kernel,
        out_shape=jax.ShapeDtypeStruct((b, hw, cout), jnp.float32),
        grid_spec=grid_spec,
        compiler_params=pltpu.CompilerParams(
            dimension_semantics=("parallel", "parallel"),
            vmem_limit_bytes=VMEM_LIMIT),
    )(*args)


# ---------------------------------------------------------------------------
# Wrapper
# ---------------------------------------------------------------------------
@functools.partial(jax.jit, static_argnames=("size_in", "size_out", "tile_h"))
def resnet_block_pallas(x, params, *, size_in, size_out, tile_h=8):
    """x: (B, H, W, size_in) f32 NHWC.  Returns (B, H, W, size_out) f32."""
    B, H, W, Cin = x.shape
    Cout = size_out
    assert Cin == size_in and Cin % GROUPS == 0 and Cout % GROUPS == 0
    th = min(tile_h, H)
    assert H % th == 0, "H must be divisible by the H-band size"
    assert W % 8 == 0, "W must be sublane-aligned"
    hw = H * W

    f32, bf16 = jnp.float32, jnp.bfloat16
    xf = x.reshape(B, hw, Cin).astype(f32)

    g1 = params["g1"].astype(f32); b1 = params["b1"].astype(f32)
    g2 = params["g2"].astype(f32); b2 = params["b2"].astype(f32)
    w1 = params["w1"].reshape(3, 3 * Cin, Cout).astype(bf16)   # HWIO -> (kh, kw*Cin, Cout)
    c1b = params["c1b"].reshape(1, Cout).astype(f32)
    w2 = params["w2"].reshape(3, 3 * Cout, Cout).astype(bf16)
    c2b = params["c2b"].reshape(1, Cout).astype(f32)

    # Static W-edge masks for the kw = -1 / +1 taps (slab has th+2 image rows).
    wn = np.arange((th + 2) * W) % W
    mask_l = jnp.asarray((wn != 0).astype(np.float32).reshape(-1, 1))
    mask_r = jnp.asarray((wn != W - 1).astype(np.float32).reshape(-1, 1))

    # --- norm1 + SiLU + conv1 --------------------------------------------
    stats1 = _gn_stats(xf, th, W)
    sc1, sh1 = _stats_to_affine(stats1, g1, b1, hw)
    x_halo = _build_halo(xf, th, H, W)
    h1 = _norm_silu_conv_pass(xf, x_halo, sc1, sh1, mask_l, mask_r, w1, c1b,
                              th, W, Cout)

    # --- norm2 + SiLU + conv2 + shortcut ----------------------------------
    stats2 = _gn_stats(h1, th, W)
    sc2, sh2 = _stats_to_affine(stats2, g2, b2, hw)
    h1_halo = _build_halo(h1, th, H, W)
    if size_in != size_out:
        ws = params["ws"].reshape(Cin, Cout).astype(bf16)
        sb = params["sb"].reshape(1, Cout).astype(f32)
        out = _norm_silu_conv_pass(h1, h1_halo, sc2, sh2, mask_l, mask_r, w2,
                                   c2b, th, W, Cout, shortcut="conv",
                                   x=xf, ws=ws, sb=sb)
    else:
        out = _norm_silu_conv_pass(h1, h1_halo, sc2, sh2, mask_l, mask_r, w2,
                                   c2b, th, W, Cout, shortcut="identity", x=xf)
    return out.reshape(B, H, W, Cout)


# ---------------------------------------------------------------------------
# Pure-JAX reference (same NHWC layout) for a numerical sanity check
# ---------------------------------------------------------------------------
def resnet_block_ref(x, p, *, size_in, size_out):
    def gn(h, gamma, beta):
        N, Hh, Ww, C = h.shape
        hg = h.reshape(N, Hh, Ww, GROUPS, C // GROUPS)
        mean = hg.mean(axis=(1, 2, 4), keepdims=True)
        var = ((hg - mean) ** 2).mean(axis=(1, 2, 4), keepdims=True)
        hn = ((hg - mean) * jax.lax.rsqrt(var + EPS)).reshape(N, Hh, Ww, C)
        return hn * gamma + beta

    def conv(h, w, b):
        y = jax.lax.conv_general_dilated(
            h, w, window_strides=(1, 1), padding="SAME",
            dimension_numbers=("NHWC", "HWIO", "NHWC"))
        return y + b

    silu = lambda t: t * jax.nn.sigmoid(t)
    h = conv(silu(gn(x, p["g1"], p["b1"])), p["w1"], p["c1b"])
    h = conv(silu(gn(h, p["g2"], p["b2"])), p["w2"], p["c2b"])
    if size_in != size_out:
        x = conv(x, p["ws"].reshape(1, 1, size_in, size_out), p["sb"])
    return x + h


# ---------------------------------------------------------------------------
if __name__ == "__main__":
    B, H, W = 2, 16, 16
    f32 = jnp.float32

    def make_params(key, size_in, size_out):
        ks = jax.random.split(key, 12)
        p = {
            "g1": 1.0 + 0.1 * jax.random.normal(ks[1], (size_in,), f32),
            "b1": 0.1 * jax.random.normal(ks[2], (size_in,), f32),
            "w1": 0.05 * jax.random.normal(ks[3], (3, 3, size_in, size_out), f32),
            "c1b": 0.02 * jax.random.normal(ks[4], (size_out,), f32),
            "g2": 1.0 + 0.1 * jax.random.normal(ks[5], (size_out,), f32),
            "b2": 0.1 * jax.random.normal(ks[6], (size_out,), f32),
            "w2": 0.05 * jax.random.normal(ks[7], (3, 3, size_out, size_out), f32),
            "c2b": 0.02 * jax.random.normal(ks[8], (size_out,), f32),
        }
        if size_in != size_out:
            p["ws"] = 0.05 * jax.random.normal(ks[9], (size_in, size_out), f32)
            p["sb"] = 0.02 * jax.random.normal(ks[10], (size_out,), f32)
        return p

    key = jax.random.PRNGKey(0)
    for (size_in, size_out) in [(32, 64), (64, 64)]:   # conv shortcut + identity
        kx, kp, key = jax.random.split(key, 3)
        x = jax.random.normal(kx, (B, H, W, size_in), f32)
        params = make_params(kp, size_in, size_out)

        out = resnet_block_pallas(x, params, size_in=size_in, size_out=size_out)
        out = jax.block_until_ready(out)

        ref = resnet_block_ref(x, params, size_in=size_in, size_out=size_out)
        assert out.shape == (B, H, W, size_out)
        max_err = float(jnp.max(jnp.abs(out - ref)))
        # bf16 MXU inputs + approx-EUP sigmoid, f32 accumulation -> relaxed tol.
        assert bool(jnp.allclose(out, ref, atol=2e-2, rtol=2e-2)), (
            "(%d->%d) max abs err = %g" % (size_in, size_out, max_err))

    print("KERNEL_OK")
</pallas_src>

<mosaic_0001>
module attributes {stable_mosaic.version = 11 : i64} {
  func.func @_gn_stats_kernel(%arg0: i32, %arg1: i32, %arg2: memref<1x128x32xf32, #tpu.memory_space<vmem>>, %arg3: memref<1x2x32xf32, #tpu.memory_space<vmem>>) attributes {dimension_semantics = [#tpu.dimension_semantics<parallel>, #tpu.dimension_semantics<arbitrary>], iteration_bounds = array<i64: 2, 2>, scalar_prefetch = 0 : i64, scratch_operands = 0 : i64, tpu.core_type = #tpu.core_type<tc>, window_params = [{transform_indices = @transform_0, window_bounds = array<i64: 1, 128, 32>}, {transform_indices = @transform_1, window_bounds = array<i64: 1, 2, 32>}]} {
    %c0_i32 = arith.constant 0 : i32
    %0 = arith.cmpi eq, %arg1, %c0_i32 : i32
    %1 = arith.extui %0 : i1 to i32
    %c0_i32_0 = arith.constant 0 : i32
    %2 = arith.cmpi ne, %1, %c0_i32_0 : i32
    scf.if %2 {
      %cst_10 = arith.constant 0.000000e+00 : f32
      %17 = vector.broadcast %cst_10 : f32 to vector<2x32xf32>
      %c0_11 = arith.constant 0 : index
      %c0_12 = arith.constant 0 : index
      %c0_13 = arith.constant 0 : index
      %18 = vector.load %arg3[%c0_11, %c0_12, %c0_13] : memref<1x2x32xf32, #tpu.memory_space<vmem>>, vector<1x2x32xf32>
      %19 = vector.shape_cast %18 : vector<1x2x32xf32> to vector<2x32xf32>
      %20 = vector.shape_cast %17 : vector<2x32xf32> to vector<1x2x32xf32>
      tpu.vector_store %arg3[%c0_11, %c0_12, %c0_13], %20 {strides = array<i32>} : memref<1x2x32xf32, #tpu.memory_space<vmem>>, vector<1x2x32xf32>,
    } else {
    }
    %c0 = arith.constant 0 : index
    %c0_1 = arith.constant 0 : index
    %c0_2 = arith.constant 0 : index
    %3 = vector.load %arg2[%c0, %c0_1, %c0_2] : memref<1x128x32xf32, #tpu.memory_space<vmem>>, vector<1x128x32xf32>
    %4 = vector.shape_cast %3 : vector<1x128x32xf32> to vector<128x32xf32>
    %cst = arith.constant dense<0.000000e+00> : vector<32xf32>
    %5 = vector.multi_reduction <add>, %4, %cst [0] : vector<128x32xf32> to vector<32xf32>
    %6 = vector.shape_cast %5 : vector<32xf32> to vector<1x32xf32>
    %7 = arith.mulf %4, %4 : vector<128x32xf32>
    %cst_3 = arith.constant dense<0.000000e+00> : vector<32xf32>
    %8 = vector.multi_reduction <add>, %7, %cst_3 [0] : vector<128x32xf32> to vector<32xf32>
    %9 = vector.shape_cast %8 : vector<32xf32> to vector<1x32xf32>
    %c0_4 = arith.constant 0 : index
    %c0_5 = arith.constant 0 : index
    %c0_6 = arith.constant 0 : index
    %10 = vector.load %arg3[%c0_4, %c0_5, %c0_6] : memref<1x2x32xf32, #tpu.memory_space<vmem>>, vector<1x2x32xf32>
    %11 = vector.shape_cast %10 : vector<1x2x32xf32> to vector<2x32xf32>
    %12 = tpu.concatenate %6, %9 in 0 : vector<1x32xf32>, vector<1x32xf32> -> vector<2x32xf32>
    %13 = arith.addf %11, %12 : vector<2x32xf32>
    %c0_7 = arith.constant 0 : index
    %c0_8 = arith.constant 0 : index
    %c0_9 = arith.constant 0 : index
    %14 = vector.load %arg3[%c0_7, %c0_8, %c0_9] : memref<1x2x32xf32, #tpu.memory_space<vmem>>, vector<1x2x32xf32>
    %15 = vector.shape_cast %14 : vector<1x2x32xf32> to vector<2x32xf32>
    %16 = vector.shape_cast %13 : vector<2x32xf32> to vector<1x2x32xf32>
    tpu.vector_store %arg3[%c0_7, %c0_8, %c0_9], %16 {strides = array<i32>} : memref<1x2x32xf32, #tpu.memory_space<vmem>>, vector<1x2x32xf32>,
    return
  }
  func.func @transform_0(%arg0: i32, %arg1: i32) -> (i32, i32, i32) {
    %c0_i32 = arith.constant 0 : i32
    %c0_i32_0 = arith.constant 0 : i32
    return %arg0, %arg1, %c0_i32 : i32, i32, i32
  }
  func.func @transform_1(%arg0: i32, %arg1: i32) -> (i32, i32, i32) {
    %c0_i32 = arith.constant 0 : i32
    %c0_i32_0 = arith.constant 0 : i32
    %c0_i32_1 = arith.constant 0 : i32
    return %arg0, %c0_i32, %c0_i32_0 : i32, i32, i32
  }
}

module attributes {stable_mosaic.version = 11 : i64} {
  func.func @_gn_stats_kernel(%arg0: i32, %arg1: i32, %arg2: memref<1x128x64xf32, #tpu.memory_space<vmem>>, %arg3: memref<1x2x64xf32, #tpu.memory_space<vmem>>) attributes {dimension_semantics = [#tpu.dimension_semantics<parallel>, #tpu.dimension_semantics<arbitrary>], iteration_bounds = array<i64: 2, 2>, scalar_prefetch = 0 : i64, scratch_operands = 0 : i64, tpu.core_type = #tpu.core_type<tc>, window_params = [{transform_indices = @transform_0, window_bounds = array<i64: 1, 128, 64>}, {transform_indices = @transform_1, window_bounds = array<i64: 1, 2, 64>}]} {
    %c0_i32 = arith.constant 0 : i32
    %0 = arith.cmpi eq, %arg1, %c0_i32 : i32
    %1 = arith.extui %0 : i1 to i32
    %c0_i32_0 = arith.constant 0 : i32
    %2 = arith.cmpi ne, %1, %c0_i32_0 : i32
    scf.if %2 {
      %cst_10 = arith.constant 0.000000e+00 : f32
      %17 = vector.broadcast %cst_10 : f32 to vector<2x64xf32>
      %c0_11 = arith.constant 0 : index
      %c0_12 = arith.constant 0 : index
      %c0_13 = arith.constant 0 : index
      %18 = vector.load %arg3[%c0_11, %c0_12, %c0_13] : memref<1x2x64xf32, #tpu.memory_space<vmem>>, vector<1x2x64xf32>
      %19 = vector.shape_cast %18 : vector<1x2x64xf32> to vector<2x64xf32>
      %20 = vector.shape_cast %17 : vector<2x64xf32> to vector<1x2x64xf32>
      tpu.vector_store %arg3[%c0_11, %c0_12, %c0_13], %20 {strides = array<i32>} : memref<1x2x64xf32, #tpu.memory_space<vmem>>, vector<1x2x64xf32>,
    } else {
    }
    %c0 = arith.constant 0 : index
    %c0_1 = arith.constant 0 : index
    %c0_2 = arith.constant 0 : index
    %3 = vector.load %arg2[%c0, %c0_1, %c0_2] : memref<1x128x64xf32, #tpu.memory_space<vmem>>, vector<1x128x64xf32>
    %4 = vector.shape_cast %3 : vector<1x128x64xf32> to vector<128x64xf32>
    %cst = arith.constant dense<0.000000e+00> : vector<64xf32>
    %5 = vector.multi_reduction <add>, %4, %cst [0] : vector<128x64xf32> to vector<64xf32>
    %6 = vector.shape_cast %5 : vector<64xf32> to vector<1x64xf32>
    %7 = arith.mulf %4, %4 : vector<128x64xf32>
    %cst_3 = arith.constant dense<0.000000e+00> : vector<64xf32>
    %8 = vector.multi_reduction <add>, %7, %cst_3 [0] : vector<128x64xf32> to vector<64xf32>
    %9 = vector.shape_cast %8 : vector<64xf32> to vector<1x64xf32>
    %c0_4 = arith.constant 0 : index
    %c0_5 = arith.constant 0 : index
    %c0_6 = arith.constant 0 : index
    %10 = vector.load %arg3[%c0_4, %c0_5, %c0_6] : memref<1x2x64xf32, #tpu.memory_space<vmem>>, vector<1x2x64xf32>
    %11 = vector.shape_cast %10 : vector<1x2x64xf32> to vector<2x64xf32>
    %12 = tpu.concatenate %6, %9 in 0 : vector<1x64xf32>, vector<1x64xf32> -> vector<2x64xf32>
    %13 = arith.addf %11, %12 : vector<2x64xf32>
    %c0_7 = arith.constant 0 : index
    %c0_8 = arith.constant 0 : index
    %c0_9 = arith.constant 0 : index
    %14 = vector.load %arg3[%c0_7, %c0_8, %c0_9] : memref<1x2x64xf32, #tpu.memory_space<vmem>>, vector<1x2x64xf32>
    %15 = vector.shape_cast %14 : vector<1x2x64xf32> to vector<2x64xf32>
    %16 = vector.shape_cast %13 : vector<2x64xf32> to vector<1x2x64xf32>
    tpu.vector_store %arg3[%c0_7, %c0_8, %c0_9], %16 {strides = array<i32>} : memref<1x2x64xf32, #tpu.memory_space<vmem>>, vector<1x2x64xf32>,
    return
  }
  func.func @transform_0(%arg0: i32, %arg1: i32) -> (i32, i32, i32) {
    %c0_i32 = arith.constant 0 : i32
    %c0_i32_0 = arith.constant 0 : i32
    return %arg0, %arg1, %c0_i32 : i32, i32, i32
  }
  func.func @transform_1(%arg0: i32, %arg1: i32) -> (i32, i32, i32) {
    %c0_i32 = arith.constant 0 : i32
    %c0_i32_0 = arith.constant 0 : i32
    %c0_i32_1 = arith.constant 0 : i32
    return %arg0, %c0_i32, %c0_i32_0 : i32, i32, i32
  }
}

module attributes {stable_mosaic.version = 11 : i64} {
  func.func @_norm_silu_conv_kernel(%arg0: i32, %arg1: i32, %arg2: memref<1x128x32xf32, #tpu.memory_space<vmem>>, %arg3: memref<1x1x32x32xf32, #tpu.memory_space<vmem>>, %arg4: memref<1x1x32xf32, #tpu.memory_space<vmem>>, %arg5: memref<1x1x32xf32, #tpu.memory_space<vmem>>, %arg6: memref<160x1xf32, #tpu.memory_space<vmem>>, %arg7: memref<160x1xf32, #tpu.memory_space<vmem>>, %arg8: memref<3x96x64xbf16, #tpu.memory_space<vmem>>, %arg9: memref<1x64xf32, #tpu.memory_space<vmem>>, %arg10: memref<1x128x64xf32, #tpu.memory_space<vmem>>) attributes {dimension_semantics = [#tpu.dimension_semantics<parallel>, #tpu.dimension_semantics<parallel>], iteration_bounds = array<i64: 2, 2>, scalar_prefetch = 0 : i64, scratch_operands = 0 : i64, tpu.core_type = #tpu.core_type<tc>, window_params = [{transform_indices = @transform_0, window_bounds = array<i64: 1, 128, 32>}, {transform_indices = @transform_1, window_bounds = array<i64: 1, 1, 32, 32>}, {transform_indices = @transform_2, window_bounds = array<i64: 1, 1, 32>}, {transform_indices = @transform_3, window_bounds = array<i64: 1, 1, 32>}, {pipeline_mode = #tpu.pipeline_mode<synchronous>, transform_indices = @transform_4, window_bounds = array<i64: 160, 1>}, {pipeline_mode = #tpu.pipeline_mode<synchronous>, transform_indices = @transform_5, window_bounds = array<i64: 160, 1>}, {pipeline_mode = #tpu.pipeline_mode<synchronous>, transform_indices = @transform_6, window_bounds = array<i64: 3, 96, 64>}, {pipeline_mode = #tpu.pipeline_mode<synchronous>, transform_indices = @transform_7, window_bounds = array<i64: 1, 64>}, {transform_indices = @transform_8, window_bounds = array<i64: 1, 128, 64>}]} {
    %c0 = arith.constant 0 : index
    %c0_0 = arith.constant 0 : index
    %c0_1 = arith.constant 0 : index
    %0 = vector.load %arg4[%c0, %c0_0, %c0_1] : memref<1x1x32xf32, #tpu.memory_space<vmem>>, vector<1x1x32xf32>
    %1 = vector.shape_cast %0 : vector<1x1x32xf32> to vector<1x32xf32>
    %c0_2 = arith.constant 0 : index
    %c0_3 = arith.constant 0 : index
    %c0_4 = arith.constant 0 : index
    %2 = vector.load %arg5[%c0_2, %c0_3, %c0_4] : memref<1x1x32xf32, #tpu.memory_space<vmem>>, vector<1x1x32xf32>
    %3 = vector.shape_cast %2 : vector<1x1x32xf32> to vector<1x32xf32>
    %c0_5 = arith.constant 0 : index
    %c0_6 = arith.constant 0 : index
    %c0_7 = arith.constant 0 : index
    %4 = vector.load %arg2[%c0_5, %c0_6, %c0_7] : memref<1x128x32xf32, #tpu.memory_space<vmem>>, vector<1x128x32xf32>
    %5 = vector.shape_cast %4 : vector<1x128x32xf32> to vector<128x32xf32>
    %6 = vector.broadcast %1 : vector<1x32xf32> to vector<128x32xf32>
    %7 = arith.mulf %5, %6 : vector<128x32xf32>
    %8 = vector.broadcast %3 : vector<1x32xf32> to vector<128x32xf32>
    %9 = arith.addf %7, %8 : vector<128x32xf32>
    %cst = arith.constant 0.000000e+00 : f32
    %10 = vector.broadcast %cst : f32 to vector<128x32xf32>
    %11 = arith.subf %10, %9 : vector<128x32xf32>
    %12 = math.exp %11 : vector<128x32xf32>
    %cst_8 = arith.constant 1.000000e+00 : f32
    %13 = vector.broadcast %cst_8 : f32 to vector<128x32xf32>
    %14 = arith.addf %13, %12 : vector<128x32xf32>
    %15 = tpu.reciprocal %14 {approx = true} : vector<128x32xf32> -> vector<128x32xf32>
    %16 = arith.mulf %9, %15 : vector<128x32xf32>
    %c0_9 = arith.constant 0 : index
    %c0_10 = arith.constant 0 : index
    %c0_11 = arith.constant 0 : index
    %c0_12 = arith.constant 0 : index
    %17 = vector.load %arg3[%c0_9, %c0_10, %c0_11, %c0_12] : memref<1x1x32x32xf32, #tpu.memory_space<vmem>>, vector<1x1x32x32xf32>
    %18 = vector.shape_cast %17 : vector<1x1x32x32xf32> to vector<32x32xf32>
    %19 = vector.broadcast %1 : vector<1x32xf32> to vector<32x32xf32>
    %20 = arith.mulf %18, %19 : vector<32x32xf32>
    %21 = vector.broadcast %3 : vector<1x32xf32> to vector<32x32xf32>
    %22 = arith.addf %20, %21 : vector<32x32xf32>
    %cst_13 = arith.constant 0.000000e+00 : f32
    %23 = vector.broadcast %cst_13 : f32 to vector<32x32xf32>
    %24 = arith.subf %23, %22 : vector<32x32xf32>
    %25 = math.exp %24 : vector<32x32xf32>
    %cst_14 = arith.constant 1.000000e+00 : f32
    %26 = vector.broadcast %cst_14 : f32 to vector<32x32xf32>
    %27 = arith.addf %26, %25 : vector<32x32xf32>
    %28 = tpu.reciprocal %27 {approx = true} : vector<32x32xf32> -> vector<32x32xf32>
    %29 = arith.mulf %22, %28 : vector<32x32xf32>
    %c0_i32 = arith.constant 0 : i32
    %30 = arith.cmpi sgt, %arg1, %c0_i32 : i32
    %31 = vector.extract_strided_slice %29 {offsets = [0, 0], sizes = [16, 32], strides = [1, 1]} : vector<32x32xf32> to vector<16x32xf32>
    %cst_15 = arith.constant 0.000000e+00 : f32
    %32 = vector.broadcast %cst_15 : f32 to vector<16x32xf32>
    %33 = arith.select %30, %31, %32 : vector<16x32xf32>
    %c1_i32 = arith.constant 1 : i32
    %34 = arith.cmpi slt, %arg1, %c1_i32 : i32
    %35 = vector.extract_strided_slice %29 {offsets = [16, 0], sizes = [16, 32], strides = [1, 1]} : vector<32x32xf32> to vector<16x32xf32>
    %cst_16 = arith.constant 0.000000e+00 : f32
    %36 = vector.broadcast %cst_16 : f32 to vector<16x32xf32>
    %37 = arith.select %34, %35, %36 : vector<16x32xf32>
    %38 = tpu.concatenate %33, %16, %37 in 0 : vector<16x32xf32>, vector<128x32xf32>, vector<16x32xf32> -> vector<160x32xf32>
    %c1_i32_17 = arith.constant 1 : i32
    %39 = tpu.dynamic_rotate %38 by %c1_i32_17 dim 0 : vector<160x32xf32>, i32 -> vector<160x32xf32>
    %c0_18 = arith.constant 0 : index
    %c0_19 = arith.constant 0 : index
    %40 = vector.load %arg6[%c0_18, %c0_19] : memref<160x1xf32, #tpu.memory_space<vmem>>, vector<160x1xf32>
    %41 = vector.broadcast %40 : vector<160x1xf32> to vector<160x32xf32>
    %42 = arith.mulf %39, %41 : vector<160x32xf32>
    %c159_i32 = arith.constant 159 : i32
    %43 = tpu.dynamic_rotate %38 by %c159_i32 dim 0 : vector<160x32xf32>, i32 -> vector<160x32xf32>
    %c0_20 = arith.constant 0 : index
    %c0_21 = arith.constant 0 : index
    %44 = vector.load %arg7[%c0_20, %c0_21] : memref<160x1xf32, #tpu.memory_space<vmem>>, vector<160x1xf32>
    %45 = vector.broadcast %44 : vector<160x1xf32> to vector<160x32xf32>
    %46 = arith.mulf %43, %45 : vector<160x32xf32>
    %47 = arith.truncf %42 : vector<160x32xf32> to vector<160x32xbf16>
    %48 = arith.truncf %38 : vector<160x32xf32> to vector<160x32xbf16>
    %49 = arith.truncf %46 : vector<160x32xf32> to vector<160x32xbf16>
    %50 = tpu.concatenate %47, %48, %49 in 1 : vector<160x32xbf16>, vector<160x32xbf16>, vector<160x32xbf16> -> vector<160x96xbf16>
    %51 = vector.extract_strided_slice %50 {offsets = [0, 0], sizes = [128, 96], strides = [1, 1]} : vector<160x96xbf16> to vector<128x96xbf16>
    %c0_22 = arith.constant 0 : index
    %c0_23 = arith.constant 0 : index
    %c0_24 = arith.constant 0 : index
    %52 = vector.load %arg8[%c0_22, %c0_23, %c0_24] : memref<3x96x64xbf16, #tpu.memory_space<vmem>>, vector<1x96x64xbf16>
    %53 = vector.shape_cast %52 : vector<1x96x64xbf16> to vector<96x64xbf16>
    %cst_25 = arith.constant dense<0.000000e+00> : vector<128x64xf32>
    %54 = tpu.matmul %51, %53, %cst_25 {dimension_numbers = #tpu.dot_dimension_numbers<[1], [0], [0], [1], [0, 0, 1, 1], [], []>} : vector<128x96xbf16>, vector<96x64xbf16>, vector<128x64xf32> -> vector<128x64xf32>
    %55 = vector.extract_strided_slice %50 {offsets = [16, 0], sizes = [128, 96], strides = [1, 1]} : vector<160x96xbf16> to vector<128x96xbf16>
    %c1 = arith.constant 1 : index
    %c0_26 = arith.constant 0 : index
    %c0_27 = arith.constant 0 : index
    %56 = vector.load %arg8[%c1, %c0_26, %c0_27] : memref<3x96x64xbf16, #tpu.memory_space<vmem>>, vector<1x96x64xbf16>
    %57 = vector.shape_cast %56 : vector<1x96x64xbf16> to vector<96x64xbf16>
    %cst_28 = arith.constant dense<0.000000e+00> : vector<128x64xf32>
    %58 = tpu.matmul %55, %57, %cst_28 {dimension_numbers = #tpu.dot_dimension_numbers<[1], [0], [0], [1], [0, 0, 1, 1], [], []>} : vector<128x96xbf16>, vector<96x64xbf16>, vector<128x64xf32> -> vector<128x64xf32>
    %59 = arith.addf %54, %58 : vector<128x64xf32>
    %60 = vector.extract_strided_slice %50 {offsets = [32, 0], sizes = [128, 96], strides = [1, 1]} : vector<160x96xbf16> to vector<128x96xbf16>
    %c2 = arith.constant 2 : index
    %c0_29 = arith.constant 0 : index
    %c0_30 = arith.constant 0 : index
    %61 = vector.load %arg8[%c2, %c0_29, %c0_30] : memref<3x96x64xbf16, #tpu.memory_space<vmem>>, vector<1x96x64xbf16>
    %62 = vector.shape_cast %61 : vector<1x96x64xbf16> to vector<96x64xbf16>
    %cst_31 = arith.constant dense<0.000000e+00> : vector<128x64xf32>
    %63 = tpu.matmul %60, %62, %cst_31 {dimension_numbers = #tpu.dot_dimension_numbers<[1], [0], [0], [1], [0, 0, 1, 1], [], []>} : vector<128x96xbf16>, vector<96x64xbf16>, vector<128x64xf32> -> vector<128x64xf32>
    %64 = arith.addf %59, %63 : vector<128x64xf32>
    %c0_32 = arith.constant 0 : index
    %c0_33 = arith.constant 0 : index
    %65 = vector.load %arg9[%c0_32, %c0_33] : memref<1x64xf32, #tpu.memory_space<vmem>>, vector<1x64xf32>
    %66 = vector.broadcast %65 : vector<1x64xf32> to vector<128x64xf32>
    %67 = arith.addf %64, %66 : vector<128x64xf32>
    %c0_34 = arith.constant 0 : index
    %c0_35 = arith.constant 0 : index
    %c0_36 = arith.constant 0 : index
    %68 = vector.load %arg10[%c0_34, %c0_35, %c0_36] : memref<1x128x64xf32, #tpu.memory_space<vmem>>, vector<1x128x64xf32>
    %69 = vector.shape_cast %68 : vector<1x128x64xf32> to vector<128x64xf32>
    %70 = vector.shape_cast %67 : vector<128x64xf32> to vector<1x128x64xf32>
    tpu.vector_store %arg10[%c0_34, %c0_35, %c0_36], %70 {strides = array<i32>} : memref<1x128x64xf32, #tpu.memory_space<vmem>>, vector<1x128x64xf32>,
    return
  }
  func.func @transform_0(%arg0: i32, %arg1: i32) -> (i32, i32, i32) {
    %c0_i32 = arith.constant 0 : i32
    %c0_i32_0 = arith.constant 0 : i32
    return %arg0, %arg1, %c0_i32 : i32, i32, i32
  }
  func.func @transform_1(%arg0: i32, %arg1: i32) -> (i32, i32, i32, i32) {
    %c0_i32 = arith.constant 0 : i32
    %c0_i32_0 = arith.constant 0 : i32
    %c0_i32_1 = arith.constant 0 : i32
    return %arg0, %arg1, %c0_i32, %c0_i32_0 : i32, i32, i32, i32
  }
  func.func @transform_2(%arg0: i32, %arg1: i32) -> (i32, i32, i32) {
    %c0_i32 = arith.constant 0 : i32
    %c0_i32_0 = arith.constant 0 : i32
    %c0_i32_1 = arith.constant 0 : i32
    return %arg0, %c0_i32, %c0_i32_0 : i32, i32, i32
  }
  func.func @transform_3(%arg0: i32, %arg1: i32) -> (i32, i32, i32) {
    %c0_i32 = arith.constant 0 : i32
    %c0_i32_0 = arith.constant 0 : i32
    %c0_i32_1 = arith.constant 0 : i32
    return %arg0, %c0_i32, %c0_i32_0 : i32, i32, i32
  }
  func.func @transform_4(%arg0: i32, %arg1: i32) -> (i32, i32) {
    %c0_i32 = arith.constant 0 : i32
    %c0_i32_0 = arith.constant 0 : i32
    %c0_i32_1 = arith.constant 0 : i32
    return %c0_i32, %c0_i32_0 : i32, i32
  }
  func.func @transform_5(%arg0: i32, %arg1: i32) -> (i32, i32) {
    %c0_i32 = arith.constant 0 : i32
    %c0_i32_0 = arith.constant 0 : i32
    %c0_i32_1 = arith.constant 0 : i32
    return %c0_i32, %c0_i32_0 : i32, i32
  }
  func.func @transform_6(%arg0: i32, %arg1: i32) -> (i32, i32, i32) {
    %c0_i32 = arith.constant 0 : i32
    %c0_i32_0 = arith.constant 0 : i32
    %c0_i32_1 = arith.constant 0 : i32
    %c0_i32_2 = arith.constant 0 : i32
    return %c0_i32, %c0_i32_0, %c0_i32_1 : i32, i32, i32
  }
  func.func @transform_7(%arg0: i32, %arg1: i32) -> (i32, i32) {
    %c0_i32 = arith.constant 0 : i32
    %c0_i32_0 = arith.constant 0 : i32
    %c0_i32_1 = arith.constant 0 : i32
    return %c0_i32, %c0_i32_0 : i32, i32
  }
  func.func @transform_8(%arg0: i32, %arg1: i32) -> (i32, i32, i32) {
    %c0_i32 = arith.constant 0 : i32
    %c0_i32_0 = arith.constant 0 : i32
    return %arg0, %arg1, %c0_i32 : i32, i32, i32
  }
}

module attributes {stable_mosaic.version = 11 : i64} {
  func.func @_norm_silu_conv_kernel(%arg0: i32, %arg1: i32, %arg2: memref<1x128x64xf32, #tpu.memory_space<vmem>>, %arg3: memref<1x1x32x64xf32, #tpu.memory_space<vmem>>, %arg4: memref<1x1x64xf32, #tpu.memory_space<vmem>>, %arg5: memref<1x1x64xf32, #tpu.memory_space<vmem>>, %arg6: memref<160x1xf32, #tpu.memory_space<vmem>>, %arg7: memref<160x1xf32, #tpu.memory_space<vmem>>, %arg8: memref<3x192x64xbf16, #tpu.memory_space<vmem>>, %arg9: memref<1x64xf32, #tpu.memory_space<vmem>>, %arg10: memref<1x128x32xf32, #tpu.memory_space<vmem>>, %arg11: memref<32x64xbf16, #tpu.memory_space<vmem>>, %arg12: memref<1x64xf32, #tpu.memory_space<vmem>>, %arg13: memref<1x128x64xf32, #tpu.memory_space<vmem>>) attributes {dimension_semantics = [#tpu.dimension_semantics<parallel>, #tpu.dimension_semantics<parallel>], iteration_bounds = array<i64: 2, 2>, scalar_prefetch = 0 : i64, scratch_operands = 0 : i64, tpu.core_type = #tpu.core_type<tc>, window_params = [{transform_indices = @transform_0, window_bounds = array<i64: 1, 128, 64>}, {transform_indices = @transform_1, window_bounds = array<i64: 1, 1, 32, 64>}, {transform_indices = @transform_2, window_bounds = array<i64: 1, 1, 64>}, {transform_indices = @transform_3, window_bounds = array<i64: 1, 1, 64>}, {pipeline_mode = #tpu.pipeline_mode<synchronous>, transform_indices = @transform_4, window_bounds = array<i64: 160, 1>}, {pipeline_mode = #tpu.pipeline_mode<synchronous>, transform_indices = @transform_5, window_bounds = array<i64: 160, 1>}, {pipeline_mode = #tpu.pipeline_mode<synchronous>, transform_indices = @transform_6, window_bounds = array<i64: 3, 192, 64>}, {pipeline_mode = #tpu.pipeline_mode<synchronous>, transform_indices = @transform_7, window_bounds = array<i64: 1, 64>}, {transform_indices = @transform_8, window_bounds = array<i64: 1, 128, 32>}, {pipeline_mode = #tpu.pipeline_mode<synchronous>, transform_indices = @transform_9, window_bounds = array<i64: 32, 64>}, {pipeline_mode = #tpu.pipeline_mode<synchronous>, transform_indices = @transform_10, window_bounds = array<i64: 1, 64>}, {transform_indices = @transform_11, window_bounds = array<i64: 1, 128, 64>}]} {
    %c0 = arith.constant 0 : index
    %c0_0 = arith.constant 0 : index
    %c0_1 = arith.constant 0 : index
    %0 = vector.load %arg4[%c0, %c0_0, %c0_1] : memref<1x1x64xf32, #tpu.memory_space<vmem>>, vector<1x1x64xf32>
    %1 = vector.shape_cast %0 : vector<1x1x64xf32> to vector<1x64xf32>
    %c0_2 = arith.constant 0 : index
    %c0_3 = arith.constant 0 : index
    %c0_4 = arith.constant 0 : index
    %2 = vector.load %arg5[%c0_2, %c0_3, %c0_4] : memref<1x1x64xf32, #tpu.memory_space<vmem>>, vector<1x1x64xf32>
    %3 = vector.shape_cast %2 : vector<1x1x64xf32> to vector<1x64xf32>
    %c0_5 = arith.constant 0 : index
    %c0_6 = arith.constant 0 : index
    %c0_7 = arith.constant 0 : index
    %4 = vector.load %arg2[%c0_5, %c0_6, %c0_7] : memref<1x128x64xf32, #tpu.memory_space<vmem>>, vector<1x128x64xf32>
    %5 = vector.shape_cast %4 : vector<1x128x64xf32> to vector<128x64xf32>
    %6 = vector.broadcast %1 : vector<1x64xf32> to vector<128x64xf32>
    %7 = arith.mulf %5, %6 : vector<128x64xf32>
    %8 = vector.broadcast %3 : vector<1x64xf32> to vector<128x64xf32>
    %9 = arith.addf %7, %8 : vector<128x64xf32>
    %cst = arith.constant 0.000000e+00 : f32
    %10 = vector.broadcast %cst : f32 to vector<128x64xf32>
    %11 = arith.subf %10, %9 : vector<128x64xf32>
    %12 = math.exp %11 : vector<128x64xf32>
    %cst_8 = arith.constant 1.000000e+00 : f32
    %13 = vector.broadcast %cst_8 : f32 to vector<128x64xf32>
    %14 = arith.addf %13, %12 : vector<128x64xf32>
    %15 = tpu.reciprocal %14 {approx = true} : vector<128x64xf32> -> vector<128x64xf32>
    %16 = arith.mulf %9, %15 : vector<128x64xf32>
    %c0_9 = arith.constant 0 : index
    %c0_10 = arith.constant 0 : index
    %c0_11 = arith.constant 0 : index
    %c0_12 = arith.constant 0 : index
    %17 = vector.load %arg3[%c0_9, %c0_10, %c0_11, %c0_12] : memref<1x1x32x64xf32, #tpu.memory_space<vmem>>, vector<1x1x32x64xf32>
    %18 = vector.shape_cast %17 : vector<1x1x32x64xf32> to vector<32x64xf32>
    %19 = vector.broadcast %1 : vector<1x64xf32> to vector<32x64xf32>
    %20 = arith.mulf %18, %19 : vector<32x64xf32>
    %21 = vector.broadcast %3 : vector<1x64xf32> to vector<32x64xf32>
    %22 = arith.addf %20, %21 : vector<32x64xf32>
    %cst_13 = arith.constant 0.000000e+00 : f32
    %23 = vector.broadcast %cst_13 : f32 to vector<32x64xf32>
    %24 = arith.subf %23, %22 : vector<32x64xf32>
    %25 = math.exp %24 : vector<32x64xf32>
    %cst_14 = arith.constant 1.000000e+00 : f32
    %26 = vector.broadcast %cst_14 : f32 to vector<32x64xf32>
    %27 = arith.addf %26, %25 : vector<32x64xf32>
    %28 = tpu.reciprocal %27 {approx = true} : vector<32x64xf32> -> vector<32x64xf32>
    %29 = arith.mulf %22, %28 : vector<32x64xf32>
    %c0_i32 = arith.constant 0 : i32
    %30 = arith.cmpi sgt, %arg1, %c0_i32 : i32
    %31 = vector.extract_strided_slice %29 {offsets = [0, 0], sizes = [16, 64], strides = [1, 1]} : vector<32x64xf32> to vector<16x64xf32>
    %cst_15 = arith.constant 0.000000e+00 : f32
    %32 = vector.broadcast %cst_15 : f32 to vector<16x64xf32>
    %33 = arith.select %30, %31, %32 : vector<16x64xf32>
    %c1_i32 = arith.constant 1 : i32
    %34 = arith.cmpi slt, %arg1, %c1_i32 : i32
    %35 = vector.extract_strided_slice %29 {offsets = [16, 0], sizes = [16, 64], strides = [1, 1]} : vector<32x64xf32> to vector<16x64xf32>
    %cst_16 = arith.constant 0.000000e+00 : f32
    %36 = vector.broadcast %cst_16 : f32 to vector<16x64xf32>
    %37 = arith.select %34, %35, %36 : vector<16x64xf32>
    %38 = tpu.concatenate %33, %16, %37 in 0 : vector<16x64xf32>, vector<128x64xf32>, vector<16x64xf32> -> vector<160x64xf32>
    %c1_i32_17 = arith.constant 1 : i32
    %39 = tpu.dynamic_rotate %38 by %c1_i32_17 dim 0 : vector<160x64xf32>, i32 -> vector<160x64xf32>
    %c0_18 = arith.constant 0 : index
    %c0_19 = arith.constant 0 : index
    %40 = vector.load %arg6[%c0_18, %c0_19] : memref<160x1xf32, #tpu.memory_space<vmem>>, vector<160x1xf32>
    %41 = vector.broadcast %40 : vector<160x1xf32> to vector<160x64xf32>
    %42 = arith.mulf %39, %41 : vector<160x64xf32>
    %c159_i32 = arith.constant 159 : i32
    %43 = tpu.dynamic_rotate %38 by %c159_i32 dim 0 : vector<160x64xf32>, i32 -> vector<160x64xf32>
    %c0_20 = arith.constant 0 : index
    %c0_21 = arith.constant 0 : index
    %44 = vector.load %arg7[%c0_20, %c0_21] : memref<160x1xf32, #tpu.memory_space<vmem>>, vector<160x1xf32>
    %45 = vector.broadcast %44 : vector<160x1xf32> to vector<160x64xf32>
    %46 = arith.mulf %43, %45 : vector<160x64xf32>
    %47 = arith.truncf %42 : vector<160x64xf32> to vector<160x64xbf16>
    %48 = arith.truncf %38 : vector<160x64xf32> to vector<160x64xbf16>
    %49 = arith.truncf %46 : vector<160x64xf32> to vector<160x64xbf16>
    %50 = tpu.concatenate %47, %48, %49 in 1 : vector<160x64xbf16>, vector<160x64xbf16>, vector<160x64xbf16> -> vector<160x192xbf16>
    %51 = vector.extract_strided_slice %50 {offsets = [0, 0], sizes = [128, 192], strides = [1, 1]} : vector<160x192xbf16> to vector<128x192xbf16>
    %c0_22 = arith.constant 0 : index
    %c0_23 = arith.constant 0 : index
    %c0_24 = arith.constant 0 : index
    %52 = vector.load %arg8[%c0_22, %c0_23, %c0_24] : memref<3x192x64xbf16, #tpu.memory_space<vmem>>, vector<1x192x64xbf16>
    %53 = vector.shape_cast %52 : vector<1x192x64xbf16> to vector<192x64xbf16>
    %cst_25 = arith.constant dense<0.000000e+00> : vector<128x64xf32>
    %54 = tpu.matmul %51, %53, %cst_25 {dimension_numbers = #tpu.dot_dimension_numbers<[1], [0], [0], [1], [0, 0, 1, 1], [], []>} : vector<128x192xbf16>, vector<192x64xbf16>, vector<128x64xf32> -> vector<128x64xf32>
    %55 = vector.extract_strided_slice %50 {offsets = [16, 0], sizes = [128, 192], strides = [1, 1]} : vector<160x192xbf16> to vector<128x192xbf16>
    %c1 = arith.constant 1 : index
    %c0_26 = arith.constant 0 : index
    %c0_27 = arith.constant 0 : index
    %56 = vector.load %arg8[%c1, %c0_26, %c0_27] : memref<3x192x64xbf16, #tpu.memory_space<vmem>>, vector<1x192x64xbf16>
    %57 = vector.shape_cast %56 : vector<1x192x64xbf16> to vector<192x64xbf16>
    %cst_28 = arith.constant dense<0.000000e+00> : vector<128x64xf32>
    %58 = tpu.matmul %55, %57, %cst_28 {dimension_numbers = #tpu.dot_dimension_numbers<[1], [0], [0], [1], [0, 0, 1, 1], [], []>} : vector<128x192xbf16>, vector<192x64xbf16>, vector<128x64xf32> -> vector<128x64xf32>
    %59 = arith.addf %54, %58 : vector<128x64xf32>
    %60 = vector.extract_strided_slice %50 {offsets = [32, 0], sizes = [128, 192], strides = [1, 1]} : vector<160x192xbf16> to vector<128x192xbf16>
    %c2 = arith.constant 2 : index
    %c0_29 = arith.constant 0 : index
    %c0_30 = arith.constant 0 : index
    %61 = vector.load %arg8[%c2, %c0_29, %c0_30] : memref<3x192x64xbf16, #tpu.memory_space<vmem>>, vector<1x192x64xbf16>
    %62 = vector.shape_cast %61 : vector<1x192x64xbf16> to vector<192x64xbf16>
    %cst_31 = arith.constant dense<0.000000e+00> : vector<128x64xf32>
    %63 = tpu.matmul %60, %62, %cst_31 {dimension_numbers = #tpu.dot_dimension_numbers<[1], [0], [0], [1], [0, 0, 1, 1], [], []>} : vector<128x192xbf16>, vector<192x64xbf16>, vector<128x64xf32> -> vector<128x64xf32>
    %64 = arith.addf %59, %63 : vector<128x64xf32>
    %c0_32 = arith.constant 0 : index
    %c0_33 = arith.constant 0 : index
    %65 = vector.load %arg9[%c0_32, %c0_33] : memref<1x64xf32, #tpu.memory_space<vmem>>, vector<1x64xf32>
    %66 = vector.broadcast %65 : vector<1x64xf32> to vector<128x64xf32>
    %67 = arith.addf %64, %66 : vector<128x64xf32>
    %c0_34 = arith.constant 0 : index
    %c0_35 = arith.constant 0 : index
    %c0_36 = arith.constant 0 : index
    %68 = vector.load %arg10[%c0_34, %c0_35, %c0_36] : memref<1x128x32xf32, #tpu.memory_space<vmem>>, vector<1x128x32xf32>
    %69 = vector.shape_cast %68 : vector<1x128x32xf32> to vector<128x32xf32>
    %70 = arith.truncf %69 : vector<128x32xf32> to vector<128x32xbf16>
    %c0_37 = arith.constant 0 : index
    %c0_38 = arith.constant 0 : index
    %71 = vector.load %arg11[%c0_37, %c0_38] : memref<32x64xbf16, #tpu.memory_space<vmem>>, vector<32x64xbf16>
    %cst_39 = arith.constant dense<0.000000e+00> : vector<128x64xf32>
    %72 = tpu.matmul %70, %71, %cst_39 {dimension_numbers = #tpu.dot_dimension_numbers<[1], [0], [0], [1], [0, 0, 1, 1], [], []>} : vector<128x32xbf16>, vector<32x64xbf16>, vector<128x64xf32> -> vector<128x64xf32>
    %73 = arith.addf %67, %72 : vector<128x64xf32>
    %c0_40 = arith.constant 0 : index
    %c0_41 = arith.constant 0 : index
    %74 = vector.load %arg12[%c0_40, %c0_41] : memref<1x64xf32, #tpu.memory_space<vmem>>, vector<1x64xf32>
    %75 = vector.broadcast %74 : vector<1x64xf32> to vector<128x64xf32>
    %76 = arith.addf %73, %75 : vector<128x64xf32>
    %c0_42 = arith.constant 0 : index
    %c0_43 = arith.constant 0 : index
    %c0_44 = arith.constant 0 : index
    %77 = vector.load %arg13[%c0_42, %c0_43, %c0_44] : memref<1x128x64xf32, #tpu.memory_space<vmem>>, vector<1x128x64xf32>
    %78 = vector.shape_cast %77 : vector<1x128x64xf32> to vector<128x64xf32>
    %79 = vector.shape_cast %76 : vector<128x64xf32> to vector<1x128x64xf32>
    tpu.vector_store %arg13[%c0_42, %c0_43, %c0_44], %79 {strides = array<i32>} : memref<1x128x64xf32, #tpu.memory_space<vmem>>, vector<1x128x64xf32>,
    return
  }
  func.func @transform_0(%arg0: i32, %arg1: i32) -> (i32, i32, i32) {
    %c0_i32 = arith.constant 0 : i32
    %c0_i32_0 = arith.constant 0 : i32
    return %arg0, %arg1, %c0_i32 : i32, i32, i32
  }
  func.func @transform_1(%arg0: i32, %arg1: i32) -> (i32, i32, i32, i32) {
    %c0_i32 = arith.constant 0 : i32
    %c0_i32_0 = arith.constant 0 : i32
    %c0_i32_1 = arith.constant 0 : i32
    return %arg0, %arg1, %c0_i32, %c0_i32_0 : i32, i32, i32, i32
  }
  func.func @transform_2(%arg0: i32, %arg1: i32) -> (i32, i32, i32) {
    %c0_i32 = arith.constant 0 : i32
    %c0_i32_0 = arith.constant 0 : i32
    %c0_i32_1 = arith.constant 0 : i32
    return %arg0, %c0_i32, %c0_i32_0 : i32, i32, i32
  }
  func.func @transform_3(%arg0: i32, %arg1: i32) -> (i32, i32, i32) {
    %c0_i32 = arith.constant 0 : i32
    %c0_i32_0 = arith.constant 0 : i32
    %c0_i32_1 = arith.constant 0 : i32
    return %arg0, %c0_i32, %c0_i32_0 : i32, i32, i32
  }
  func.func @transform_4(%arg0: i32, %arg1: i32) -> (i32, i32) {
    %c0_i32 = arith.constant 0 : i32
    %c0_i32_0 = arith.constant 0 : i32
    %c0_i32_1 = arith.constant 0 : i32
    return %c0_i32, %c0_i32_0 : i32, i32
  }
  func.func @transform_5(%arg0: i32, %arg1: i32) -> (i32, i32) {
    %c0_i32 = arith.constant 0 : i32
    %c0_i32_0 = arith.constant 0 : i32
    %c0_i32_1 = arith.constant 0 : i32
    return %c0_i32, %c0_i32_0 : i32, i32
  }
  func.func @transform_6(%arg0: i32, %arg1: i32) -> (i32, i32, i32) {
    %c0_i32 = arith.constant 0 : i32
    %c0_i32_0 = arith.constant 0 : i32
    %c0_i32_1 = arith.constant 0 : i32
    %c0_i32_2 = arith.constant 0 : i32
    return %c0_i32, %c0_i32_0, %c0_i32_1 : i32, i32, i32
  }
  func.func @transform_7(%arg0: i32, %arg1: i32) -> (i32, i32) {
    %c0_i32 = arith.constant 0 : i32
    %c0_i32_0 = arith.constant 0 : i32
    %c0_i32_1 = arith.constant 0 : i32
    return %c0_i32, %c0_i32_0 : i32, i32
  }
  func.func @transform_8(%arg0: i32, %arg1: i32) -> (i32, i32, i32) {
    %c0_i32 = arith.constant 0 : i32
    %c0_i32_0 = arith.constant 0 : i32
    return %arg0, %arg1, %c0_i32 : i32, i32, i32
  }
  func.func @transform_9(%arg0: i32, %arg1: i32) -> (i32, i32) {
    %c0_i32 = arith.constant 0 : i32
    %c0_i32_0 = arith.constant 0 : i32
    %c0_i32_1 = arith.constant 0 : i32
    return %c0_i32, %c0_i32_0 : i32, i32
  }
  func.func @transform_10(%arg0: i32, %arg1: i32) -> (i32, i32) {
    %c0_i32 = arith.constant 0 : i32
    %c0_i32_0 = arith.constant 0 : i32
    %c0_i32_1 = arith.constant 0 : i32
    return %c0_i32, %c0_i32_0 : i32, i32
  }
  func.func @transform_11(%arg0: i32, %arg1: i32) -> (i32, i32, i32) {
    %c0_i32 = arith.constant 0 : i32
    %c0_i32_0 = arith.constant 0 : i32
    return %arg0, %arg1, %c0_i32 : i32, i32, i32
  }
}

</mosaic_0001>

<bundles_post_ra>
// kernel: squeeze.6
= control target key start
LH: loop header
LB: loop body
LE: loop exit
PB: predicated region body
PF: predicated region fallthrough
CT: control target
= control target key end

     0   :  { %s354_s8 = smov 122   ;;  %s355_s9 = smov 124   ;;  %vm7_vm0 = vcmask 15360   ;;  %s653_s0 = inlined_call_operand.vmem [shape: f32[2,64], index: 0, kind: input, shape index: {}]   ;;  %s654_s1 = inlined_call_operand.vmem [shape: f32[2,32,2], index: 1, kind: output, shape index: {}]  }
   0x1   :  { %v4_v0 = vld [vmem:[%s653_s0] sm:$0x3]  ;;  %s353_s0 = smov 126   ;;  %s356_s10 = smov 120  }
   0x2   :  { %5 = vst [vmem:[#allocation0] sm:$0x3] %v4_v0  ;;  %s357_s11 = smov 118   ;;  %s358_s12 = smov 116  }
   0x3   :  { %s359_s13 = smov 114   ;;  %s360_s14 = smov 112  }
   0x4   :  { %s361_s15 = smov 110   ;;  %s362_s16 = smov 108  }
   0x5   :  { %s363_s17 = smov 106   ;;  %s364_s18 = smov 104  }
   0x6   :  { %s365_s19 = smov 102   ;;  %s366_s20 = smov 100  }
   0x7   :  { %s367_s21 = smov 98   ;;  %s368_s22 = smov 96  }
   0x8   :  { %s369_s23 = smov 94   ;;  %s370_s24 = smov 92  }
   0x9   :  { %v11_v1 = vld [vmem:[#allocation0] sm:$0x3]   ;;  %s371_s25 = smov 90   ;;  %s372_s26 = smov 88  }
   0xa   :  { %v27_v2 = vld [vmem:[#allocation0] sm:$0x3]   ;;  %12 = vrot.lane.b32.xlu0 %v11_v1, %s353_s0  ;;  %s373_s27 = smov 86   ;;  %s374_s28 = smov 84  }
   0xb   :  { %28 = vrot.lane.b32.xlu1 %v27_v2, %s354_s8  ;;  %v19_v3 = vld [vmem:[#allocation0] sm:$0x3]   ;;  %s375_s29 = smov 82   ;;  %s376_s30 = smov 80  }
   0xc   :  { %v35_v4 = vld [vmem:[#allocation0] sm:$0x3]   ;;  %s377_s6 = smov 78   ;;  %s378_s7 = smov 76  }
   0xd   :  { %v43_v5 = vld [vmem:[#allocation0] sm:$0x3]   ;;  %s379_s0 = smov 74   ;;  %s380_s8 = smov 72  }
   0xe   :  { %20 = vrot.lane.b32.xlu0 %v19_v3, %s355_s9  ;;  %v51_v6 = vld [vmem:[#allocation0] sm:$0x3]   ;;  %s381_s9 = smov 70  }
   0xf   :  { %36 = vrot.lane.b32.xlu1 %v35_v4, %s356_s10  ;;  %v59_v7 = vld [vmem:[#allocation0] sm:$0x3]   ;;  %s382_s10 = smov 68  }
  0x10   :  { %v67_v8 = vld [vmem:[#allocation0] sm:$0x3]  }
  0x11   :  { %v75_v9 = vld [vmem:[#allocation0] sm:$0x3]  }
  0x12   :  { %44 = vrot.lane.b32.xlu0 %v43_v5, %s357_s11  ;;  %v83_v10 = vld [vmem:[#allocation0] sm:$0x3]   ;;  %s383_s11 = smov 66  }
  0x13   :  { %52 = vrot.lane.b32.xlu1 %v51_v6, %s358_s12  ;;  %v91_v11 = vld [vmem:[#allocation0] sm:$0x3]  }
  0x14   :  { %v99_v12 = vld [vmem:[#allocation0] sm:$0x3]  }
  0x15   :  { %v107_v13 = vld [vmem:[#allocation0] sm:$0x3]  }
  0x16   :  { %60 = vrot.lane.b32.xlu0 %v59_v7, %s359_s13  ;;  %v115_v14 = vld [vmem:[#allocation0] sm:$0x3]  }
  0x17   :  { %68 = vrot.lane.b32.xlu1 %v67_v8, %s360_s14  ;;  %v123_v15 = vld [vmem:[#allocation0] sm:$0x3]  }
  0x18   :  { %v131_v16 = vld [vmem:[#allocation0] sm:$0x3]  }
  0x19   :  { %v139_v17 = vld [vmem:[#allocation0] sm:$0x3]  }
  0x1a   :  { %76 = vrot.lane.b32.xlu0 %v75_v9, %s361_s15  ;;  %v147_v18 = vld [vmem:[#allocation0] sm:$0x3]  }
  0x1b   :  { %84 = vrot.lane.b32.xlu1 %v83_v10, %s362_s16  ;;  %v155_v19 = vld [vmem:[#allocation0] sm:$0x3]  }
  0x1c   :  { %v163_v20 = vld [vmem:[#allocation0] sm:$0x3]  }
  0x1d   :  { %v171_v21 = vld [vmem:[#allocation0] sm:$0x3]  }
  0x1e   :  { %92 = vrot.lane.b32.xlu0 %v91_v11, %s363_s17  ;;  %v179_v22 = vld [vmem:[#allocation0] sm:$0x3]  }
  0x1f   :  { %100 = vrot.lane.b32.xlu1 %v99_v12, %s364_s18  ;;  %v187_v23 = vld [vmem:[#allocation0] sm:$0x3]  }
  0x20   :  { %v195_v24 = vld [vmem:[#allocation0] sm:$0x3]  }
  0x21   :  { %v203_v25 = vld [vmem:[#allocation0] sm:$0x3]  }
  0x22   :  { %108 = vrot.lane.b32.xlu0 %v107_v13, %s365_s19  ;;  %v211_v26 = vld [vmem:[#allocation0] sm:$0x3]  }
  0x23   :  { %116 = vrot.lane.b32.xlu1 %v115_v14, %s366_s20  ;;  %v6_v27 = vld [vmem:[#allocation0] sm:$0x3]  }
  0x24   :  { %8 = vst.msk [vmem:[%s654_s1] sm:$0x1] %vm7_vm0, %v6_v27   ;;  %259 = vst.msk [vmem:[%s654_s1 + $0x1f] sm:$0x2] %vm7_vm0, %v6_v27   ;;  %v219_v28 = vld [vmem:[#allocation0] sm:$0x3]  }
  0x25   :  { %v227_v29 = vld [vmem:[#allocation0] sm:$0x3]  }
  0x26   :  { %124 = vrot.lane.b32.xlu0 %v123_v15, %s367_s21  ;;  %v235_v30 = vld [vmem:[#allocation0] sm:$0x3]  }
  0x27   :  { %132 = vrot.lane.b32.xlu1 %v131_v16, %s368_s22  ;;  %v243_v31 = vld [vmem:[#allocation0] sm:$0x3]  }
  0x28   :  { %v251_v32 = vld [vmem:[#allocation0] sm:$0x3]  }
  0x2a   :  { %140 = vrot.lane.b32.xlu0 %v139_v17, %s369_s23 }
  0x2b   :  { %148 = vrot.lane.b32.xlu1 %v147_v18, %s370_s24 }
  0x2e   :  { %156 = vrot.lane.b32.xlu0 %v155_v19, %s371_s25 }
  0x2f   :  { %164 = vrot.lane.b32.xlu1 %v163_v20, %s372_s26 }
  0x32   :  { %172 = vrot.lane.b32.xlu0 %v171_v21, %s373_s27 }
  0x33   :  { %180 = vrot.lane.b32.xlu1 %v179_v22, %s374_s28 }
  0x36   :  { %188 = vrot.lane.b32.xlu0 %v187_v23, %s375_s29 }
  0x37   :  { %196 = vrot.lane.b32.xlu1 %v195_v24, %s376_s30 }
  0x3a   :  { %204 = vrot.lane.b32.xlu0 %v203_v25, %s377_s6 }
  0x3b   :  { %212 = vrot.lane.b32.xlu1 %v211_v26, %s378_s7 }
  0x3e   :  { %220 = vrot.lane.b32.xlu0 %v219_v28, %s379_s0 }
  0x3f   :  { %228 = vrot.lane.b32.xlu1 %v227_v29, %s380_s8 }
  0x42   :  { %236 = vrot.lane.b32.xlu0 %v235_v30, %s381_s9 }
  0x43   :  { %244 = vrot.lane.b32.xlu1 %v243_v31, %s382_s10 }
  0x46   :  { %252 = vrot.lane.b32.xlu0 %v251_v32, %s383_s11 }
  0x7c   :  { %v13_v33 = vpop.permute.xlu0 %12  }
  0x7d   :  { %v29_v34 = vpop.permute.xlu1 %28   ;;  %260 = vst.msk [vmem:[%s654_s1 + $0x1] sm:$0x1] %vm7_vm0, %v13_v33   ;;  %261 = vst.msk [vmem:[%s654_s1 + $0x20] sm:$0x2] %vm7_vm0, %v13_v33  }
  0x7e   :  { %264 = vst.msk [vmem:[%s654_s1 + $0x3] sm:$0x1] %vm7_vm0, %v29_v34   ;;  %265 = vst.msk [vmem:[%s654_s1 + $0x22] sm:$0x2] %vm7_vm0, %v29_v34  }
  0x80   :  { %v21_v35 = vpop.permute.xlu0 %20  }
  0x81   :  { %v37_v36 = vpop.permute.xlu1 %36   ;;  %262 = vst.msk [vmem:[%s654_s1 + $0x2] sm:$0x1] %vm7_vm0, %v21_v35   ;;  %263 = vst.msk [vmem:[%s654_s1 + $0x21] sm:$0x2] %vm7_vm0, %v21_v35  }
  0x82   :  { %266 = vst.msk [vmem:[%s654_s1 + $0x4] sm:$0x1] %vm7_vm0, %v37_v36   ;;  %267 = vst.msk [vmem:[%s654_s1 + $0x23] sm:$0x2] %vm7_vm0, %v37_v36  }
  0x84   :  { %v45_v37 = vpop.permute.xlu0 %44  }
  0x85   :  { %v53_v38 = vpop.permute.xlu1 %52   ;;  %268 = vst.msk [vmem:[%s654_s1 + $0x5] sm:$0x1] %vm7_vm0, %v45_v37   ;;  %269 = vst.msk [vmem:[%s654_s1 + $0x24] sm:$0x2] %vm7_vm0, %v45_v37  }
  0x86   :  { %270 = vst.msk [vmem:[%s654_s1 + $0x6] sm:$0x1] %vm7_vm0, %v53_v38   ;;  %271 = vst.msk [vmem:[%s654_s1 + $0x25] sm:$0x2] %vm7_vm0, %v53_v38  }
  0x88   :  { %v61_v39 = vpop.permute.xlu0 %60  }
  0x89   :  { %v69_v40 = vpop.permute.xlu1 %68   ;;  %272 = vst.msk [vmem:[%s654_s1 + $0x7] sm:$0x1] %vm7_vm0, %v61_v39   ;;  %273 = vst.msk [vmem:[%s654_s1 + $0x26] sm:$0x2] %vm7_vm0, %v61_v39  }
  0x8a   :  { %274 = vst.msk [vmem:[%s654_s1 + $0x8] sm:$0x1] %vm7_vm0, %v69_v40   ;;  %275 = vst.msk [vmem:[%s654_s1 + $0x27] sm:$0x2] %vm7_vm0, %v69_v40  }
  0x8c   :  { %v77_v41 = vpop.permute.xlu0 %76  }
  0x8d   :  { %v85_v42 = vpop.permute.xlu1 %84   ;;  %276 = vst.msk [vmem:[%s654_s1 + $0x9] sm:$0x1] %vm7_vm0, %v77_v41   ;;  %277 = vst.msk [vmem:[%s654_s1 + $0x28] sm:$0x2] %vm7_vm0, %v77_v41  }
  0x8e   :  { %278 = vst.msk [vmem:[%s654_s1 + $0xa] sm:$0x1] %vm7_vm0, %v85_v42   ;;  %279 = vst.msk [vmem:[%s654_s1 + $0x29] sm:$0x2] %vm7_vm0, %v85_v42  }
  0x90   :  { %v93_v43 = vpop.permute.xlu0 %92  }
  0x91   :  { %v101_v44 = vpop.permute.xlu1 %100   ;;  %280 = vst.msk [vmem:[%s654_s1 + $0xb] sm:$0x1] %vm7_vm0, %v93_v43   ;;  %281 = vst.msk [vmem:[%s654_s1 + $0x2a] sm:$0x2] %vm7_vm0, %v93_v43  }
  0x92   :  { %282 = vst.msk [vmem:[%s654_s1 + $0xc] sm:$0x1] %vm7_vm0, %v101_v44   ;;  %283 = vst.msk [vmem:[%s654_s1 + $0x2b] sm:$0x2] %vm7_vm0, %v101_v44  }
  0x94   :  { %v109_v45 = vpop.permute.xlu0 %108  }
  0x95   :  { %v117_v46 = vpop.permute.xlu1 %116   ;;  %284 = vst.msk [vmem:[%s654_s1 + $0xd] sm:$0x1] %vm7_vm0, %v109_v45   ;;  %285 = vst.msk [vmem:[%s654_s1 + $0x2c] sm:$0x2] %vm7_vm0, %v109_v45  }
  0x96   :  { %286 = vst.msk [vmem:[%s654_s1 + $0xe] sm:$0x1] %vm7_vm0, %v117_v46   ;;  %287 = vst.msk [vmem:[%s654_s1 + $0x2d] sm:$0x2] %vm7_vm0, %v117_v46  }
  0x98   :  { %v125_v47 = vpop.permute.xlu0 %124  }
  0x99   :  { %v133_v48 = vpop.permute.xlu1 %132   ;;  %288 = vst.msk [vmem:[%s654_s1 + $0xf] sm:$0x1] %vm7_vm0, %v125_v47   ;;  %289 = vst.msk [vmem:[%s654_s1 + $0x2e] sm:$0x2] %vm7_vm0, %v125_v47  }
  0x9a   :  { %290 = vst.msk [vmem:[%s654_s1 + $0x10] sm:$0x1] %vm7_vm0, %v133_v48   ;;  %291 = vst.msk [vmem:[%s654_s1 + $0x2f] sm:$0x2] %vm7_vm0, %v133_v48  }
  0x9c   :  { %v141_v49 = vpop.permute.xlu0 %140  }
  0x9d   :  { %v149_v50 = vpop.permute.xlu1 %148   ;;  %292 = vst.msk [vmem:[%s654_s1 + $0x11] sm:$0x1] %vm7_vm0, %v141_v49   ;;  %293 = vst.msk [vmem:[%s654_s1 + $0x30] sm:$0x2] %vm7_vm0, %v141_v49  }
  0x9e   :  { %294 = vst.msk [vmem:[%s654_s1 + $0x12] sm:$0x1] %vm7_vm0, %v149_v50   ;;  %295 = vst.msk [vmem:[%s654_s1 + $0x31] sm:$0x2] %vm7_vm0, %v149_v50  }
  0xa0   :  { %v157_v51 = vpop.permute.xlu0 %156  }
  0xa1   :  { %v165_v52 = vpop.permute.xlu1 %164   ;;  %296 = vst.msk [vmem:[%s654_s1 + $0x13] sm:$0x1] %vm7_vm0, %v157_v51   ;;  %297 = vst.msk [vmem:[%s654_s1 + $0x32] sm:$0x2] %vm7_vm0, %v157_v51  }
  0xa2   :  { %298 = vst.msk [vmem:[%s654_s1 + $0x14] sm:$0x1] %vm7_vm0, %v165_v52   ;;  %299 = vst.msk [vmem:[%s654_s1 + $0x33] sm:$0x2] %vm7_vm0, %v165_v52  }
  0xa4   :  { %v173_v53 = vpop.permute.xlu0 %172  }
  0xa5   :  { %v181_v54 = vpop.permute.xlu1 %180   ;;  %300 = vst.msk [vmem:[%s654_s1 + $0x15] sm:$0x1] %vm7_vm0, %v173_v53   ;;  %301 = vst.msk [vmem:[%s654_s1 + $0x34] sm:$0x2] %vm7_vm0, %v173_v53  }
  0xa6   :  { %302 = vst.msk [vmem:[%s654_s1 + $0x16] sm:$0x1] %vm7_vm0, %v181_v54   ;;  %303 = vst.msk [vmem:[%s654_s1 + $0x35] sm:$0x2] %vm7_vm0, %v181_v54  }
  0xa8   :  { %v189_v55 = vpop.permute.xlu0 %188  }
  0xa9   :  { %v197_v56 = vpop.permute.xlu1 %196   ;;  %304 = vst.msk [vmem:[%s654_s1 + $0x17] sm:$0x1] %vm7_vm0, %v189_v55   ;;  %305 = vst.msk [vmem:[%s654_s1 + $0x36] sm:$0x2] %vm7_vm0, %v189_v55  }
  0xaa   :  { %306 = vst.msk [vmem:[%s654_s1 + $0x18] sm:$0x1] %vm7_vm0, %v197_v56   ;;  %307 = vst.msk [vmem:[%s654_s1 + $0x37] sm:$0x2] %vm7_vm0, %v197_v56  }
  0xac   :  { %v205_v57 = vpop.permute.xlu0 %204  }
  0xad   :  { %v213_v58 = vpop.permute.xlu1 %212   ;;  %308 = vst.msk [vmem:[%s654_s1 + $0x19] sm:$0x1] %vm7_vm0, %v205_v57   ;;  %309 = vst.msk [vmem:[%s654_s1 + $0x38] sm:$0x2] %vm7_vm0, %v205_v57  }
  0xae   :  { %310 = vst.msk [vmem:[%s654_s1 + $0x1a] sm:$0x1] %vm7_vm0, %v213_v58   ;;  %311 = vst.msk [vmem:[%s654_s1 + $0x39] sm:$0x2] %vm7_vm0, %v213_v58  }
  0xb0   :  { %v221_v59 = vpop.permute.xlu0 %220  }
  0xb1   :  { %v229_v60 = vpop.permute.xlu1 %228   ;;  %312 = vst.msk [vmem:[%s654_s1 + $0x1b] sm:$0x1] %vm7_vm0, %v221_v59   ;;  %313 = vst.msk [vmem:[%s654_s1 + $0x3a] sm:$0x2] %vm7_vm0, %v221_v59  }
  0xb2   :  { %314 = vst.msk [vmem:[%s654_s1 + $0x1c] sm:$0x1] %vm7_vm0, %v229_v60   ;;  %315 = vst.msk [vmem:[%s654_s1 + $0x3b] sm:$0x2] %vm7_vm0, %v229_v60  }
  0xb4   :  { %v237_v61 = vpop.permute.xlu0 %236  }
  0xb5   :  { %v245_v62 = vpop.permute.xlu1 %244   ;;  %316 = vst.msk [vmem:[%s654_s1 + $0x1d] sm:$0x1] %vm7_vm0, %v237_v61   ;;  %317 = vst.msk [vmem:[%s654_s1 + $0x3c] sm:$0x2] %vm7_vm0, %v237_v61  }
  0xb6   :  { %318 = vst.msk [vmem:[%s654_s1 + $0x1e] sm:$0x1] %vm7_vm0, %v245_v62   ;;  %319 = vst.msk [vmem:[%s654_s1 + $0x3d] sm:$0x2] %vm7_vm0, %v245_v62  }
  0xb8   :  { %v253_v63 = vpop.permute.xlu0 %252  }
  0xb9   :  { %320 = vst.msk [vmem:[%s654_s1 + $0x1f] sm:$0x1] %vm7_vm0, %v253_v63   ;;  %321 = vst.msk [vmem:[%s654_s1 + $0x3e] sm:$0x2] %vm7_vm0, %v253_v63  }

// kernel: resnet_block_pallas.4
= control target key start
LH: loop header
LB: loop body
LE: loop exit
PB: predicated region body
PF: predicated region fallthrough
CT: control target
= control target key end

     0   :  { %6 = vsyncpa [#allocation3], 0  ;;  %s757_s0 = inlined_call_operand.hbm [shape: f32[2,256,32], index: 0, kind: input, shape index: {}]   ;;  %s758_s1 = inlined_call_operand.vmem [shape: f32[2,2,32], index: 1, kind: output, shape index: {}]  }
   0x1   :  { %8 = vsyncpa [#allocation3 + $0x1], 0  ;;  %s550_s6 = smov 0   ;;  %s552_s7 = smov 0  }
   0x2   :  { %s554_s8 = smov 0   ;;  %s556_s9 = smov 0  }
   0x3   :  { %s558_s10 = smov 0   ;;  %s560_s11 = smov 0  }
   0x4   :  { %s562_s12 = smov 0   ;;  %s564_s13 = smov 0  }
   0x5 LB: > { %s350_s14 = sadd.s32 4294967295, %s534_s13   ;;  %s23_s15 = sadd.s32 1, %s526_s11  ;;  %s534_s13 = sphi %s564_s13, %s14_s13   ;;  %s530_s12 = sphi %s562_s12, %s769_s12   ;;  %s526_s11 = sphi %s560_s11, %s768_s11   ;;  %s522_s10 = sphi %s558_s10, %s767_s10   ;;  %s518_s9 = sphi %s556_s9, %s766_s9   ;;  %s514_s8 = sphi %s554_s8, %s765_s8   ;;  %s510_s7 = sphi %s552_s7, %s764_s7   ;;  %s506_s6 = sphi %s550_s6, %s763_s6  }
   0x6   : > { %p24_p0 = scmp.ge.s32.totalorder %s23_s15, 2  ;;  %s26_s16 = sadd.s32 1, %s530_s12 }
   0x7   : > { %s35_s17 = sadd.s32 1, %s514_s8  ;;  %p42_p1 = scmp.ne.s32.totalorder %s514_s8, %s510_s7 }
   0x8   : > { %s771_s15 = smov (%p24_p0, %s23_s15), 0  ;;  %s773_s16 = smov (!%p24_p0, %s26_s16), %s530_s12 }
   0x9   : > { %s31_s18 = ssub.s32 %s526_s11, %s771_s15  ;;  %p43_p2 = scmp.eq.s32.totalorder %s534_s13, 0 }
   0xa   : > { %p28_p3 = scmp.ge.s32.totalorder %s773_s16, 2  ;;  %p48_p4 = scmp.ne.s32.totalorder %s510_s7, %s506_s6 }
   0xb   : > { %p601_p5 = por %p43_p2, %p42_p1  ;;  %p49_p6 = scmp.eq.s32.totalorder %s350_s14, 0 }
   0xc   : > { %s775_s16 = smov (%p28_p3, %s773_s16), 0  ;;  %p370_p8 = scmp.lt.s32.totalorder %s534_s13, 4 }
   0xd   : > { %p607_p7 = por %p49_p6, %p48_p4  ;;  %s30_s21 = ssub.s32 %s530_s12, %s775_s16 }
   0xe   : > { %s32_s22 = sor.u32 %s31_s18, %s30_s21  ;;  %s98_s23 = sand.u32 1, %s514_s8  }
   0xf   : > { %p33_p9 = scmp.eq.s32.totalorder %s32_s22, 0  ;;  %s354_s24 = sshll.u32 %s98_s23, 7 }
  0x10   : > { %s355_s25 = sshll.u32 %s526_s11, 4  ;;  %s356_s27 = sshll.u32 %s530_s12, 5 }
  0x11   : > { %s617_s26 = scalar_select %p33_p9, %s514_s8, %s35_s17  }
  0x12   : > { %s108_s28 = sadd.s32 %s356_s27, %s355_s25  ;;  %s102_s29 = scalar_lea.vmem [#allocation2], %s354_s24 }
  0x13   : > { %s111_s30 = sshll.u32 %s102_s29, 4  ;;  %s357_s2 = sshll.u32 %s108_s28, 7  ;;  %s620_s30 = int_to_ptr.vmem [resolvable:$true] %s111_s30 }
  0x14   : > { %s625_s5 = scalar_lea.hbm %s757_s0, %s357_s2  ;;  %p631_p10 = pnand %p370_p8, %p601_p5 }
  0x15   : > { %s636_s14 = scalar_lea.sflag [#allocation3], %s98_s23  ;;  %s438_s17 = scalar_lea.hbm %s625_s5, 2048 }
  0x16   : > { %p439_p12 = scmp.ne.s32.totalorder %s625_s5, %s438_s17  ;;  %p440_p13 = pneg %p631_p10 }
  0x17   : > { %s443_s21 = scalar_lea.hbm %s757_s0, 8192  ;;  %p444_p2 = scmp.lt.u32.totalorder %s625_s5, %s757_s0 }
  0x18   : > { %p441_p0 = pnand %p440_p13, %p439_p12  ;;  %p445_p3 = scmp.lt.u32.totalorder %s443_s21, %s438_s17 }
  0x19   : > { %p447_p5 = scmp.lt.u32.totalorder %s438_s17, %s625_s5 }
  0x1a   : > { %p442_p1 = pneg %p441_p0  ;;  %p446_p4 = por %p445_p3, %p444_p2 }
  0x1c   : > { %p448_p6 = por %p447_p5, %p446_p4 }
  0x1e   : > { %p449_p8 = pnand %p448_p6, %p442_p1 }
  0x20   : > { %452 = shalt.err (!%p449_p8)
}
  0x21   : > { %s453_s23 = scalar_lea.vmem %s620_s30, 2048  ;;  %s536_s25 = smov [#allocation2]  }
  0x22   : > { %p454_p9 = scmp.ne.s32.totalorder %s620_s30, %s453_s23  ;;  %s458_s27 = sshll.u32 %s536_s25, 4  ;;  %s459_s27 = int_to_ptr.vmem [resolvable:$false] %s458_s27 }
  0x23   : > { %s460_s28 = scalar_lea.vmem %s459_s27, 4096  ;;  %p461_p11 = scmp.lt.s32.totalorder %s620_s30, %s459_s27 }
  0x24   : > { %p456_p12 = pnand %p454_p9, %p440_p13  ;;  %p462_p2 = scmp.lt.s32.totalorder %s460_s28, %s453_s23 }
  0x26   : > { %p457_p0 = pneg %p456_p12  ;;  %p463_p3 = por %p462_p2, %p461_p11 }
  0x28   : > { %p464_p4 = pnand %p463_p3, %p457_p0 }
  0x2a   : > { %467 = shalt.err (!%p464_p4)
}
  0x2b   : > { %s537_s29 = smov 128   ;;  %s538_s2 = smov 8  }
  0x2c   : > { %369 = dma.hbm_to_vmem [thread:$0]  (!%p631_p10), %s625_s5, 2048, %s620_s30, %s636_s14, %s537_s29, %s537_s29, %s538_s2  }
  0x2d   : > { %p119_p13 = scmp.lt.s32.totalorder %s534_s13, 5  ;;  %p762_p1 = scmp.ge.s32.totalorder %s534_s13, 1 }
  0x2f   : > { %p120_p5 = pnand %p762_p1, %p119_p13 }
  0x30   : > { %s125_s3 = sand.u32 (!%p120_p5), 1, %s510_s7  }
  0x31   : > { %123 = sbr.rel (%p120_p5) target bundleno = 117 (0x75), region = 24  ;;  %s359_s4 = sshll.u32 (!%p120_p5), %s125_s3, 7 }
  0x32   : > { %s126_s17 = scalar_lea.sflag (!%p120_p5), [#allocation3], %s125_s3  ;;  %s668_s18 = scalar_lea.vmem (!%p120_p5), [#allocation2], %s359_s4 }
  0x38   : > { %501 = dma.done.wait (%p607_p7), %s126_s17, 2048  }
  0x39   : > { %503 = vsyncadd (%p607_p7), %s126_s17, 4294965248  ;;  %p148_p11 = scmp.lt.s32.totalorder %s522_s10, 1  ;;  %p361_p10 = scmp.ne.s32.totalorder %s518_s9, 0 }
  0x3a   : > { %vm156_vm0 = vcmask (!%p361_p10), 254976   ;;  %v539_v0 = vmov (!%p361_p10), 0.0  }
  0x3b   : > { %s777_s10 = smov (!%p148_p11, %s522_s10), 1  ;;  %155 = sbr.rel (%p361_p10) target bundleno = 66 (0x42), region = 32 }
  0x3c   : > { %s360_s30 = sshll.u32 %s777_s10, 1 }
  0x3d   : > { %s679_s14 = scalar_lea.vmem %s758_s1, %s360_s30 }
  0x3e   : > { %157 = vst.msk [vmem:[%s679_s14] sm:$0x3] (!%p361_p10), %vm156_vm0, %v539_v0 }
  0x42 PF: > { %v158_v1 = vld [vmem:[%s668_s18] sm:$0xff]  ;;  %v159_v2 = vld [vmem:[%s668_s18 + $0x8] sm:$0xff]  ;;  %v160_v3 = vld [vmem:[%s668_s18 + $0x10] sm:$0xff]  ;;  %vm174_vm1 = vcmask 261120   ;;  %vm266_vm2 = vcmask 1040384   ;;  %vm269_vm3 = vcmask 254976  }
  0x43   : > { %v175_v4 = vsel %vm174_vm1, %v158_v1, 0.0  ;;  %v176_v5 = vsel %vm174_vm1, %v159_v2, 0.0  ;;  %v178_v6 = vsel %vm174_vm1, %v160_v3, 0.0  ;;  %v161_v7 = vld [vmem:[%s668_s18 + $0x18] sm:$0xff]  ;;  %v162_v10 = vld [vmem:[%s668_s18 + $0x20] sm:$0xff]  ;;  %v163_v13 = vld [vmem:[%s668_s18 + $0x28] sm:$0xff]  ;;  %v212_v15 = vmul.f32 %v158_v1, %v158_v1 }
  0x44   : > { %v177_v8 = vadd.f32 %v176_v5, %v175_v4  ;;  %v180_v9 = vsel %vm174_vm1, %v161_v7, 0.0  ;;  %v182_v12 = vsel %vm174_vm1, %v162_v10, 0.0  ;;  %v213_v16 = vmul.f32 %v159_v2, %v159_v2  ;;  %v164_v19 = vld [vmem:[%s668_s18 + $0x30] sm:$0xff]  ;;  %v165_v24 = vld [vmem:[%s668_s18 + $0x38] sm:$0xff]  ;;  %v166_v31 = vld [vmem:[%s668_s18 + $0x40] sm:$0xff] }
  0x45   : > { %v214_v17 = vmul.f32 %v160_v3, %v160_v3  ;;  %v184_v18 = vsel %vm174_vm1, %v163_v13, 0.0  ;;  %v215_v21 = vmul.f32 %v161_v7, %v161_v7  ;;  %v186_v22 = vsel %vm174_vm1, %v164_v19, 0.0  ;;  %v167_v37 = vld [vmem:[%s668_s18 + $0x48] sm:$0xff]  ;;  %v168_v43 = vld [vmem:[%s668_s18 + $0x50] sm:$0xff]  ;;  %v169_v49 = vld [vmem:[%s668_s18 + $0x58] sm:$0xff] }
  0x46   : > { %v179_v11 = vadd.f32 %v178_v6, %v177_v8  ;;  %v216_v23 = vmul.f32 %v162_v10, %v162_v10  ;;  %v228_v26 = vsel %vm174_vm1, %v212_v15, 0.0  ;;  %v229_v27 = vsel %vm174_vm1, %v213_v16, 0.0  ;;  %v170_v55 = vld [vmem:[%s668_s18 + $0x60] sm:$0xff]  ;;  %v171_v61 = vld [vmem:[%s668_s18 + $0x68] sm:$0xff]  ;;  %v172_v3 = vld [vmem:[%s668_s18 + $0x70] sm:$0xff] }
  0x47   : > { %v231_v28 = vsel %vm174_vm1, %v214_v17, 0.0  ;;  %v188_v29 = vsel %vm174_vm1, %v165_v24, 0.0  ;;  %v230_v30 = vadd.f32 %v229_v27, %v228_v26  ;;  %v217_v33 = vmul.f32 %v163_v13, %v163_v13 }
  0x48   : > { %v181_v14 = vadd.f32 %v180_v9, %v179_v11  ;;  %v233_v34 = vsel %vm174_vm1, %v215_v21, 0.0  ;;  %v190_v35 = vsel %vm174_vm1, %v166_v31, 0.0  ;;  %v218_v39 = vmul.f32 %v164_v19, %v164_v19  ;;  %v173_v9 = vld [vmem:[%s668_s18 + $0x78] sm:$0xff] }
  0x49   : > { %v232_v36 = vadd.f32 %v231_v28, %v230_v30  ;;  %v235_v40 = vsel %vm174_vm1, %v216_v23, 0.0  ;;  %v192_v41 = vsel %vm174_vm1, %v167_v37, 0.0  ;;  %v219_v45 = vmul.f32 %v165_v24, %v165_v24 }
  0x4a   : > { %v183_v20 = vadd.f32 %v182_v12, %v181_v14  ;;  %v237_v46 = vsel %vm174_vm1, %v217_v33, 0.0  ;;  %v194_v47 = vsel %vm174_vm1, %v168_v43, 0.0  ;;  %v220_v51 = vmul.f32 %v166_v31, %v166_v31 }
  0x4b   : > { %v234_v42 = vadd.f32 %v233_v34, %v232_v36  ;;  %v239_v52 = vsel %vm174_vm1, %v218_v39, 0.0  ;;  %v196_v53 = vsel %vm174_vm1, %v169_v49, 0.0  ;;  %v221_v57 = vmul.f32 %v167_v37, %v167_v37 }
  0x4c   : > { %v185_v25 = vadd.f32 %v184_v18, %v183_v20  ;;  %v241_v58 = vsel %vm174_vm1, %v219_v45, 0.0  ;;  %v198_v59 = vsel %vm174_vm1, %v170_v55, 0.0  ;;  %v222_v63 = vmul.f32 %v168_v43, %v168_v43  ;;  %v265_v43 = vld [vmem:[%s679_s14] sm:$0x3] }
  0x4d   : > { %v236_v48 = vadd.f32 %v235_v40, %v234_v42  ;;  %v243_v0 = vsel %vm174_vm1, %v220_v51, 0.0  ;;  %v200_v1 = vsel %vm174_vm1, %v171_v61, 0.0  ;;  %v223_v5 = vmul.f32 %v169_v49, %v169_v49 }
  0x4e   : > { %v187_v32 = vadd.f32 %v186_v22, %v185_v25  ;;  %v245_v6 = vsel %vm174_vm1, %v221_v57, 0.0  ;;  %v202_v7 = vsel %vm174_vm1, %v172_v3, 0.0  ;;  %v224_v11 = vmul.f32 %v170_v55, %v170_v55 }
  0x4f   : > { %v238_v54 = vadd.f32 %v237_v46, %v236_v48  ;;  %v247_v12 = vsel %vm174_vm1, %v222_v63, 0.0  ;;  %v204_v13 = vsel %vm174_vm1, %v173_v9, 0.0  ;;  %v225_v16 = vmul.f32 %v171_v61, %v171_v61 }
  0x50   : > { %v189_v38 = vadd.f32 %v188_v29, %v187_v32  ;;  %v249_v17 = vsel %vm174_vm1, %v223_v5, 0.0  ;;  %v226_v20 = vmul.f32 %v172_v3, %v172_v3  ;;  %v251_v21 = vsel %vm174_vm1, %v224_v11, 0.0 }
  0x51   : > { %v240_v60 = vadd.f32 %v239_v52, %v238_v54  ;;  %v227_v24 = vmul.f32 %v173_v9, %v173_v9  ;;  %v253_v25 = vsel %vm174_vm1, %v225_v16, 0.0 }
  0x52   : > { %v191_v44 = vadd.f32 %v190_v35, %v189_v38  ;;  %v255_v28 = vsel %vm174_vm1, %v226_v20, 0.0 }
  0x53   : > { %v242_v2 = vadd.f32 %v241_v58, %v240_v60  ;;  %v257_v30 = vsel %vm174_vm1, %v227_v24, 0.0 }
  0x54   : > { %v193_v50 = vadd.f32 %v192_v41, %v191_v44 }
  0x55   : > { %v244_v8 = vadd.f32 %v243_v0, %v242_v2 }
  0x56   : > { %v195_v56 = vadd.f32 %v194_v47, %v193_v50 }
  0x57   : > { %v246_v14 = vadd.f32 %v245_v6, %v244_v8 }
  0x58   : > { %v197_v62 = vadd.f32 %v196_v53, %v195_v56 }
  0x59   : > { %v248_v18 = vadd.f32 %v247_v12, %v246_v14 }
  0x5a   : > { %v199_v4 = vadd.f32 %v198_v59, %v197_v62 }
  0x5b   : > { %v250_v22 = vadd.f32 %v249_v17, %v248_v18 }
  0x5c   : > { %v201_v10 = vadd.f32 %v200_v1, %v199_v4 }
  0x5d   : > { %v252_v26 = vadd.f32 %v251_v21, %v250_v22 }
  0x5e   : > { %v203_v15 = vadd.f32 %v202_v7, %v201_v10 }
  0x5f   : > { %v254_v29 = vadd.f32 %v253_v25, %v252_v26 }
  0x60   : > { %v205_v19 = vadd.f32 %v204_v13, %v203_v15 }
  0x61   : > { %v256_v32 = vadd.f32 %v255_v28, %v254_v29 }
  0x62   : > { %v206_v23 = vrot.slane %v205_v19, 4 }
  0x63   : > { %v258_v33 = vadd.f32 %v257_v30, %v256_v32 }
  0x64   : > { %v207_v27 = vadd.f32 %v206_v23, %v205_v19 }
  0x65   : > { %v259_v35 = vrot.slane %v258_v33, 4 }
  0x66   : > { %v208_v31 = vrot.slane %v207_v27, 2 }
  0x67   : > { %v260_v36 = vadd.f32 %v259_v35, %v258_v33 }
  0x68   : > { %v209_v34 = vadd.f32 %v208_v31, %v207_v27 }
  0x69   : > { %v261_v38 = vrot.slane %v260_v36, 2 }
  0x6a   : > { %v210_v37 = vrot.slane %v209_v34, 1 }
  0x6b   : > { %v262_v39 = vadd.f32 %v261_v38, %v260_v36 }
  0x6c   : > { %v211_v40 = vadd.f32 %v210_v37, %v209_v34 }
  0x6d   : > { %v263_v41 = vrot.slane %v262_v39, 1 }
  0x6f   : > { %v264_v42 = vadd.f32 %v263_v41, %v262_v39 }
  0x71   : > { %v267_v44 = vsel %vm266_vm2, %v211_v40, %v264_v42 }
  0x72   : > { %v268_v45 = vadd.f32 %v267_v44, %v265_v43 }
  0x74   : > { %270 = vst.msk [vmem:[%s679_s14] sm:$0x3] %vm269_vm3, %v268_v45 }
  0x75 PF: > { %s14_s13 = sadd.s32 1, %s534_s13   ;;  %s763_s6 = smov %s510_s7 }
  0x76   : > { %p11_p7 = scmp.ge.s32.totalorder %s14_s13, 6   ;;  %s764_s7 = smov %s514_s8 }
  0x77   : > { %s765_s8 = smov %s617_s26  ;;  %s766_s9 = smov %s526_s11 }
  0x78   : > { %s767_s10 = smov %s530_s12  ;;  %s768_s11 = smov %s771_s15 }
  0x79   : > { %s769_s12 = smov %s775_s16  ;;  %13 = sbr.rel (!%p11_p7) target bundleno = 5 (0x5), region = 68 }
  0x80   :  { %290 = vsyncpa [#allocation3], 1 }
  0x81   :  { %292 = vsyncpa [#allocation3 + $0x1], 1 }

// kernel: resnet_block_pallas.6
= control target key start
LH: loop header
LB: loop body
LE: loop exit
PB: predicated region body
PF: predicated region fallthrough
CT: control target
= control target key end

     0   :  { %s436_s6 = smov 0   ;;  %s438_s7 = smov 0   ;;  %s542_s0 = inlined_call_operand.vmem [shape: f32[2,256,64], index: 0, kind: input, shape index: {}]   ;;  %s543_s1 = inlined_call_operand.vmem [shape: f32[2,2,64], index: 1, kind: output, shape index: {}]  }
   0x1   :  { %s440_s8 = smov 0   ;;  %s442_s9 = smov 0  }
   0x2   :  { %s444_s10 = smov 0  }
   0x3 LB: > { %s20_s11 = sadd.s32 1, %s415_s8  ;;  %s23_s12 = sadd.s32 1, %s419_s9  ;;  %s423_s10 = sphi %s444_s10, %s11_s10   ;;  %s419_s9 = sphi %s442_s9, %s547_s9   ;;  %s415_s8 = sphi %s440_s8, %s546_s8   ;;  %s411_s7 = sphi %s438_s7, %s545_s7   ;;  %s407_s6 = sphi %s436_s6, %s544_s6  }
   0x4   : > { %p21_p0 = scmp.ge.s32.totalorder %s20_s11, 2  ;;  %p336_p1 = scmp.ge.s32.totalorder %s423_s10, 1 }
   0x5   : > { %p106_p2 = scmp.lt.s32.totalorder %s423_s10, 5 }
   0x6   : > { %s549_s11 = smov (%p21_p0, %s20_s11), 0  ;;  %s551_s12 = smov (!%p21_p0, %s23_s12), %s419_s9 }
   0x7   : > { %p107_p3 = pnand %p336_p1, %p106_p2  ;;  %p25_p4 = scmp.ge.s32.totalorder %s551_s12, 2 }
   0x8   : > { %s337_s13 = sshll.u32 (!%p107_p3), %s407_s6, 4  ;;  %p130_p5 = scmp.lt.s32.totalorder (!%p107_p3), %s411_s7, 1 }
   0x9   : > { %s553_s12 = smov (%p25_p4, %s551_s12), 0  ;;  %110 = sbr.rel (%p107_p3) target bundleno = 77 (0x4d), region = 24 }
   0xa   : > { %p132_p6 = scmp.lt.s32.totalorder (!%p107_p3), %s337_s13, 31  ;;  %p341_p7 = scmp.ne.s32.totalorder (!%p107_p3), %s407_s6, 0 }
  0x10   : > { %s555_s7 = smov (!%p130_p5, %s411_s7), 1  ;;  %s557_s13 = smov (!%p132_p6, %s337_s13), 31 }
  0x11   : > { %s338_s14 = sshll.u32 %s555_s7, 5  ;;  %s340_s15 = sshll.u32 %s555_s7, 1  ;;  %vm147_vm0 = vcmask (!%p341_p7), 517120   ;;  %v425_v0 = vmov (!%p341_p7), 0.0  }
  0x12   : > { %s135_s16 = sadd.s32 %s338_s14, %s557_s13  ;;  %s469_s19 = scalar_lea.vmem %s543_s1, %s340_s15 }
  0x13   : > { %s339_s20 = sshll.u32 %s135_s16, 3  ;;  %146 = sbr.rel (%p341_p7) target bundleno = 26 (0x1a), region = 28  ;;  %148 = vst.msk [vmem:[%s469_s19] sm:$0x3] (!%p341_p7), %vm147_vm0, %v425_v0 }
  0x14   : > { %s474_s23 = scalar_lea.vmem %s542_s0, %s339_s20 }
  0x1a PF: > { %v149_v1 = vld [vmem:[%s474_s23] sm:$0xff]  ;;  %v150_v2 = vld [vmem:[%s474_s23 + $0x8] sm:$0xff]  ;;  %v151_v3 = vld [vmem:[%s474_s23 + $0x10] sm:$0xff]  ;;  %vm165_vm1 = vcmask 523264   ;;  %vm257_vm2 = vcmask 1040384   ;;  %vm260_vm3 = vcmask 517120  }
  0x1b   : > { %v166_v4 = vsel %vm165_vm1, %v149_v1, 0.0  ;;  %v167_v5 = vsel %vm165_vm1, %v150_v2, 0.0  ;;  %v169_v6 = vsel %vm165_vm1, %v151_v3, 0.0  ;;  %v152_v7 = vld [vmem:[%s474_s23 + $0x18] sm:$0xff]  ;;  %v153_v10 = vld [vmem:[%s474_s23 + $0x20] sm:$0xff]  ;;  %v154_v13 = vld [vmem:[%s474_s23 + $0x28] sm:$0xff]  ;;  %v203_v15 = vmul.f32 %v149_v1, %v149_v1 }
  0x1c   : > { %v168_v8 = vadd.f32 %v167_v5, %v166_v4  ;;  %v171_v9 = vsel %vm165_vm1, %v152_v7, 0.0  ;;  %v173_v12 = vsel %vm165_vm1, %v153_v10, 0.0  ;;  %v204_v16 = vmul.f32 %v150_v2, %v150_v2  ;;  %v155_v19 = vld [vmem:[%s474_s23 + $0x30] sm:$0xff]  ;;  %v156_v24 = vld [vmem:[%s474_s23 + $0x38] sm:$0xff]  ;;  %v157_v31 = vld [vmem:[%s474_s23 + $0x40] sm:$0xff] }
  0x1d   : > { %v205_v17 = vmul.f32 %v151_v3, %v151_v3  ;;  %v175_v18 = vsel %vm165_vm1, %v154_v13, 0.0  ;;  %v206_v21 = vmul.f32 %v152_v7, %v152_v7  ;;  %v177_v22 = vsel %vm165_vm1, %v155_v19, 0.0  ;;  %v158_v37 = vld [vmem:[%s474_s23 + $0x48] sm:$0xff]  ;;  %v159_v43 = vld [vmem:[%s474_s23 + $0x50] sm:$0xff]  ;;  %v160_v49 = vld [vmem:[%s474_s23 + $0x58] sm:$0xff] }
  0x1e   : > { %v170_v11 = vadd.f32 %v169_v6, %v168_v8  ;;  %v207_v23 = vmul.f32 %v153_v10, %v153_v10  ;;  %v219_v26 = vsel %vm165_vm1, %v203_v15, 0.0  ;;  %v220_v27 = vsel %vm165_vm1, %v204_v16, 0.0  ;;  %v161_v55 = vld [vmem:[%s474_s23 + $0x60] sm:$0xff]  ;;  %v162_v61 = vld [vmem:[%s474_s23 + $0x68] sm:$0xff]  ;;  %v163_v3 = vld [vmem:[%s474_s23 + $0x70] sm:$0xff] }
  0x1f   : > { %v222_v28 = vsel %vm165_vm1, %v205_v17, 0.0  ;;  %v179_v29 = vsel %vm165_vm1, %v156_v24, 0.0  ;;  %v221_v30 = vadd.f32 %v220_v27, %v219_v26  ;;  %v208_v33 = vmul.f32 %v154_v13, %v154_v13 }
  0x20   : > { %v172_v14 = vadd.f32 %v171_v9, %v170_v11  ;;  %v224_v34 = vsel %vm165_vm1, %v206_v21, 0.0  ;;  %v181_v35 = vsel %vm165_vm1, %v157_v31, 0.0  ;;  %v209_v39 = vmul.f32 %v155_v19, %v155_v19  ;;  %v164_v9 = vld [vmem:[%s474_s23 + $0x78] sm:$0xff] }
  0x21   : > { %v223_v36 = vadd.f32 %v222_v28, %v221_v30  ;;  %v226_v40 = vsel %vm165_vm1, %v207_v23, 0.0  ;;  %v183_v41 = vsel %vm165_vm1, %v158_v37, 0.0  ;;  %v210_v45 = vmul.f32 %v156_v24, %v156_v24 }
  0x22   : > { %v174_v20 = vadd.f32 %v173_v12, %v172_v14  ;;  %v228_v46 = vsel %vm165_vm1, %v208_v33, 0.0  ;;  %v185_v47 = vsel %vm165_vm1, %v159_v43, 0.0  ;;  %v211_v51 = vmul.f32 %v157_v31, %v157_v31 }
  0x23   : > { %v225_v42 = vadd.f32 %v224_v34, %v223_v36  ;;  %v230_v52 = vsel %vm165_vm1, %v209_v39, 0.0  ;;  %v187_v53 = vsel %vm165_vm1, %v160_v49, 0.0  ;;  %v212_v57 = vmul.f32 %v158_v37, %v158_v37 }
  0x24   : > { %v176_v25 = vadd.f32 %v175_v18, %v174_v20  ;;  %v232_v58 = vsel %vm165_vm1, %v210_v45, 0.0  ;;  %v189_v59 = vsel %vm165_vm1, %v161_v55, 0.0  ;;  %v213_v63 = vmul.f32 %v159_v43, %v159_v43  ;;  %v256_v43 = vld [vmem:[%s469_s19] sm:$0x3] }
  0x25   : > { %v227_v48 = vadd.f32 %v226_v40, %v225_v42  ;;  %v234_v0 = vsel %vm165_vm1, %v211_v51, 0.0  ;;  %v191_v1 = vsel %vm165_vm1, %v162_v61, 0.0  ;;  %v214_v5 = vmul.f32 %v160_v49, %v160_v49 }
  0x26   : > { %v178_v32 = vadd.f32 %v177_v22, %v176_v25  ;;  %v236_v6 = vsel %vm165_vm1, %v212_v57, 0.0  ;;  %v193_v7 = vsel %vm165_vm1, %v163_v3, 0.0  ;;  %v215_v11 = vmul.f32 %v161_v55, %v161_v55 }
  0x27   : > { %v229_v54 = vadd.f32 %v228_v46, %v227_v48  ;;  %v238_v12 = vsel %vm165_vm1, %v213_v63, 0.0  ;;  %v195_v13 = vsel %vm165_vm1, %v164_v9, 0.0  ;;  %v216_v16 = vmul.f32 %v162_v61, %v162_v61 }
  0x28   : > { %v180_v38 = vadd.f32 %v179_v29, %v178_v32  ;;  %v240_v17 = vsel %vm165_vm1, %v214_v5, 0.0  ;;  %v217_v20 = vmul.f32 %v163_v3, %v163_v3  ;;  %v242_v21 = vsel %vm165_vm1, %v215_v11, 0.0 }
  0x29   : > { %v231_v60 = vadd.f32 %v230_v52, %v229_v54  ;;  %v218_v24 = vmul.f32 %v164_v9, %v164_v9  ;;  %v244_v25 = vsel %vm165_vm1, %v216_v16, 0.0 }
  0x2a   : > { %v182_v44 = vadd.f32 %v181_v35, %v180_v38  ;;  %v246_v28 = vsel %vm165_vm1, %v217_v20, 0.0 }
  0x2b   : > { %v233_v2 = vadd.f32 %v232_v58, %v231_v60  ;;  %v248_v30 = vsel %vm165_vm1, %v218_v24, 0.0 }
  0x2c   : > { %v184_v50 = vadd.f32 %v183_v41, %v182_v44 }
  0x2d   : > { %v235_v8 = vadd.f32 %v234_v0, %v233_v2 }
  0x2e   : > { %v186_v56 = vadd.f32 %v185_v47, %v184_v50 }
  0x2f   : > { %v237_v14 = vadd.f32 %v236_v6, %v235_v8 }
  0x30   : > { %v188_v62 = vadd.f32 %v187_v53, %v186_v56 }
  0x31   : > { %v239_v18 = vadd.f32 %v238_v12, %v237_v14 }
  0x32   : > { %v190_v4 = vadd.f32 %v189_v59, %v188_v62 }
  0x33   : > { %v241_v22 = vadd.f32 %v240_v17, %v239_v18 }
  0x34   : > { %v192_v10 = vadd.f32 %v191_v1, %v190_v4 }
  0x35   : > { %v243_v26 = vadd.f32 %v242_v21, %v241_v22 }
  0x36   : > { %v194_v15 = vadd.f32 %v193_v7, %v192_v10 }
  0x37   : > { %v245_v29 = vadd.f32 %v244_v25, %v243_v26 }
  0x38   : > { %v196_v19 = vadd.f32 %v195_v13, %v194_v15 }
  0x39   : > { %v247_v32 = vadd.f32 %v246_v28, %v245_v29 }
  0x3a   : > { %v197_v23 = vrot.slane %v196_v19, 4 }
  0x3b   : > { %v249_v33 = vadd.f32 %v248_v30, %v247_v32 }
  0x3c   : > { %v198_v27 = vadd.f32 %v197_v23, %v196_v19 }
  0x3d   : > { %v250_v35 = vrot.slane %v249_v33, 4 }
  0x3e   : > { %v199_v31 = vrot.slane %v198_v27, 2 }
  0x3f   : > { %v251_v36 = vadd.f32 %v250_v35, %v249_v33 }
  0x40   : > { %v200_v34 = vadd.f32 %v199_v31, %v198_v27 }
  0x41   : > { %v252_v38 = vrot.slane %v251_v36, 2 }
  0x42   : > { %v201_v37 = vrot.slane %v200_v34, 1 }
  0x43   : > { %v253_v39 = vadd.f32 %v252_v38, %v251_v36 }
  0x44   : > { %v202_v40 = vadd.f32 %v201_v37, %v200_v34 }
  0x45   : > { %v254_v41 = vrot.slane %v253_v39, 1 }
  0x47   : > { %v255_v42 = vadd.f32 %v254_v41, %v253_v39 }
  0x49   : > { %v258_v44 = vsel %vm257_vm2, %v202_v40, %v255_v42 }
  0x4a   : > { %v259_v45 = vadd.f32 %v258_v44, %v256_v43 }
  0x4c   : > { %261 = vst.msk [vmem:[%s469_s19] sm:$0x3] %vm260_vm3, %v259_v45 }
  0x4d PF: > { %s11_s10 = sadd.s32 1, %s423_s10   ;;  %s544_s6 = smov %s415_s8 }
  0x4e   : > { %p8_p8 = scmp.ge.s32.totalorder %s11_s10, 6   ;;  %s545_s7 = smov %s419_s9 }
  0x4f   : > { %s546_s8 = smov %s549_s11  ;;  %s547_s9 = smov %s553_s12 }
  0x50   :  { %10 = sbr.rel (!%p8_p8) target bundleno = 3 (0x3), region = 58 }

// kernel: resnet_block_pallas.5
= control target key start
LH: loop header
LB: loop body
LE: loop exit
PB: predicated region body
PF: predicated region fallthrough
CT: control target
= control target key end

     0   :  { %s2248_s27 = smov 0   ;;  %s2250_s28 = smov 0   ;;  %s3175_s0 = inlined_call_operand.vmem [shape: f32[2,256,32], index: 0, kind: input, shape index: {}]   ;;  %s3176_s1 = inlined_call_operand.vmem [shape: f32[2,2,32,32], index: 1, kind: input, shape index: {}]   ;;  %s3177_s2 = inlined_call_operand.vmem [shape: f32[2,1,32], index: 2, kind: input, shape index: {}]   ;;  %s3178_s3 = inlined_call_operand.vmem [shape: f32[2,1,32], index: 3, kind: input, shape index: {}]   ;;  %s3179_s4 = inlined_call_operand.vmem [shape: f32[160,1], index: 4, kind: input, shape index: {}]   ;;  %s3180_s5 = inlined_call_operand.vmem [shape: f32[160,1], index: 5, kind: input, shape index: {}]   ;;  %s3181_s6 = inlined_call_operand.vmem [shape: bf16[3,96,64], index: 6, kind: input, shape index: {}]   ;;  %s3182_s7 = inlined_call_operand.vmem [shape: f32[1,64], index: 7, kind: input, shape index: {}]   ;;  %s3183_s8 = inlined_call_operand.vmem [shape: f32[2,256,64], index: 8, kind: output, shape index: {}]  }
   0x1   :  { %s2252_s29 = smov 0   ;;  %s2254_s30 = smov 0  }
   0x2   :  { %s2256_s9 = smov 0  }
   0x3 LB: > { %s27_s10 = sadd.s32 1, %s2190_s29  ;;  %s30_s11 = sadd.s32 1, %s2194_s30  ;;  %s2198_s9 = sphi %s2256_s9, %s18_s9   ;;  %s2194_s30 = sphi %s2254_s30, %s3205_s30   ;;  %s2190_s29 = sphi %s2252_s29, %s3204_s29   ;;  %s2186_s28 = sphi %s2250_s28, %s3203_s28   ;;  %s2182_s27 = sphi %s2248_s27, %s3202_s27  }
   0x4   : > { %p28_p0 = scmp.ge.s32.totalorder %s27_s10, 2  ;;  %p1766_p1 = scmp.ge.s32.totalorder %s2198_s9, 1 }
   0x5   : > { %p315_p2 = scmp.lt.s32.totalorder %s2198_s9, 5 }
   0x6   : > { %s3207_s10 = smov (%p28_p0, %s27_s10), 0  ;;  %s3209_s11 = smov (!%p28_p0, %s30_s11), %s2194_s30 }
   0x7   : > { %p316_p3 = pnand %p1766_p1, %p315_p2  ;;  %p32_p4 = scmp.ge.s32.totalorder %s3209_s11, 2 }
   0x8   : > { %v840_v0 = vld [vmem:[%s3180_s5 + $0x10] sm:$0xff] (!%p316_p3)  ;;  %v838_v1 = vld [vmem:[%s3180_s5] sm:$0xff] (!%p316_p3)  ;;  %p373_p5 = scmp.lt.s32.totalorder (!%p316_p3), %s2186_s28, 1  ;;  %p384_p6 = scmp.lt.s32.totalorder (!%p316_p3), %s2182_s27, 1  ;;  %v2200_v2 = vmov (!%p316_p3), 0   ;;  %v841_v3 = vld [vmem:[%s3180_s5 + $0x18] sm:$0xff] (!%p316_p3)  ;;  %v634_v14 = vlaneseq (!%p316_p3) }
   0x9   : > { %s3211_s11 = smov (%p32_p4, %s3209_s11), 0  ;;  %319 = sbr.rel (%p316_p3) target bundleno = 540 (0x21c), region = 52 }
   0xa   : > { %3188 = sst [smem:[#allocation2_spill]] %s3211_s11  ;;  %2061 = vset.pattern.permute.xlu1 (!%p316_p3), %v2200_v2  ;;  %2060 = vset.pattern.permute.xlu0 (!%p316_p3), %v2200_v2  ;;  %v839_v4 = vld [vmem:[%s3180_s5 + $0x8] sm:$0xff] (!%p316_p3)  ;;  %s1767_s15 = sshll.u32 (!%p316_p3), %s2182_s27, 4  ;;  %v842_v6 = vld [vmem:[%s3180_s5 + $0x20] sm:$0xff] (!%p316_p3)  ;;  %v845_v10 = vld [vmem:[%s3180_s5 + $0x38] sm:$0xff] (!%p316_p3)  ;;  %v2359_v27 = vshrl.u32 (!%p316_p3), %v634_v14, 7 }
   0xb   : > { %870 = vperm.xlu1 (!%p316_p3), %2061, %v840_v0   ;;  %860 = vperm.xlu0 (!%p316_p3), %2060, %v838_v1   ;;  %v843_v5 = vld [vmem:[%s3180_s5 + $0x28] sm:$0xff] (!%p316_p3)  ;;  %p375_p7 = scmp.lt.s32.totalorder (!%p316_p3), %s1767_s15, 31  ;;  %v844_v11 = vld [vmem:[%s3180_s5 + $0x30] sm:$0xff] (!%p316_p3)  ;;  %v846_v17 = vld [vmem:[%s3180_s5 + $0x40] sm:$0xff] (!%p316_p3)  ;;  %p602_p8 = scmp.gt.s32.totalorder (!%p316_p3), %s2182_s27, 0  ;;  %vm1068_vm4 = vcmask (!%p316_p3), 261120  }
   0xc   : > { %v847_v16 = vld [vmem:[%s3180_s5 + $0x48] sm:$0xff] (!%p316_p3)  ;;  %v849_v45 = vld [vmem:[%s3180_s5 + $0x58] sm:$0xff] (!%p316_p3)  ;;  %v848_v46 = vld [vmem:[%s3180_s5 + $0x50] sm:$0xff] (!%p316_p3)  ;;  %vm817_vm0 = vcmp.lt.s32.totalorder (!%p316_p3), %v2359_v27, 7  ;;  %vm636_vm2 = vcmp.lt.s32.totalorder (!%p316_p3), %v2359_v27, 1  ;;  %s2201_s16 = smov (!%p316_p3), 32  }
   0xd   : > { %v851_v57 = vld [vmem:[%s3180_s5 + $0x68] sm:$0xff] (!%p316_p3)  ;;  %v850_v58 = vld [vmem:[%s3180_s5 + $0x60] sm:$0xff] (!%p316_p3)  ;;  %vm1099_vm5 = vcmask (!%p316_p3), 523264   ;;  %vm1181_vm6 = vcmask (!%p316_p3), 785408  }
   0xf   : > { %875 = vperm.xlu1 (!%p316_p3), %2061, %v841_v3   ;;  %865 = vperm.xlu0 (!%p316_p3), %2060, %v839_v4  }
  0x10   : > { %s3213_s28 = smov (!%p373_p5, %s2186_s28), 1  ;;  %s3215_s15 = smov (!%p375_p7, %s1767_s15), 31 }
  0x11   : > { %s385_s20 = scalar_select %p384_p6, %s2182_s27, 1 }
  0x12   : > { %s1771_s21 = sshll.u32 %s3213_s28, 3  ;;  %s393_s24 = scalar_lea.vmem %s3177_s2, %s3213_s28 }
  0x13   : > { %s1770_s25 = sshll.u32 %s385_s20, 2  ;;  %s396_s13 = scalar_lea.vmem %s3178_s3, %s3213_s28  ;;  %885 = vperm.xlu1 %2061, %v843_v5   ;;  %880 = vperm.xlu0 %2060, %v842_v6   ;;  %v2318_v7 = vld [vmem:[%s393_s24] ss:$0 sm:$0xff] }
  0x14   : > { %s388_s14 = sadd.s32 %s1771_s21, %s1770_s25  ;;  %s1768_s26 = sshll.u32 %s3213_s28, 5  ;;  %v2320_v8 = vld [vmem:[%s396_s13] ss:$0 sm:$0xff] }
  0x15   : > { %s1772_s11 = sshll.u32 %s388_s14, 3  ;;  %s2330_s28 = sadd.s32 %s1768_s26, %s3215_s15 }
  0x16   : > { %s390_s23 = scalar_lea.vmem %s3176_s1, %s1772_s11  ;;  %s1769_s17 = sshll.u32 %s2330_s28, 3 }
  0x17   : > { %v566_v9 = vld [vmem:[%s390_s23] sm:$0xff]  ;;  %v567_v12 = vld [vmem:[%s390_s23 + $0x8] sm:$0xff]  ;;  %v568_v19 = vld [vmem:[%s390_s23 + $0x10] sm:$0xff]  ;;  %895 = vperm.xlu1 %2061, %v845_v10   ;;  %890 = vperm.xlu0 %2060, %v844_v11   ;;  %s2350_s19 = scalar_lea.vmem %s3175_s0, %s1769_s17  ;;  %s2202_s21 = smov 64  }
  0x18   : > { %v570_v13 = vmul.f32 %v2318_v7, %v566_v9  ;;  %v571_v15 = vmul.f32 %v2318_v7, %v567_v12  ;;  %v2353_v21 = vmul.f32 %v2318_v7, %v568_v19  ;;  %v569_v22 = vld [vmem:[%s390_s23 + $0x18] sm:$0xff]  ;;  %v410_v24 = vld [vmem:[%s2350_s19] sm:$0xff]  ;;  %v411_v25 = vld [vmem:[%s2350_s19 + $0x8] sm:$0xff]  ;;  %s2464_s22 = scalar_select %p602_p8, 1, 0 }
  0x19   : > { %v412_v26 = vld [vmem:[%s2350_s19 + $0x10] sm:$0xff]  ;;  %v2362_v28 = vmul.f32 %v2318_v7, %v569_v22  ;;  %v432_v30 = vmul.f32 %v2318_v7, %v410_v24  ;;  %v433_v31 = vmul.f32 %v2318_v7, %v411_v25  ;;  %v413_v32 = vld [vmem:[%s2350_s19 + $0x18] sm:$0xff]  ;;  %v414_v44 = vld [vmem:[%s2350_s19 + $0x20] sm:$0xff]  ;;  %s609_s26 = scalar_select %p384_p6, 1, 0 }
  0x1a   : > { %v2339_v18 = vadd.f32 %v2320_v8, %v570_v13  ;;  %v2343_v20 = vadd.f32 %v2320_v8, %v571_v15  ;;  %v434_v33 = vmul.f32 %v2318_v7, %v412_v26  ;;  %v416_v34 = vld [vmem:[%s2350_s19 + $0x30] sm:$0xff]  ;;  %v417_v35 = vld [vmem:[%s2350_s19 + $0x38] sm:$0xff]  ;;  %v435_v37 = vmul.f32 %v2318_v7, %v413_v32  ;;  %v415_v50 = vld [vmem:[%s2350_s19 + $0x28] sm:$0xff]  ;;  %s3124_s18 = scalar_lea.vmem %s3183_s8, %s1769_s17 }
  0x1b   : > { %v438_v38 = vmul.f32 %v2318_v7, %v416_v34  ;;  %v439_v39 = vmul.f32 %v2318_v7, %v417_v35  ;;  %905 = vperm.xlu1 %2061, %v847_v16   ;;  %900 = vperm.xlu0 %2060, %v846_v17   ;;  %v2375_v41 = vadd.f32 %v2320_v8, %v432_v30  ;;  %v418_v54 = vld [vmem:[%s2350_s19 + $0x40] sm:$0xff]  ;;  %v419_v55 = vld [vmem:[%s2350_s19 + $0x48] sm:$0xff]  ;;  %v420_v56 = vld [vmem:[%s2350_s19 + $0x50] sm:$0xff] }
  0x1c   : > { %v578_v23 = vsub.f32 0.0, %v2339_v18  ;;  %v579_v29 = vsub.f32 0.0, %v2343_v20  ;;  %v2378_v42 = vadd.f32 %v2320_v8, %v433_v31  ;;  %v2381_v43 = vadd.f32 %v2320_v8, %v434_v33  ;;  %v421_v63 = vld [vmem:[%s2350_s19 + $0x58] sm:$0xff]  ;;  %v422_v4 = vld [vmem:[%s2350_s19 + $0x60] sm:$0xff]  ;;  %v852_v19 = vld [vmem:[%s3180_s5 + $0x70] sm:$0xff] }
  0x1d   : > { %v2391_v47 = vadd.f32 %v2320_v8, %v435_v37  ;;  %v2394_v48 = vadd.f32 %v2320_v8, %v438_v38  ;;  %v2397_v49 = vadd.f32 %v2320_v8, %v439_v39  ;;  %v470_v51 = vsub.f32 0.0, %v2375_v41  ;;  %v853_v17 = vld [vmem:[%s3180_s5 + $0x78] sm:$0xff]  ;;  %v423_v30 = vld [vmem:[%s2350_s19 + $0x68] sm:$0xff]  ;;  %v424_v39 = vld [vmem:[%s2350_s19 + $0x70] sm:$0xff] }
  0x1e   : > { %v582_v36 = vmul.f32 1.442695, %v578_v23  ;;  %v584_v40 = vmul.f32 1.442695, %v579_v29  ;;  %v471_v52 = vsub.f32 0.0, %v2378_v42  ;;  %v472_v53 = vsub.f32 0.0, %v2381_v43 }
  0x1f   : > { %v473_v59 = vsub.f32 0.0, %v2391_v47  ;;  %v476_v60 = vsub.f32 0.0, %v2394_v48  ;;  %v477_v61 = vsub.f32 0.0, %v2397_v49  ;;  %v436_v62 = vmul.f32 %v2318_v7, %v414_v44  ;;  %915 = vperm.xlu1 %2061, %v849_v45   ;;  %910 = vperm.xlu0 %2060, %v848_v46   ;;  %v855_v35 = vld [vmem:[%s3180_s5 + $0x88] sm:$0xff]  ;;  %v425_v46 = vld [vmem:[%s2350_s19 + $0x78] sm:$0xff] }
  0x20   : > { %2080 = vpow2.f32 %v582_v36  ;;  %v486_v0 = vmul.f32 1.442695, %v470_v51  ;;  %v488_v1 = vmul.f32 1.442695, %v471_v52  ;;  %v490_v2 = vmul.f32 1.442695, %v472_v53 }
  0x21   : > { %2082 = vpow2.f32 %v584_v40  ;;  %v437_v3 = vmul.f32 %v2318_v7, %v415_v50  ;;  %v492_v5 = vmul.f32 1.442695, %v473_v59  ;;  %v498_v6 = vmul.f32 1.442695, %v476_v60  ;;  %v854_v50 = vld [vmem:[%s3180_s5 + $0x80] sm:$0xff]  ;;  %v857_v60 = vld [vmem:[%s3180_s5 + $0x98] sm:$0xff] }
  0x22   : > { %v500_v9 = vmul.f32 1.442695, %v477_v61  ;;  %v2420_v10 = vadd.f32 %v2320_v8, %v436_v62  ;;  %2084 = vpow2.f32 %v486_v0  ;;  %v440_v12 = vmul.f32 %v2318_v7, %v418_v54 }
  0x23   : > { %v2423_v11 = vadd.f32 %v2320_v8, %v437_v3  ;;  %v441_v13 = vmul.f32 %v2318_v7, %v419_v55  ;;  %2086 = vpow2.f32 %v488_v1  ;;  %v442_v15 = vmul.f32 %v2318_v7, %v420_v56  ;;  %925 = vperm.xlu1 %2061, %v851_v57   ;;  %920 = vperm.xlu0 %2060, %v850_v58  }
  0x24   : > { %v474_v14 = vsub.f32 0.0, %v2420_v10  ;;  %v443_v16 = vmul.f32 %v2318_v7, %v421_v63  ;;  %2088 = vpow2.f32 %v490_v2  ;;  %v2439_v23 = vadd.f32 %v2320_v8, %v440_v12 }
  0x25   : > { %v475_v22 = vsub.f32 0.0, %v2423_v11  ;;  %v2442_v24 = vadd.f32 %v2320_v8, %v441_v13  ;;  %2090 = vpow2.f32 %v492_v5  ;;  %v2445_v26 = vadd.f32 %v2320_v8, %v442_v15 }
  0x26   : > { %v494_v25 = vmul.f32 1.442695, %v474_v14  ;;  %v444_v29 = vmul.f32 %v2318_v7, %v422_v4  ;;  %2092 = vpow2.f32 %v498_v6  ;;  %v478_v32 = vsub.f32 0.0, %v2439_v23  ;;  %v658_v14 = vld [vmem:[%s3179_s4 + $0x8] sm:$0xff] }
  0x27   : > { %v496_v31 = vmul.f32 1.442695, %v475_v22  ;;  %v479_v33 = vsub.f32 0.0, %v2442_v24  ;;  %2094 = vpow2.f32 %v500_v9  ;;  %v480_v36 = vsub.f32 0.0, %v2445_v26  ;;  %935 = vperm.xlu1 %2061, %v853_v17   ;;  %930 = vperm.xlu0 %2060, %v852_v19   ;;  %v657_v22 = vld [vmem:[%s3179_s4] sm:$0xff] }
  0x28   : > { %v2456_v37 = vadd.f32 %v2320_v8, %v443_v16  ;;  %v2459_v38 = vadd.f32 %v2320_v8, %v444_v29  ;;  %2096 = vpow2.f32 %v494_v25  ;;  %v502_v45 = vmul.f32 1.442695, %v478_v32 }
  0x29   : > { %2098 = vpow2.f32 %v496_v31  ;;  %v504_v52 = vmul.f32 1.442695, %v479_v33  ;;  %v506_v53 = vmul.f32 1.442695, %v480_v36  ;;  %v445_v54 = vmul.f32 %v2318_v7, %v423_v30  ;;  %v659_v36 = vld [vmem:[%s3179_s4 + $0x10] sm:$0xff] }
  0x2a   : > { %v2081_v34 = vpop.eup %2080  ;;  %v446_v55 = vmul.f32 %v2318_v7, %v424_v39  ;;  %v481_v56 = vsub.f32 0.0, %v2456_v37  ;;  %v447_v57 = vmul.f32 %v2318_v7, %v425_v46  ;;  %v2476_v58 = vadd.f32 %v2320_v8, %v2353_v21  ;;  %v856_v21 = vld [vmem:[%s3180_s5 + $0x90] sm:$0xff] }
  0x2b   : > { %v2083_v40 = vpop.eup %2082  ;;  %v590_v44 = vadd.f32 1.0, %v2081_v34  ;;  %945 = vperm.xlu1 %2061, %v855_v35   ;;  %940 = vperm.xlu0 %2060, %v854_v50   ;;  %v482_v61 = vsub.f32 0.0, %v2459_v38  ;;  %v2483_v62 = vadd.f32 %v2320_v8, %v445_v54  ;;  %v604_v6 = vstv %s2464_s22  ;;  %v660_v35 = vld [vmem:[%s3179_s4 + $0x18] sm:$0xff] }
  0x2c   : > { %v591_v51 = vadd.f32 1.0, %v2083_v40  ;;  %v2085_v59 = vpop.eup %2084  ;;  %v2486_v7 = vadd.f32 %v2320_v8, %v446_v55  ;;  %v2492_v1 = vadd.f32 %v2320_v8, %v447_v57  ;;  %v508_v16 = vmul.f32 1.442695, %v481_v56 }
  0x2d   : > { %2100 = vrcp.f32 %v590_v44  ;;  %v2087_v63 = vpop.eup %2086  ;;  %v518_v0 = vadd.f32 1.0, %v2085_v59  ;;  %v483_v4 = vsub.f32 0.0, %v2483_v62  ;;  %v510_v17 = vmul.f32 1.442695, %v482_v61  ;;  %v662_v61 = vld [vmem:[%s3179_s4 + $0x28] sm:$0xff] }
  0x2e   : > { %2102 = vrcp.f32 %v591_v51  ;;  %v2089_v2 = vpop.eup %2088  ;;  %v519_v3 = vadd.f32 1.0, %v2087_v63  ;;  %v484_v12 = vsub.f32 0.0, %v2486_v7  ;;  %v485_v32 = vsub.f32 0.0, %v2492_v1  ;;  %v661_v63 = vld [vmem:[%s3179_s4 + $0x20] sm:$0xff] }
  0x2f   : > { %2104 = vpow2.f32 %v502_v45  ;;  %v2091_v5 = vpop.eup %2090  ;;  %v520_v9 = vadd.f32 1.0, %v2089_v2  ;;  %955 = vperm.xlu1 %2061, %v857_v60   ;;  %950 = vperm.xlu0 %2060, %v856_v21   ;;  %v512_v29 = vmul.f32 1.442695, %v483_v4  ;;  %v2507_v33 = vadd.f32 %v2320_v8, %v2362_v28 }
  0x30   : > { %2106 = vpow2.f32 %v504_v52  ;;  %v2093_v13 = vpop.eup %2092  ;;  %v521_v15 = vadd.f32 1.0, %v2091_v5  ;;  %vm2515_vm1 = vcmp.eq.s32.totalorder %v604_v6, 1  ;;  %v514_v44 = vmul.f32 1.442695, %v484_v12 }
  0x31   : > { %2108 = vpow2.f32 %v506_v53  ;;  %v2095_v19 = vpop.eup %2094  ;;  %v524_v25 = vadd.f32 1.0, %v2093_v13  ;;  %v580_v28 = vsub.f32 0.0, %v2476_v58  ;;  %v516_v53 = vmul.f32 1.442695, %v485_v32 }
  0x32   : > { %2110 = vrcp.f32 %v518_v0  ;;  %v2097_v30 = vpop.eup %2096  ;;  %v525_v31 = vadd.f32 1.0, %v2095_v19  ;;  %v581_v2 = vsub.f32 0.0, %v2507_v33  ;;  %v664_v19 = vld [vmem:[%s3179_s4 + $0x38] sm:$0xff] }
  0x33   : > { %2112 = vrcp.f32 %v519_v3  ;;  %v2099_v34 = vpop.eup %2098  ;;  %v522_v40 = vadd.f32 1.0, %v2097_v30  ;;  %684 = vperm.xlu1 %2061, %v658_v14   ;;  %679 = vperm.xlu0 %2060, %v657_v22   ;;  %v586_v14 = vmul.f32 1.442695, %v580_v28 }
  0x34   : > { %2114 = vrcp.f32 %v520_v9  ;;  %v523_v8 = vadd.f32 1.0, %v2099_v34  ;;  %v588_v32 = vmul.f32 1.442695, %v581_v2 }
  0x35   : > { %2116 = vrcp.f32 %v521_v15 }
  0x36   : > { %2118 = vrcp.f32 %v524_v25 }
  0x37   : > { %v2101_v45 = vpop.eup %2100  ;;  %2120 = vrcp.f32 %v525_v31  ;;  %694 = vperm.xlu1 %2061, %v660_v35   ;;  %689 = vperm.xlu0 %2060, %v659_v36  }
  0x38   : > { %v2103_v46 = vpop.eup %2102  ;;  %v598_v50 = vmul.f32 %v2101_v45, %v2339_v18  ;;  %2122 = vrcp.f32 %v522_v40 }
  0x39   : > { %v2105_v51 = vpop.eup %2104  ;;  %v599_v52 = vmul.f32 %v2103_v46, %v2343_v20  ;;  %2124 = vrcp.f32 %v523_v8 }
  0x3a   : > { %v2107_v54 = vpop.eup %2106  ;;  %v2524_v55 = vsel %vm2515_vm1, %v598_v50, 0.0  ;;  %v526_v56 = vadd.f32 1.0, %v2105_v51  ;;  %2126 = vpow2.f32 %v508_v16 }
  0x3b   : > { %v2109_v57 = vpop.eup %2108  ;;  %v2529_v18 = vsel %vm2515_vm1, %v599_v52, 0.0  ;;  %v797_v20 = vrot.slane %v2524_v55, 1  ;;  %v527_v59 = vadd.f32 1.0, %v2107_v54  ;;  %2128 = vpow2.f32 %v510_v17  ;;  %704 = vperm.xlu1 %2061, %v662_v61   ;;  %699 = vperm.xlu0 %2060, %v661_v63  }
  0x3c   : > { %v2111_v60 = vpop.eup %2110  ;;  %v798_v21 = vrot.slane %v2529_v18, 1  ;;  %2130 = vrcp.f32 %v526_v56  ;;  %v528_v0 = vadd.f32 1.0, %v2109_v57  ;;  %v614_v5 = vrot.slane %v2524_v55, 7 }
  0x3d   : > { %v2113_v3 = vpop.eup %2112  ;;  %v2541_v4 = vmul.f32 %v2111_v60, %v2375_v41  ;;  %2132 = vrcp.f32 %v527_v59  ;;  %v615_v6 = vrot.slane %v2529_v18, 7  ;;  %v988_v52 = vpack.c.bf16 %v2529_v18, %v2524_v55  ;;  %v2066_v55 = vld [vmem:[%s3181_s6 + $0x10] sm:$0xff]  }
  0x3e   : > { %v2115_v9 = vpop.eup %2114  ;;  %v2546_v12 = vmul.f32 %v2113_v3, %v2378_v42  ;;  %v2552_v13 = vsel %vm817_vm0, %v797_v20, %v798_v21  ;;  %2134 = vrcp.f32 %v528_v0 }
  0x3f   : > { %v2117_v15 = vpop.eup %2116  ;;  %v2555_v41 = vmul.f32 %v2115_v9, %v2381_v43  ;;  %v799_v16 = vrot.slane %v2541_v4, 1  ;;  %2136 = vpow2.f32 %v512_v29  ;;  %v2564_v42 = vsel %vm636_vm2, %v614_v5, %v615_v6  ;;  %v663_v43 = vld [vmem:[%s3179_s4 + $0x30] sm:$0xff]  ;;  %714 = vperm.xlu1 %2061, %v664_v19  }
  0x40   : > { %v2119_v17 = vpop.eup %2118  ;;  %v2573_v22 = vmul.f32 %v2117_v15, %v2391_v47  ;;  %v800_v25 = vrot.slane %v2546_v12, 1  ;;  %2138 = vpow2.f32 %v514_v44  ;;  %709 = vperm.xlu0 %2060, %v663_v43   ;;  %v616_v54 = vrot.slane %v2541_v4, 7 }
  0x41   : > { %v2121_v29 = vpop.eup %2120  ;;  %v801_v30 = vrot.slane %v2555_v41, 1  ;;  %v2579_v31 = vsel %vm817_vm0, %v798_v21, %v799_v16  ;;  %2140 = vpow2.f32 %v516_v53  ;;  %v2582_v35 = vmul.f32 %v2119_v17, %v2394_v48  ;;  %v666_v48 = vld [vmem:[%s3179_s4 + $0x48] sm:$0xff] }
  0x42   : > { %v2123_v34 = vpop.eup %2122  ;;  %v2585_v36 = vmul.f32 %v2121_v29, %v2397_v49  ;;  %v2589_v47 = vsel %vm817_vm0, %v799_v16, %v800_v25  ;;  %v802_v39 = vrot.slane %v2573_v22, 1  ;;  %2142 = vpow2.f32 %v586_v14  ;;  %v665_v49 = vld [vmem:[%s3179_s4 + $0x40] sm:$0xff] }
  0x43   : > { %v2125_v40 = vpop.eup %2124  ;;  %v2594_v44 = vsel %vm817_vm0, %v800_v25, %v801_v30  ;;  %v805_v46 = vrot.slane %v2582_v35, 1  ;;  %2144 = vpow2.f32 %v588_v32  ;;  %v989_v56 = vpack.c.bf16 %v2546_v12, %v2541_v4  ;;  %724 = vperm.xlu1 %2061, %v666_v48  }
  0x44   : > { %v2127_v45 = vpop.eup %2126  ;;  %v2603_v8 = vmul.f32 %v2125_v40, %v2423_v11  ;;  %v2609_v28 = vsel %vm817_vm0, %v801_v30, %v802_v39  ;;  %v806_v50 = vrot.slane %v2585_v36, 1  ;;  %719 = vperm.xlu0 %2060, %v665_v49   ;;  %v990_v63 = vpack.c.bf16 %v2573_v22, %v2555_v41  ;;  %v668_v30 = vld [vmem:[%s3179_s4 + $0x58] sm:$0xff] }
  0x45   : > { %v2129_v51 = vpop.eup %2128  ;;  %v529_v53 = vadd.f32 1.0, %v2127_v45  ;;  %v617_v0 = vrot.slane %v2546_v12, 7  ;;  %v2630_v3 = vmul.f32 %v2123_v34, %v2420_v10  ;;  %v2653_v12 = vsel %vm636_vm2, %v615_v6, %v616_v54 }
  0x46   : > { %v2131_v11 = vpop.eup %2130  ;;  %v3187_v57 = vrot.slane %v2603_v8, 1  ;;  %v2621_v59 = vsel %vm817_vm0, %v805_v46, %v806_v50  ;;  %v530_v60 = vadd.f32 1.0, %v2129_v51  ;;  %v619_v29 = vrot.slane %v2573_v22, 7 }
  0x47   : > { %v2133_v61 = vpop.eup %2132  ;;  %v2626_v21 = vmul.f32 %v2131_v11, %v2439_v23  ;;  %2146 = vrcp.f32 %v529_v53  ;;  %v2647_v10 = vsel %vm636_vm2, %v616_v54, %v617_v0  ;;  %1020 = vrot.lane.b32.xlu1 %v989_v56, %s2201_s16  ;;  %v620_v49 = vrot.slane %v2630_v3, 7  ;;  %v667_v56 = vld [vmem:[%s3179_s4 + $0x50] sm:$0xff] }
  0x48   : > { %v2135_v2 = vpop.eup %2134  ;;  %v2636_v4 = vsel %vm817_vm0, %v3187_v57, %v805_v46  ;;  %v2639_v9 = vmul.f32 %v2133_v61, %v2442_v24  ;;  %2148 = vrcp.f32 %v530_v60  ;;  %1018 = vrot.lane.b32.xlu0 %v988_v52, %s2201_s16  ;;  %v622_v51 = vrot.slane %v2582_v35, 7  ;;  %v670_v60 = vld [vmem:[%s3179_s4 + $0x68] sm:$0xff] }
  0x49   : > { %v2137_v14 = vpop.eup %2136  ;;  %v807_v23 = vrot.slane %v2626_v21, 1  ;;  %v2643_v15 = vmul.f32 %v2135_v2, %v2445_v26  ;;  %v618_v26 = vrot.slane %v2555_v41, 7  ;;  %v2692_v53 = vsel %vm636_vm2, %v619_v29, %v620_v49 }
  0x4a   : > { %v2139_v16 = vpop.eup %2138  ;;  %v808_v24 = vrot.slane %v2639_v9, 1  ;;  %v531_v19 = vadd.f32 1.0, %v2137_v14  ;;  %v623_v54 = vrot.slane %v2585_v36, 7  ;;  %v624_v11 = vrot.slane %v2626_v21, 7 }
  0x4b   : > { %v2141_v43 = vpop.eup %2140  ;;  %v2663_v18 = vsel %vm817_vm0, %v806_v50, %v807_v23  ;;  %v809_v6 = vrot.slane %v2643_v15, 1  ;;  %v532_v25 = vadd.f32 1.0, %v2139_v16  ;;  %v2676_v34 = vsel %vm636_vm2, %v617_v0, %v618_v26  ;;  %734 = vperm.xlu1 %2061, %v668_v30  }
  0x4c   : > { %v2672_v41 = vsel %vm817_vm0, %v807_v23, %v808_v24  ;;  %2150 = vrcp.f32 %v531_v19  ;;  %v533_v32 = vadd.f32 1.0, %v2141_v43  ;;  %v2143_v40 = vpop.eup %2142  ;;  %v2684_v48 = vsel %vm636_vm2, %v618_v26, %v619_v29  ;;  %1022 = vrot.lane.b32.xlu0 %v990_v63, %s2201_s16 }
  0x4d   : > { %v2680_v45 = vsel %vm817_vm0, %v808_v24, %v809_v6  ;;  %2152 = vrcp.f32 %v532_v25  ;;  %v592_v46 = vadd.f32 1.0, %v2143_v40  ;;  %v621_v50 = vrot.slane %v2603_v8, 7  ;;  %v2145_v52 = vpop.eup %2144 }
  0x4e   : > { %2154 = vrcp.f32 %v533_v32  ;;  %v593_v61 = vadd.f32 1.0, %v2145_v52  ;;  %v2712_v14 = vsel %vm636_vm2, %v622_v51, %v623_v54  ;;  %v625_v23 = vrot.slane %v2639_v9, 7 }
  0x4f   : > { %2156 = vrcp.f32 %v592_v46  ;;  %v2704_v63 = vsel %vm636_vm2, %v620_v49, %v621_v50  ;;  %v2708_v0 = vsel %vm636_vm2, %v621_v50, %v622_v51  ;;  %v2717_v16 = vsel %vm636_vm2, %v623_v54, %v624_v11  ;;  %744 = vperm.xlu1 %2061, %v670_v60  }
  0x50   : > { %2158 = vrcp.f32 %v593_v61  ;;  %v626_v26 = vrot.slane %v2643_v15, 7  ;;  %729 = vperm.xlu0 %2060, %v667_v56   ;;  %v992_v43 = vpack.c.bf16 %v2585_v36, %v2582_v35  ;;  %v2732_v29 = vsel %vm636_vm2, %v624_v11, %v625_v23  ;;  %v672_v56 = vld [vmem:[%s3179_s4 + $0x78] sm:$0xff] }
  0x51   : > { %v2147_v2 = vpop.eup %2146  ;;  %v991_v51 = vpack.c.bf16 %v2603_v8, %v2630_v3 }
  0x52   : > { %v2149_v24 = vpop.eup %2148  ;;  %v2720_v19 = vmul.f32 %v2147_v2, %v2456_v37  ;;  %v669_v37 = vld [vmem:[%s3179_s4 + $0x60] sm:$0xff]  ;;  %v2744_v36 = vsel %vm636_vm2, %v625_v23, %v626_v26 }
  0x53   : > { %v2726_v25 = vmul.f32 %v2149_v24, %v2459_v38  ;;  %1026 = vrot.lane.b32.xlu1 %v992_v43, %s2201_s16 }
  0x54   : > { %v810_v30 = vrot.slane %v2720_v19, 1  ;;  %v627_v35 = vrot.slane %v2720_v19, 7  ;;  %739 = vperm.xlu0 %2060, %v669_v37  }
  0x55   : > { %v811_v38 = vrot.slane %v2726_v25, 1  ;;  %v628_v61 = vrot.slane %v2726_v25, 7 }
  0x56   : > { %v2151_v40 = vpop.eup %2150  ;;  %v2748_v49 = vsel %vm817_vm0, %v809_v6, %v810_v30  ;;  %v2752_v46 = vsel %vm636_vm2, %v626_v26, %v627_v35  ;;  %v610_v6 = vstv %s609_s26 }
  0x57   : > { %v2153_v50 = vpop.eup %2152  ;;  %v2759_v52 = vsel %vm817_vm0, %v810_v30, %v811_v38  ;;  %v2762_v54 = vmul.f32 %v2151_v40, %v2483_v62  ;;  %vm2779_vm3 = vcmp.eq.s32.totalorder %v610_v6, 1  ;;  %754 = vperm.xlu1 %2061, %v672_v56   ;;  %v671_v6 = vld [vmem:[%s3179_s4 + $0x70] sm:$0xff] }
  0x58   : > { %v2155_v11 = vpop.eup %2154  ;;  %v2768_v60 = vmul.f32 %v2153_v50, %v2486_v7  ;;  %1024 = vrot.lane.b32.xlu0 %v991_v51, %s2201_s16 }
  0x59   : > { %v812_v2 = vrot.slane %v2762_v54, 1  ;;  %v2775_v24 = vmul.f32 %v2155_v11, %v2492_v1  ;;  %v629_v62 = vrot.slane %v2762_v54, 7  ;;  %v2157_v26 = vpop.eup %2156 }
  0x5a   : > { %v813_v43 = vrot.slane %v2768_v60, 1  ;;  %v600_v30 = vmul.f32 %v2157_v26, %v2476_v58  ;;  %v2159_v50 = vpop.eup %2158  ;;  %v2807_v58 = vsel %vm636_vm2, %v627_v35, %v628_v61 }
  0x5b   : > { %v2786_v7 = vsel %vm817_vm0, %v811_v38, %v812_v2  ;;  %v3186_v1 = vrot.slane %v2775_v24, 1  ;;  %v2803_v38 = vsel %vm636_vm2, %v628_v61, %v629_v62 }
  0x5c   : > { %v2797_v51 = vsel %vm817_vm0, %v812_v2, %v813_v43  ;;  %v2811_v11 = vsel %vm2779_vm3, %v600_v30, 0.0  ;;  %v601_v2 = vmul.f32 %v2159_v50, %v2507_v33  ;;  %749 = vperm.xlu0 %2060, %v671_v6   ;;  %v2062_v30 = vld [vmem:[%s3181_s6] sm:$0xff]   ;;  %v2064_v33 = vld [vmem:[%s3181_s6 + $0x8] sm:$0xff]   ;;  %v2065_v6 = vld [vmem:[%s3181_s6 + $0x38] sm:$0xff]  }
  0x5d   : > { %v2817_v56 = vsel %vm817_vm0, %v813_v43, %v3186_v1  ;;  %v2063_v43 = vld [vmem:[%s3181_s6 + $0x30] sm:$0xff]   ;;  %1917 = vmatprep.subr.bf16.mxu0 %v2062_v30 }
  0x5e   : > { %v2822_v26 = vsel %vm2779_vm3, %v601_v2, 0.0  ;;  %1889 = vmatprep.subr.bf16.mxu1 %v2063_v43  ;;  %1918 = vmatpush3.bf16.msra.mxu0 %v2062_v30  ;;  %v2069_v2 = vld [vmem:[%s3181_s6 + $0x48] sm:$0xff]   ;;  %v2070_v30 = vld [vmem:[%s3181_s6 + $0x20] sm:$0xff]  }
  0x5f   : > { %v3185_v35 = vrot.slane %v2822_v26, 1  ;;  %v3184_v61 = vrot.slane %v2822_v26, 7  ;;  %1890 = vmatpush3.bf16.msra.mxu1 %v2063_v43  ;;  %1919 = vmatprep.subr.bf16.mxu0 %v2064_v33  ;;  %v2071_v43 = vld [vmem:[%s3181_s6 + $0x50] sm:$0xff]  }
  0x60   : > { %1891 = vmatprep.subr.bf16.mxu1 %v2065_v6 }
  0x61   : > { %v2841_v37 = vsel %vm817_vm0, %v3185_v35, %v797_v20  ;;  %v2849_v50 = vsel %vm636_vm2, %v3184_v61, %v614_v5  ;;  %v2067_v20 = vld [vmem:[%s3181_s6 + $0x40] sm:$0xff]   ;;  %v2068_v5 = vld [vmem:[%s3181_s6 + $0x18] sm:$0xff]  }
  0x62   : > { %1920 = vmatpush3.bf16.msra.mxu0 %v2064_v33  ;;  %v2072_v33 = vld [vmem:[%s3181_s6 + $0x28] sm:$0xff]  }
  0x63   : > { %1892 = vmatpush3.bf16.msra.mxu1 %v2065_v6  ;;  %1921 = vmatprep.subr.bf16.mxu0 %v2066_v55  ;;  %v2073_v6 = vld [vmem:[%s3181_s6 + $0x58] sm:$0xff]  }
  0x64   : > { %1893 = vmatprep.subr.bf16.mxu1 %v2067_v20 }
  0x66   : > { %1922 = vmatpush3.bf16.msra.mxu0 %v2066_v55 }
  0x67   : > { %1894 = vmatpush3.bf16.msra.mxu1 %v2067_v20  ;;  %1923 = vmatprep.subr.bf16.mxu0 %v2068_v5 }
  0x68   : > { %1895 = vmatprep.subr.bf16.mxu1 %v2069_v2 }
  0x6a   : > { %1924 = vmatpush3.bf16.msra.mxu0 %v2068_v5  ;;  %v630_v5 = vrot.slane %v2768_v60, 7 }
  0x6b   : > { %1896 = vmatpush3.bf16.msra.mxu1 %v2069_v2  ;;  %1925 = vmatprep.subr.bf16.mxu0 %v2070_v30  ;;  %v803_v2 = vrot.slane %v2630_v3, 1 }
  0x6c   : > { %1897 = vmatprep.subr.bf16.mxu1 %v2071_v43 }
  0x6d   : > { %v831_v3 = vsel %vm817_vm0, %v802_v39, %v803_v2 }
  0x6e   : > { %1926 = vmatpush3.bf16.msra.mxu0 %v2070_v30  ;;  %v2884_v30 = vsel %vm636_vm2, %v629_v62, %v630_v5 }
  0x6f   : > { %1898 = vmatpush3.bf16.msra.mxu1 %v2071_v43  ;;  %1927 = vmatprep.subr.bf16.mxu0 %v2072_v33 }
  0x70   : > { %1899 = vmatprep.subr.bf16.mxu1 %v2073_v6 }
  0x72   : > { %1928 = vmatpush3.bf16.msra.mxu0 %v2072_v33 }
  0x73   : > { %1900 = vmatpush3.bf16.msra.mxu1 %v2073_v6 }
  0x8a   : > { %v871_v55 = vpop.permute.xlu1 %870  ;;  %v861_v20 = vpop.permute.xlu0 %860 }
  0x8b   : > { %v960_v61 = vmul.f32 %v871_v55, %v2589_v47  ;;  %v958_v35 = vmul.f32 %v861_v20, %v2552_v13  ;;  %v3193_v13 = vrot.slane %v2603_v8, 1  ;;  %v2909_v8 = vld [vmem:[%s3181_s6 + $0x60] sm:$0xff]  }
  0x8c   : > { %1945 = vmatprep.subr.bf16.mxu0 %v2909_v8  ;;  %1973 = vmatprep.subr.bf16.mxu1 %v2909_v8 }
  0x8d   : > { %v830_v22 = vsel %vm817_vm0, %v803_v2, %v3193_v13 }
  0x8e   : > { %v876_v43 = vpop.permute.xlu1 %875  ;;  %v866_v33 = vpop.permute.xlu0 %865 }
  0x8f   : > { %v961_v6 = vmul.f32 %v876_v43, %v2594_v44  ;;  %v959_v40 = vmul.f32 %v866_v33, %v2579_v31  ;;  %v673_v31 = vld [vmem:[%s3179_s4 + $0x80] sm:$0xff] }
  0x91   : > { %v999_v1 = vpack.c.bf16 %v961_v6, %v960_v61  ;;  %v998_v23 = vpack.c.bf16 %v959_v40, %v958_v35 }
  0x92   : > { %v886_v32 = vpop.permute.xlu1 %885  ;;  %v881_v62 = vpop.permute.xlu0 %880 }
  0x93   : > { %v963_v17 = vmul.f32 %v886_v32, %v831_v3  ;;  %v962_v57 = vmul.f32 %v881_v62, %v2609_v28  ;;  %1048 = vrot.lane.b32.xlu1 %v998_v23, %s2202_s21  ;;  %1050 = vrot.lane.b32.xlu0 %v999_v1, %s2202_s21  ;;  %v631_v23 = vrot.slane %v2775_v24, 7  ;;  %v674_v1 = vld [vmem:[%s3179_s4 + $0x88] sm:$0xff] }
  0x95   : > { %v1000_v47 = vpack.c.bf16 %v963_v17, %v962_v57 }
  0x96   : > { %v896_v39 = vpop.permute.xlu1 %895  ;;  %v891_v44 = vpop.permute.xlu0 %890 }
  0x97   : > { %v965_v32 = vmul.f32 %v896_v39, %v2636_v4  ;;  %v964_v28 = vmul.f32 %v891_v44, %v830_v22  ;;  %1052 = vrot.lane.b32.xlu1 %v1000_v47, %s2202_s21  ;;  %759 = vperm.xlu0 %2060, %v673_v31   ;;  %v2919_v4 = vsel %vm636_vm2, %v630_v5, %v631_v23 }
  0x98   : > { %v3194_v5 = vpack.c.bf16 %v2639_v9, %v2626_v21 }
  0x99   : > { %v1001_v57 = vpack.c.bf16 %v965_v32, %v964_v28  ;;  %v675_v32 = vld [vmem:[%s3179_s4 + $0x90] sm:$0xff]  ;;  %v632_v28 = vrot.slane %v2811_v11, 7 }
  0x9a   : > { %v906_v17 = vpop.permute.xlu1 %905  ;;  %v901_v40 = vpop.permute.xlu0 %900 }
  0x9b   : > { %v967_v35 = vmul.f32 %v906_v17, %v2663_v18  ;;  %v966_v61 = vmul.f32 %v901_v40, %v2621_v59  ;;  %764 = vperm.xlu1 %2061, %v674_v1   ;;  %1054 = vrot.lane.b32.xlu0 %v1001_v57, %s2202_s21  ;;  %v997_v40 = vpack.c.bf16 %v2822_v26, %v2811_v11 }
  0x9d   : > { %v1002_v55 = vpack.c.bf16 %v967_v35, %v966_v61  ;;  %v676_v35 = vld [vmem:[%s3179_s4 + $0x98] sm:$0xff] }
  0x9e   : > { %v916_v20 = vpop.permute.xlu1 %915  ;;  %v911_v2 = vpop.permute.xlu0 %910 }
  0x9f   : > { %v969_v43 = vmul.f32 %v916_v20, %v2680_v45  ;;  %v968_v33 = vmul.f32 %v911_v2, %v2672_v41  ;;  %1056 = vrot.lane.b32.xlu1 %v1002_v55, %s2202_s21  ;;  %1028 = vrot.lane.b32.xlu0 %v3194_v5, %s2201_s16  ;;  %v3195_v45 = vpack.c.bf16 %v2720_v19, %v2643_v15  ;;  %v815_v41 = vrot.slane %v2811_v11, 1 }
  0xa0   : > { %v3197_v15 = vrot.slane %v2775_v24, 1  ;;  %v3200_v55 = vrot.slane %v2822_v26, 7 }
  0xa1   : > { %v1003_v18 = vpack.c.bf16 %v969_v43, %v968_v33 }
  0xa2   : > { %v926_v6 = vpop.permute.xlu1 %925  ;;  %v921_v59 = vpop.permute.xlu0 %920  ;;  %v819_v19 = vsel %vm817_vm0, %v3197_v15, %v815_v41 }
  0xa3   : > { %v971_v3 = vmul.f32 %v926_v6, %v2759_v52  ;;  %v970_v62 = vmul.f32 %v921_v59, %v2748_v49  ;;  %1030 = vrot.lane.b32.xlu1 %v3195_v45, %s2201_s16  ;;  %1058 = vrot.lane.b32.xlu0 %v1003_v18, %s2202_s21  ;;  %v3196_v49 = vpack.c.bf16 %v2762_v54, %v2726_v25  ;;  %v3199_v25 = vrot.slane %v2822_v26, 1 }
  0xa5   : > { %v1004_v13 = vpack.c.bf16 %v971_v3, %v970_v62  ;;  %v818_v54 = vsel %vm817_vm0, %v815_v41, %v3199_v25 }
  0xa6   : > { %v936_v22 = vpop.permute.xlu1 %935  ;;  %v931_v21 = vpop.permute.xlu0 %930 }
  0xa7   : > { %v973_v9 = vmul.f32 %v936_v22, %v2797_v51  ;;  %v972_v31 = vmul.f32 %v931_v21, %v2786_v7  ;;  %1060 = vrot.lane.b32.xlu1 %v1004_v13, %s2202_s21  ;;  %1032 = vrot.lane.b32.xlu0 %v3196_v49, %s2201_s16  ;;  %v3198_v7 = vpack.c.bf16 %v2775_v24, %v2768_v60 }
  0xa8   : > { %v2966_v60 = vsel %vm636_vm2, %v631_v23, %v632_v28  ;;  %v2979_v23 = vsel %vm636_vm2, %v632_v28, %v3200_v55 }
  0xa9   : > { %v1005_v52 = vpack.c.bf16 %v973_v9, %v972_v31 }
  0xaa   : > { %v946_v47 = vpop.permute.xlu1 %945  ;;  %v941_v39 = vpop.permute.xlu0 %940 }
  0xab   : > { %v975_v44 = vmul.f32 %v946_v47, %v819_v19  ;;  %v974_v51 = vmul.f32 %v941_v39, %v2817_v56  ;;  %1034 = vrot.lane.b32.xlu1 %v3198_v7, %s2201_s16  ;;  %1062 = vrot.lane.b32.xlu0 %v1005_v52, %s2202_s21 }
  0xad   : > { %v1006_v1 = vpack.c.bf16 %v975_v44, %v974_v51 }
  0xae   : > { %v956_v56 = vpop.permute.xlu1 %955  ;;  %v951_v57 = vpop.permute.xlu0 %950 }
  0xaf   : > { %v977_v24 = vmul.f32 %v956_v56, %v2841_v37  ;;  %v976_v17 = vmul.f32 %v951_v57, %v818_v54  ;;  %1064 = vrot.lane.b32.xlu1 %v1006_v1, %s2202_s21  ;;  %769 = vperm.xlu0 %2060, %v675_v32  }
  0xb1   : > { %v1007_v61 = vpack.c.bf16 %v977_v24, %v976_v17 }
  0xb2   : > { %v685_v20 = vpop.permute.xlu1 %684  ;;  %v680_v37 = vpop.permute.xlu0 %679 }
  0xb3   : > { %v778_v2 = vmul.f32 %v685_v20, %v2564_v42  ;;  %v777_v43 = vmul.f32 %v680_v37, %v2849_v50  ;;  %774 = vperm.xlu1 %2061, %v676_v35   ;;  %1036 = vrot.lane.b32.xlu0 %v997_v40, %s2201_s16  ;;  %v2076_v40 = vld [vmem:[%s3181_s6 + $0x70] sm:$0xff]   ;;  %v2077_v35 = vld [vmem:[%s3181_s6 + $0x78] sm:$0xff]  }
  0xb5   : > { %v978_v11 = vpack.c.bf16 %v778_v2, %v777_v43 }
  0xb6   : > { %v695_v33 = vpop.permute.xlu1 %694  ;;  %v690_v5 = vpop.permute.xlu0 %689 }
  0xb7   : > { %v780_v18 = vmul.f32 %v695_v33, %v2647_v10  ;;  %v779_v26 = vmul.f32 %v690_v5, %v2653_v12  ;;  %1066 = vrot.lane.b32.xlu1 %v1007_v61, %s2202_s21  ;;  %v2078_v61 = vld [vmem:[%s3181_s6 + $0x80] sm:$0xff]  }
  0xb9   : > { %v979_v27 = vpack.c.bf16 %v780_v18, %v779_v26 }
  0xba   : > { %v705_v6 = vpop.permute.xlu1 %704  ;;  %v700_v59 = vpop.permute.xlu0 %699 }
  0xbb   : > { %v782_v3 = vmul.f32 %v705_v6, %v2684_v48  ;;  %v781_v42 = vmul.f32 %v700_v59, %v2676_v34 }
  0xbd   : > { %v980_v50 = vpack.c.bf16 %v782_v3, %v781_v42 }
  0xbe   : > { %v715_v62 = vpop.permute.xlu1 %714 }
  0xbf   : > { %v710_v45 = vpop.permute.xlu0 %709  ;;  %v2990_v41 = vmul.f32 %v715_v62, %v2704_v63 }
  0xc0   : > { %v2993_v13 = vmul.f32 %v710_v45, %v2692_v53 }
  0xc2   : > { %v981_v10 = vpack.c.bf16 %v2990_v41, %v2993_v13  ;;  %v725_v12 = vpop.permute.xlu1 %724 }
  0xc3   : > { %v720_v22 = vpop.permute.xlu0 %719  ;;  %v2998_v21 = vmul.f32 %v725_v12, %v2712_v14 }
  0xc4   : > { %v3001_v48 = vmul.f32 %v720_v22, %v2708_v0 }
  0xc6   : > { %v982_v34 = vpack.c.bf16 %v2998_v21, %v3001_v48  ;;  %v1021_v63 = vpop.permute.xlu1 %1020 }
  0xc7   : > { %v1019_v9 = vpop.permute.xlu0 %1018 }
  0xca   : > { %v735_v49 = vpop.permute.xlu1 %734 }
  0xcb   : > { %v1023_v31 = vpop.permute.xlu0 %1022  ;;  %v3006_v19 = vmul.f32 %v735_v49, %v2732_v29 }
  0xcc   : > { %v1077_v57 = vsel %vm1068_vm4, %v980_v50, %v1023_v31 }
  0xce   : > { %v745_v15 = vpop.permute.xlu1 %744 }
  0xcf   : > { %v730_v53 = vpop.permute.xlu0 %729  ;;  %v3016_v39 = vmul.f32 %v745_v15, %v2752_v46  ;;  %v1074_v46 = vsel %vm1068_vm4, %v979_v27, %v1021_v63 }
  0xd0   : > { %v3009_v52 = vmul.f32 %v730_v53, %v2717_v16 }
  0xd2   : > { %v983_v14 = vpack.c.bf16 %v3006_v19, %v3009_v52  ;;  %v3013_v47 = vpop.permute.xlu1 %1026 }
  0xd3   : > { %v740_v0 = vpop.permute.xlu0 %739  ;;  %v1083_v18 = vsel %vm1068_vm4, %v982_v34, %v3013_v47 }
  0xd4   : > { %v3019_v44 = vmul.f32 %v740_v0, %v2744_v36  ;;  %v1071_v36 = vsel %vm1068_vm4, %v978_v11, %v1019_v9 }
  0xd6   : > { %v984_v51 = vpack.c.bf16 %v3016_v39, %v3019_v44  ;;  %v755_v7 = vpop.permute.xlu1 %754 }
  0xd7   : > { %v1025_v29 = vpop.permute.xlu0 %1024  ;;  %v3024_v16 = vmul.f32 %v755_v7, %v2803_v38 }
  0xd8   : > { %v1080_v20 = vsel %vm1068_vm4, %v981_v10, %v1025_v29 }
  0xdb   : > { %v750_v25 = vpop.permute.xlu0 %749 }
  0xdc   : > { %v3027_v54 = vmul.f32 %v750_v25, %v2807_v58  ;;  %v2075_v58 = vld [vmem:[%s3181_s6 + $0x68] sm:$0xff]  }
  0xde   : > { %v985_v32 = vpack.c.bf16 %v3024_v16, %v3027_v54 }
 0x105   : > { %v1049_v28 = vpop.permute.xlu1 %1048  ;;  %v1051_v1 = vpop.permute.xlu0 %1050 }
 0x106   : > { %v1103_v56 = vsel %vm1099_vm5, %v1074_v46, %v1051_v1  ;;  %v1101_v38 = vsel %vm1099_vm5, %v1071_v36, %v1049_v28 }
 0x107   : > { %1901 = vmatprep.mubr.msk.bf16.mxu1 %vm1181_vm6, %v1103_v56  ;;  %1929 = vmatprep.mubr.msk.bf16.mxu0 %vm1181_vm6, %v1101_v38 }
 0x108   : > { %1930 = vmatmul.mubr.msk.bf16.vlgmr.msra.gmra.mrb[0].mxu0 %vm1181_vm6, %v1103_v56 }
 0x109   : > { %v1053_v24 = vpop.permute.xlu1 %1052  ;;  %1946 = vmatpush3.bf16.msra.mxu0 %v2909_v8 }
 0x10a   : > { %v1105_v17 = vsel %vm1099_vm5, %v1077_v57, %v1053_v24  ;;  %1947 = vmatprep.subr.bf16.mxu0 %v2075_v58 }
 0x10b   : > { %1902 = vmatmul.mubr.msk.bf16.vlgmr.msra.gmra.mrb[0].mxu1 %vm1181_vm6, %v1105_v17  ;;  %1933 = vmatprep.mubr.msk.bf16.mxu0 %vm1181_vm6, %v1105_v17 }
 0x10c   : > { %1979 = vmatpush3.bf16.msra.mxu1 %v2909_v8  ;;  %v2079_v8 = vld [vmem:[%s3181_s6 + $0x88] sm:$0xff]  }
 0x10d   : > { %1974 = vmatprep.subr.bf16.mxu1 %v2075_v58  ;;  %1948 = vmatpush3.bf16.msra.mxu0 %v2075_v58 }
 0x10e   : > { %1949 = vmatprep.subr.bf16.mxu0 %v2076_v40 }
 0x110   : > { %1980 = vmatpush3.bf16.msra.mxu1 %v2075_v58 }
 0x111   : > { %1975 = vmatprep.subr.bf16.mxu1 %v2076_v40  ;;  %1950 = vmatpush3.bf16.msra.mxu0 %v2076_v40 }
 0x112   : > { %1951 = vmatprep.subr.bf16.mxu0 %v2077_v35 }
 0x114   : > { %1981 = vmatpush3.bf16.msra.mxu1 %v2076_v40 }
 0x115   : > { %1976 = vmatprep.subr.bf16.mxu1 %v2077_v35  ;;  %1952 = vmatpush3.bf16.msra.mxu0 %v2077_v35 }
 0x116   : > { %v760_v55 = vpop.permute.xlu0 %759  ;;  %1953 = vmatprep.subr.bf16.mxu0 %v2078_v61 }
 0x117   : > { %v793_v43 = vmul.f32 %v760_v55, %v2884_v30 }
 0x118   : > { %1982 = vmatpush3.bf16.msra.mxu1 %v2077_v35 }
 0x119   : > { %1977 = vmatprep.subr.bf16.mxu1 %v2078_v61  ;;  %1954 = vmatpush3.bf16.msra.mxu0 %v2078_v61 }
 0x11a   : > { %v765_v37 = vpop.permute.xlu1 %764  ;;  %v1055_v2 = vpop.permute.xlu0 %1054  ;;  %1955 = vmatprep.subr.bf16.mxu0 %v2079_v8 }
 0x11b   : > { %v794_v11 = vmul.f32 %v765_v37, %v2919_v4  ;;  %v1107_v33 = vsel %vm1099_vm5, %v1080_v20, %v1055_v2 }
 0x11c   : > { %1905 = vmatprep.mubr.msk.bf16.mxu1 %vm1181_vm6, %v1107_v33  ;;  %1934 = vmatmul.mubr.msk.bf16.gmra.mrb[4].mxu0 %vm1181_vm6, %v1107_v33 }
 0x11d   : > { %v986_v5 = vpack.c.bf16 %v794_v11, %v793_v43  ;;  %1983 = vmatpush3.bf16.msra.mxu1 %v2078_v61  ;;  %1956 = vmatpush3.bf16.msra.mxu0 %v2079_v8  ;;  %v1844_v11 = vld [vmem:[%s3182_s7] ss:$0 sm:$0xff] }
 0x11e   : > { %v1057_v26 = vpop.permute.xlu1 %1056  ;;  %v1029_v27 = vpop.permute.xlu0 %1028  ;;  %1978 = vmatprep.subr.bf16.mxu1 %v2079_v8 }
 0x11f   : > { %v1109_v30 = vsel %vm1099_vm5, %v1083_v18, %v1057_v26  ;;  %v1086_v4 = vsel %vm1068_vm4, %v983_v14, %v1029_v27 }
 0x120   : > { %1906 = vmatmul.mubr.msk.bf16.gmra.mrb[4].mxu1 %vm1181_vm6, %v1109_v30  ;;  %1937 = vmatprep.mubr.msk.bf16.mxu0 %vm1181_vm6, %v1109_v30 }
 0x121   : > { %1984 = vmatpush3.bf16.msra.mxu1 %v2079_v8 }
 0x122   : > { %v1031_v6 = vpop.permute.xlu1 %1030  ;;  %v1059_v59 = vpop.permute.xlu0 %1058 }
 0x123   : > { %v1111_v3 = vsel %vm1099_vm5, %v1086_v4, %v1059_v59  ;;  %v1089_v42 = vsel %vm1068_vm4, %v984_v51, %v1031_v6 }
 0x124   : > { %1909 = vmatprep.mubr.msk.bf16.mxu1 %vm1181_vm6, %v1111_v3  ;;  %1938 = vmatmul.mubr.msk.bf16.gmra.mrb[8].mxu0 %vm1181_vm6, %v1111_v3 }
 0x126   : > { %v1061_v50 = vpop.permute.xlu1 %1060  ;;  %v1033_v62 = vpop.permute.xlu0 %1032 }
 0x127   : > { %v1113_v45 = vsel %vm1099_vm5, %v1089_v42, %v1061_v50  ;;  %v1092_v41 = vsel %vm1068_vm4, %v985_v32, %v1033_v62 }
 0x128   : > { %1910 = vmatmul.mubr.msk.bf16.gmra.mrb[8].mxu1 %vm1181_vm6, %v1113_v45  ;;  %1941 = vmatprep.mubr.msk.bf16.mxu0 %vm1181_vm6, %v1113_v45 }
 0x12a   : > { %v1035_v13 = vpop.permute.xlu1 %1034  ;;  %v1063_v10 = vpop.permute.xlu0 %1062 }
 0x12b   : > { %v1115_v12 = vsel %vm1099_vm5, %v1092_v41, %v1063_v10  ;;  %v1095_v22 = vsel %vm1068_vm4, %v986_v5, %v1035_v13 }
 0x12c   : > { %1913 = vmatprep.mubr.msk.bf16.mxu1 %vm1181_vm6, %v1115_v12  ;;  %1942 = vmatmul.mubr.msk.bf16.gmra.mrb[12].mxu0 %vm1181_vm6, %v1115_v12 }
 0x12d   : > { %1957 = vmatprep.mubr.msk.bf16.mxu0 %vm1181_vm6, %v1105_v17 }
 0x12e   : > { %v1065_v21 = vpop.permute.xlu1 %1064  ;;  %v770_v34 = vpop.permute.xlu0 %769 }
 0x12f   : > { %v1117_v48 = vsel %vm1099_vm5, %v1095_v22, %v1065_v21  ;;  %v795_v63 = vmul.f32 %v770_v34, %v2966_v60 }
 0x130   : > { %1914 = vmatmul.mubr.msk.bf16.gmra.mrb[12].mxu1 %vm1181_vm6, %v1117_v48 }
 0x131   : > { %1965 = vmatprep.mubr.msk.bf16.mxu1 %vm1181_vm6, %v1113_v45 }
 0x132   : > { %v775_v9 = vpop.permute.xlu1 %774  ;;  %v1037_v53 = vpop.permute.xlu0 %1036 }
 0x133   : > { %v796_v31 = vmul.f32 %v775_v9, %v2979_v23 }
 0x134   : > { %1958 = vmatmul.mubr.msk.bf16.vlgmr.msra.gmra.mrb[0].mxu0 %vm1181_vm6, %v1107_v33 }
 0x135   : > { %v987_v49 = vpack.c.bf16 %v796_v31, %v795_v63  ;;  %1961 = vmatprep.mubr.msk.bf16.mxu0 %vm1181_vm6, %v1109_v30 }
 0x136   : > { %v1067_v15 = vpop.permute.xlu1 %1066 }
 0x137   : > { %v1098_v19 = vsel %vm1068_vm4, %v987_v49, %v1037_v53 }
 0x138   : > { %1966 = vmatmul.mubr.msk.bf16.vlgmr.msra.gmra.mrb[16].mxu1 %vm1181_vm6, %v1115_v12  ;;  %v1119_v52 = vsel %vm1099_vm5, %v1098_v19, %v1067_v15 }
 0x139   : > { %1969 = vmatprep.mubr.msk.bf16.mxu1 %vm1181_vm6, %v1117_v48 }
 0x13c   : > { %1962 = vmatmul.mubr.msk.bf16.gmra.mrb[4].mxu0 %vm1181_vm6, %v1111_v3 }
 0x140   : > { %1970 = vmatmul.mubr.msk.bf16.gmra.mrb[20].mxu1 %vm1181_vm6, %v1119_v52 }
 0x1de   : > { %v1903_v60 = vpop.f32.mrb[0].mxu1 }
 0x1df   : > { %v1232_v23 = vpop.f32.mrb[1].mxu1 }
 0x1e0   : > { %v1904_v14 = vpop.f32.mrb[2].mxu1 }
 0x1e1   : > { %v1235_v0 = vpop.f32.mrb[3].mxu1 }
 0x1f3   : > { %v1907_v47 = vpop.f32.mrb[4].mxu1 }
 0x1f4   : > { %v1248_v39 = vpop.f32.mrb[5].mxu1 }
 0x1f5   : > { %v3112_v44 = vpop.f32.mrb[6].mxu1 }
 0x1f6   : > { %v3114_v51 = vpop.f32.mrb[7].mxu1 }
 0x1f7   : > { %v1939_v29 = vpop.f32.mrb[8].mxu0 }
 0x1f8   : > { %v1399_v7 = vpop.f32.mrb[9].mxu0 }
 0x1f9   : > { %v1940_v25 = vpop.f32.mrb[10].mxu0 }
 0x1fa   : > { %v1402_v16 = vpop.f32.mrb[11].mxu0 }
 0x1fb   : > { %v1911_v54 = vpop.f32.mrb[8].mxu1 }
 0x1fc   : > { %v1408_v32 = vadd.f32 %v1939_v29, %v1911_v54  ;;  %v1264_v36 = vpop.f32.mrb[9].mxu1 }
 0x1fd   : > { %v1400_v46 = vadd.f32 %v1399_v7, %v1264_v36  ;;  %v1912_v28 = vpop.f32.mrb[10].mxu1 }
 0x1fe   : > { %v1411_v1 = vadd.f32 %v1940_v25, %v1912_v28  ;;  %v1267_v56 = vpop.f32.mrb[11].mxu1 }
 0x1ff   : > { %v1403_v38 = vadd.f32 %v1402_v16, %v1267_v56  ;;  %v1943_v58 = vpop.f32.mrb[12].mxu0 }
 0x200   : > { %v1415_v57 = vpop.f32.mrb[13].mxu0 }
 0x201   : > { %v1944_v24 = vpop.f32.mrb[14].mxu0 }
 0x202   : > { %v1418_v17 = vpop.f32.mrb[15].mxu0 }
 0x203   : > { %v1915_v40 = vpop.f32.mrb[12].mxu1 }
 0x204   : > { %v1424_v35 = vadd.f32 %v1943_v58, %v1915_v40  ;;  %v1280_v61 = vpop.f32.mrb[13].mxu1 }
 0x205   : > { %v1416_v55 = vadd.f32 %v1415_v57, %v1280_v61  ;;  %v1916_v8 = vpop.f32.mrb[14].mxu1 }
 0x206   : > { %v1427_v20 = vadd.f32 %v1944_v24, %v1916_v8  ;;  %v1283_v37 = vpop.f32.mrb[15].mxu1 }
 0x207   : > { %v1419_v2 = vadd.f32 %v1418_v17, %v1283_v37  ;;  %v1959_v43 = vpop.f32.mrb[0].mxu0 }
 0x208   : > { %v1985_v33 = vadd.f32 %v1959_v43, %v1903_v60  ;;  %v1515_v5 = vpop.f32.mrb[1].mxu0 }
 0x209   : > { %v1986_v18 = vadd.f32 %v1515_v5, %v1232_v23  ;;  %v1960_v26 = vpop.f32.mrb[2].mxu0 }
 0x20a   : > { %v1603_v27 = vadd.f32 %v1985_v33, %v1844_v11  ;;  %v1987_v30 = vadd.f32 %v1960_v26, %v1904_v14  ;;  %v1518_v4 = vpop.f32.mrb[3].mxu0 }
 0x20b   : > { %v1601_v6 = vadd.f32 %v1986_v18, %v1844_v11  ;;  %v1988_v59 = vadd.f32 %v1518_v4, %v1235_v0  ;;  %v1967_v3 = vpop.f32.mrb[16].mxu1 }
 0x20c   : > { %1619 = vst.msk [vmem:[%s3124_s18 + $0x10] sm:$0xff] %vm1099_vm5, %v1603_v27  ;;  %v1604_v42 = vadd.f32 %v1987_v30, %v1844_v11  ;;  %v1588_v50 = vadd.f32 %v1967_v3, %v1408_v32  ;;  %v1547_v62 = vpop.f32.mrb[17].mxu1 }
 0x20d   : > { %1617 = vst.msk [vmem:[%s3124_s18] sm:$0xff] %vm1099_vm5, %v1601_v6  ;;  %v1602_v45 = vadd.f32 %v1988_v59, %v1844_v11  ;;  %v1586_v41 = vadd.f32 %v1547_v62, %v1400_v46  ;;  %v1968_v13 = vpop.f32.mrb[18].mxu1 }
 0x20e   : > { %1620 = vst.msk [vmem:[%s3124_s18 + $0x18] sm:$0xff] %vm1099_vm5, %v1604_v42  ;;  %v1611_v10 = vadd.f32 %v1844_v11, %v1588_v50  ;;  %v1589_v12 = vadd.f32 %v1968_v13, %v1411_v1  ;;  %v1550_v22 = vpop.f32.mrb[19].mxu1 }
 0x20f   : > { %1618 = vst.msk [vmem:[%s3124_s18 + $0x8] sm:$0xff] %vm1099_vm5, %v1602_v45  ;;  %v1609_v21 = vadd.f32 %v1844_v11, %v1586_v41  ;;  %v1587_v48 = vadd.f32 %v1550_v22, %v1403_v38  ;;  %v1963_v34 = vpop.f32.mrb[4].mxu0 }
 0x210   : > { %1627 = vst.msk [vmem:[%s3124_s18 + $0x50] sm:$0xff] %vm1099_vm5, %v1611_v10  ;;  %v1612_v9 = vadd.f32 %v1844_v11, %v1589_v12  ;;  %v1989_v63 = vadd.f32 %v1963_v34, %v1907_v47  ;;  %v1531_v31 = vpop.f32.mrb[5].mxu0 }
 0x211   : > { %1625 = vst.msk [vmem:[%s3124_s18 + $0x40] sm:$0xff] %vm1099_vm5, %v1609_v21  ;;  %v1610_v49 = vadd.f32 %v1844_v11, %v1587_v48  ;;  %v1990_v53 = vadd.f32 %v1531_v31, %v1248_v39  ;;  %v1964_v15 = vpop.f32.mrb[6].mxu0 }
 0x212   : > { %1628 = vst.msk [vmem:[%s3124_s18 + $0x58] sm:$0xff] %vm1099_vm5, %v1612_v9  ;;  %v1607_v19 = vadd.f32 %v1989_v63, %v1844_v11  ;;  %v1991_v52 = vadd.f32 %v1964_v15, %v3112_v44  ;;  %v1534_v60 = vpop.f32.mrb[7].mxu0 }
 0x213   : > { %1626 = vst.msk [vmem:[%s3124_s18 + $0x48] sm:$0xff] %vm1099_vm5, %v1610_v49  ;;  %v1605_v23 = vadd.f32 %v1990_v53, %v1844_v11  ;;  %v1992_v14 = vadd.f32 %v1534_v60, %v3114_v51  ;;  %v1971_v0 = vpop.f32.mrb[20].mxu1 }
 0x214   : > { %1623 = vst.msk [vmem:[%s3124_s18 + $0x30] sm:$0xff] %vm1099_vm5, %v1607_v19  ;;  %v1608_v47 = vadd.f32 %v1991_v52, %v1844_v11  ;;  %v1592_v39 = vadd.f32 %v1971_v0, %v1424_v35  ;;  %v1563_v29 = vpop.f32.mrb[21].mxu1 }
 0x215   : > { %1621 = vst.msk [vmem:[%s3124_s18 + $0x20] sm:$0xff] %vm1099_vm5, %v1605_v23  ;;  %v1606_v44 = vadd.f32 %v1992_v14, %v1844_v11  ;;  %v1590_v7 = vadd.f32 %v1563_v29, %v1416_v55  ;;  %v1972_v25 = vpop.f32.mrb[22].mxu1 }
 0x216   : > { %1624 = vst.msk [vmem:[%s3124_s18 + $0x38] sm:$0xff] %vm1099_vm5, %v1608_v47  ;;  %v1615_v16 = vadd.f32 %v1844_v11, %v1592_v39  ;;  %v1593_v54 = vadd.f32 %v1972_v25, %v1427_v20  ;;  %v1566_v51 = vpop.f32.mrb[23].mxu1 }
 0x217   : > { %1622 = vst.msk [vmem:[%s3124_s18 + $0x28] sm:$0xff] %vm1099_vm5, %v1606_v44  ;;  %v1613_v32 = vadd.f32 %v1844_v11, %v1590_v7  ;;  %v1591_v36 = vadd.f32 %v1566_v51, %v1419_v2 }
 0x218   : > { %1631 = vst.msk [vmem:[%s3124_s18 + $0x70] sm:$0xff] %vm1099_vm5, %v1615_v16  ;;  %v1616_v46 = vadd.f32 %v1844_v11, %v1593_v54 }
 0x219   : > { %1629 = vst.msk [vmem:[%s3124_s18 + $0x60] sm:$0xff] %vm1099_vm5, %v1613_v32  ;;  %v1614_v28 = vadd.f32 %v1844_v11, %v1591_v36 }
 0x21a   : > { %1632 = vst.msk [vmem:[%s3124_s18 + $0x78] sm:$0xff] %vm1099_vm5, %v1616_v46 }
 0x21b   : > { %1630 = vst.msk [vmem:[%s3124_s18 + $0x68] sm:$0xff] %vm1099_vm5, %v1614_v28 }
 0x21c PF: > { %s18_s9 = sadd.s32 1, %s2198_s9   ;;  %s3201_s17 = sld [smem:[#allocation2_spill]] }
 0x21d   : > { %p15_p9 = scmp.ge.s32.totalorder %s18_s9, 6   ;;  %s3202_s27 = smov %s2190_s29 }
 0x21e   : > { %s3203_s28 = smov %s2194_s30  ;;  %s3204_s29 = smov %s3207_s10 }
 0x21f   :  { %17 = sbr.rel (!%p15_p9) target bundleno = 3 (0x3), region = 93 }
 0x222   : > { %s3205_s30 = smov %s3201_s17 }

// kernel: resnet_block_pallas.7
= control target key start
LH: loop header
LB: loop body
LE: loop exit
PB: predicated region body
PF: predicated region fallthrough
CT: control target
= control target key end

     0   :  { %16 = vsyncpa [#allocation3], 0  ;;  %s3966_s0 = inlined_call_operand.vmem [shape: f32[2,256,64], index: 0, kind: input, shape index: {}]   ;;  %s3967_s1 = inlined_call_operand.vmem [shape: f32[2,2,32,64], index: 1, kind: input, shape index: {}]   ;;  %s3968_s2 = inlined_call_operand.vmem [shape: f32[2,1,64], index: 2, kind: input, shape index: {}]   ;;  %s3969_s3 = inlined_call_operand.vmem [shape: f32[2,1,64], index: 3, kind: input, shape index: {}]   ;;  %s3970_s4 = inlined_call_operand.vmem [shape: f32[160,1], index: 4, kind: input, shape index: {}]   ;;  %s3971_s5 = inlined_call_operand.vmem [shape: f32[160,1], index: 5, kind: input, shape index: {}]   ;;  %s3972_s6 = inlined_call_operand.vmem [shape: bf16[3,192,64], index: 6, kind: input, shape index: {}]   ;;  %s3973_s7 = inlined_call_operand.vmem [shape: f32[1,64], index: 7, kind: input, shape index: {}]   ;;  %s3974_s8 = inlined_call_operand.vmem [shape: f32[2,256,32], index: 8, kind: input, shape index: {}]   ;;  %s3975_s9 = inlined_call_operand.vmem [shape: bf16[32,64], index: 9, kind: input, shape index: {}]   ;;  %s3976_s10 = inlined_call_operand.vmem [shape: f32[1,64], index: 10, kind: input, shape index: {}]   ;;  %s3977_s11 = inlined_call_operand.hbm [shape: f32[2,256,64], index: 11, kind: output, shape index: {}]  }
   0x1   :  { %18 = vsyncpa [#allocation3 + $0x1], 0  ;;  %s2761_s17 = smov 0   ;;  %s2763_s18 = smov 0  }
   0x2   :  { %s2765_s19 = smov 0   ;;  %s2767_s20 = smov 0  }
   0x3   :  { %s2769_s21 = smov 0   ;;  %s2771_s22 = smov 0  }
   0x4   :  { %s2773_s23 = smov 0   ;;  %s2775_s24 = smov 0  }
   0x5 LB: > { %3985 = sst [smem:[#allocation5_spill]] %s2666_s17  ;;  %s2208_s25 = sadd.s32 4294967295, %s2694_s24   ;;  %s2694_s24 = sphi %s2775_s24, %s24_s24   ;;  %s2690_s23 = sphi %s2773_s23, %s4004_s23   ;;  %s2686_s22 = sphi %s2771_s22, %s4003_s22   ;;  %s2682_s21 = sphi %s2769_s21, %s4002_s21   ;;  %s2678_s20 = sphi %s2767_s20, %s4001_s20   ;;  %s2674_s19 = sphi %s2765_s19, %s4000_s19   ;;  %s2670_s18 = sphi %s2763_s18, %s4006_s18   ;;  %s2666_s17 = sphi %s2761_s17, %s4005_s17  }
   0x6   : > { %3986 = sst [smem:[#allocation6_spill]] %s2674_s19  ;;  %s2209_s26 = sadd.s32 4294967294, %s2694_s24  }
   0x7   : > { %3987 = sst [smem:[#allocation7_spill]] %s2686_s22  ;;  %s33_s27 = sadd.s32 1, %s2686_s22 }
   0x8   : > { %3988 = sst [smem:[#allocation8_spill]] %s2690_s23  ;;  %p34_p0 = scmp.ge.s32.totalorder %s33_s27, 2 }
   0x9   : > { %s36_s28 = sadd.s32 1, %s2690_s23  ;;  %p317_p1 = scmp.ne.s32.totalorder %s2674_s19, %s2670_s18 }
   0xa   : > { %p318_p2 = scmp.eq.s32.totalorder %s2208_s25, 3  ;;  %s4008_s27 = smov (%p34_p0, %s33_s27), 0 }
   0xb   : > { %3989 = sst [smem:[#allocation9_spill]] %s4008_s27  ;;  %s4010_s28 = smov (!%p34_p0, %s36_s28), %s2690_s23 }
   0xc   : > { %s303_s29 = ssub.s32 %s2686_s22, %s4008_s27  ;;  %p2812_p3 = por %p318_p2, %p317_p1 }
   0xd   : > { %p38_p4 = scmp.ge.s32.totalorder %s4010_s28, 2  ;;  %p323_p5 = scmp.ne.s32.totalorder %s2670_s18, %s2666_s17 }
   0xe   : > { %p324_p6 = scmp.eq.s32.totalorder %s2209_s26, 3  ;;  %p2212_p7 = scmp.ge.s32.totalorder %s2694_s24, 1 }
   0xf   : > { %s4012_s28 = smov (%p38_p4, %s4010_s28), 0  ;;  %p410_p9 = scmp.lt.s32.totalorder %s2694_s24, 5 }
  0x10   : > { %3991 = sst [smem:[#allocation10_spill]] %s4012_s28  ;;  %p2821_p8 = por %p324_p6, %p323_p5 }
  0x11   : > { %s302_s13 = ssub.s32 %s2690_s23, %s4012_s28  ;;  %s307_s14 = sadd.s32 1, %s2674_s19 }
  0x12   : > { %s3992_s12 = scalar_select %p2821_p8, 1, 0 }
  0x13   : > { %s304_s15 = sor.u32 %s303_s29, %s302_s13  ;;  %p411_p10 = pnand %p2212_p7, %p410_p9 }
  0x14   : > { %3993 = sst [smem:[#allocation11_spill]] %s3992_s12  ;;  %p305_p11 = scmp.eq.s32.totalorder %s304_s15, 0  ;;  %v947_v0 = vld [vmem:[%s3971_s5 + $0x10] sm:$0xff] (!%p411_p10)  ;;  %v2696_v2 = vmov (!%p411_p10), 0   ;;  %v948_v3 = vld [vmem:[%s3971_s5 + $0x18] sm:$0xff] (!%p411_p10)  ;;  %v765_v6 = vld [vmem:[%s3970_s4 + $0x8] sm:$0xff] (!%p411_p10)  ;;  %v741_v63 = vlaneseq (!%p411_p10) }
  0x15   : > { %414 = sbr.rel (%p411_p10) target bundleno = 551 (0x227), region = 64  ;;  %v766_v1 = vld [vmem:[%s3970_s4 + $0x10] sm:$0xff] (!%p411_p10)  ;;  %s2839_s12 = sshll.u32 (!%p411_p10), %s2678_s20, 4  ;;  %2481 = vset.pattern.permute.xlu1 (!%p411_p10), %v2696_v2  ;;  %2480 = vset.pattern.permute.xlu0 (!%p411_p10), %v2696_v2  ;;  %v767_v4 = vld [vmem:[%s3970_s4 + $0x18] sm:$0xff] (!%p411_p10)  ;;  %v764_v7 = vld [vmem:[%s3970_s4] sm:$0xff] (!%p411_p10)  ;;  %vm1145_vm4 = vcmask (!%p411_p10), 523264  }
  0x16   : > { %s2830_s16 = scalar_select %p305_p11, %s2674_s19, %s307_s14  }
  0x17   : > { %p479_p12 = scmp.lt.s32.totalorder (!%p411_p10), %s2682_s21, 1  ;;  %p481_p13 = scmp.lt.s32.totalorder (!%p411_p10), %s2839_s12, 31  ;;  %977 = vperm.xlu1 (!%p411_p10), %2481, %v947_v0   ;;  %796 = vperm.xlu0 (!%p411_p10), %2480, %v766_v1   ;;  %v946_v18 = vld [vmem:[%s3971_s5 + $0x8] sm:$0xff] (!%p411_p10)  ;;  %v945_v22 = vld [vmem:[%s3971_s5] sm:$0xff] (!%p411_p10)  ;;  %vm1876_vm5 = vcmask (!%p411_p10), 261120  }
  0x18   : > { %3994 = sst [smem:[#allocation12_spill]] %s2830_s16  ;;  %1331 = vmatprep.subr.bf16.mxu0 (!%p411_p10), %v2696_v2  ;;  %1503 = vmatprep.subr.bf16.mxu1 (!%p411_p10), %v2696_v2  ;;  %p490_p0 = scmp.lt.s32.totalorder (!%p411_p10), %s2678_s20, 1  ;;  %v769_v38 = vld [vmem:[%s3970_s4 + $0x28] sm:$0xff] (!%p411_p10)  ;;  %v768_v39 = vld [vmem:[%s3970_s4 + $0x20] sm:$0xff] (!%p411_p10) }
  0x19   : > { %p709_p1 = scmp.gt.s32.totalorder (!%p411_p10), %s2678_s20, 0  ;;  %v950_v58 = vld [vmem:[%s3971_s5 + $0x28] sm:$0xff] (!%p411_p10)  ;;  %v949_v59 = vld [vmem:[%s3971_s5 + $0x20] sm:$0xff] (!%p411_p10) }
  0x1b   : > { %982 = vperm.xlu1 (!%p411_p10), %2481, %v948_v3   ;;  %801 = vperm.xlu0 (!%p411_p10), %2480, %v767_v4   ;;  %v771_v4 = vld [vmem:[%s3970_s4 + $0x38] sm:$0xff] (!%p411_p10) }
  0x1c   : > { %s2846_s27 = scalar_select %p479_p12, %s2682_s21, 1 }
  0x1d   : > { %s482_s15 = scalar_select %p481_p13, %s2839_s12, 31 }
  0x1e   : > { %s2215_s25 = sshll.u32 %s2846_s27, 5  ;;  %s499_s23 = scalar_lea.vmem %s3968_s2, %s2846_s27 }
  0x1f   : > { %s2862_s29 = sadd.s32 %s2215_s25, %s482_s15  ;;  %s502_s22 = scalar_lea.vmem %s3969_s3, %s2846_s27  ;;  %v2869_v5 = vld [vmem:[%s499_s23] ss:$0 sm:$0xff]  ;;  %791 = vperm.xlu1 %2481, %v765_v6   ;;  %786 = vperm.xlu0 %2480, %v764_v7   ;;  %v770_v6 = vld [vmem:[%s3970_s4 + $0x30] sm:$0xff] }
  0x20   : > { %s2216_s14 = sshll.u32 %s2862_s29, 3  ;;  %v2884_v8 = vld [vmem:[%s502_s22] ss:$0 sm:$0xff]  ;;  %s2218_s17 = sshll.u32 %s2846_s27, 3 }
  0x21   : > { %s2882_s25 = scalar_lea.vmem %s3966_s0, %s2216_s14  ;;  %s3726_s15 = scalar_lea.vmem %s3974_s8, %s2216_s14 }
  0x22   : > { %v517_v9 = vld [vmem:[%s2882_s25] sm:$0xff]  ;;  %v518_v10 = vld [vmem:[%s2882_s25 + $0x8] sm:$0xff]  ;;  %v519_v11 = vld [vmem:[%s2882_s25 + $0x10] sm:$0xff]  ;;  %s491_s13 = scalar_select %p490_p0, %s2678_s20, 1 }
  0x23   : > { %v539_v12 = vmul.f32 %v2869_v5, %v517_v9  ;;  %v540_v13 = vmul.f32 %v2869_v5, %v518_v10  ;;  %v520_v14 = vld [vmem:[%s2882_s25 + $0x18] sm:$0xff]  ;;  %v541_v15 = vmul.f32 %v2869_v5, %v519_v11  ;;  %v521_v16 = vld [vmem:[%s2882_s25 + $0x20] sm:$0xff]  ;;  %v522_v17 = vld [vmem:[%s2882_s25 + $0x28] sm:$0xff]  ;;  %972 = vperm.xlu1 %2481, %v946_v18   ;;  %967 = vperm.xlu0 %2480, %v945_v22   ;;  %s2991_s27 = scalar_select %p709_p1, 1, 0 }
  0x24   : > { %v542_v19 = vmul.f32 %v2869_v5, %v520_v14  ;;  %v543_v20 = vmul.f32 %v2869_v5, %v521_v16  ;;  %v544_v21 = vmul.f32 %v2869_v5, %v522_v17  ;;  %v523_v26 = vld [vmem:[%s2882_s25 + $0x30] sm:$0xff]  ;;  %v524_v27 = vld [vmem:[%s2882_s25 + $0x38] sm:$0xff]  ;;  %s2217_s28 = sshll.u32 %s491_s13, 2  ;;  %v525_v36 = vld [vmem:[%s2882_s25 + $0x40] sm:$0xff]  ;;  %s475_s29 = sand.u32 1, %s2670_s18  }
  0x25   : > { %v2910_v23 = vadd.f32 %v2884_v8, %v539_v12  ;;  %v2913_v24 = vadd.f32 %v2884_v8, %v540_v13  ;;  %v2916_v25 = vadd.f32 %v2884_v8, %v541_v15  ;;  %v545_v31 = vmul.f32 %v2869_v5, %v523_v26  ;;  %s494_s26 = sadd.s32 %s2218_s17, %s2217_s28  ;;  %v526_v37 = vld [vmem:[%s2882_s25 + $0x48] sm:$0xff]  ;;  %v527_v62 = vld [vmem:[%s2882_s25 + $0x50] sm:$0xff]  ;;  %v528_v11 = vld [vmem:[%s2882_s25 + $0x58] sm:$0xff]  ;;  %s2213_s16 = sshll.u32 %s475_s29, 7 }
  0x26   : > { %v2921_v28 = vadd.f32 %v2884_v8, %v542_v19  ;;  %v2924_v29 = vadd.f32 %v2884_v8, %v543_v20  ;;  %v2927_v30 = vadd.f32 %v2884_v8, %v544_v21  ;;  %v546_v35 = vmul.f32 %v2869_v5, %v524_v27  ;;  %s2219_s13 = sshll.u32 %s494_s26, 3  ;;  %v529_v12 = vld [vmem:[%s2882_s25 + $0x60] sm:$0xff]  ;;  %v530_v16 = vld [vmem:[%s2882_s25 + $0x68] sm:$0xff]  ;;  %v531_v17 = vld [vmem:[%s2882_s25 + $0x70] sm:$0xff]  ;;  %s3914_s20 = scalar_lea.sflag [#allocation3], %s475_s29 }
  0x27   : > { %v577_v32 = vsub.f32 0.0, %v2910_v23  ;;  %v578_v33 = vsub.f32 0.0, %v2913_v24  ;;  %v579_v34 = vsub.f32 0.0, %v2916_v25  ;;  %v2946_v43 = vadd.f32 %v2884_v8, %v545_v31  ;;  %s2951_s22 = scalar_lea.vmem %s3967_s1, %s2219_s13  ;;  %811 = vperm.xlu1 %2481, %v769_v38   ;;  %806 = vperm.xlu0 %2480, %v768_v39   ;;  %v2482_v18 = vld [vmem:[%s3972_s6 + $0x60] sm:$0xff]   ;;  %s2697_s13 = smov 64  }
  0x28   : > { %v580_v40 = vsub.f32 0.0, %v2921_v28  ;;  %v581_v41 = vsub.f32 0.0, %v2924_v29  ;;  %v582_v42 = vsub.f32 0.0, %v2927_v30  ;;  %v673_v47 = vld [vmem:[%s2951_s22] sm:$0xff]  ;;  %v674_v48 = vld [vmem:[%s2951_s22 + $0x8] sm:$0xff]  ;;  %v2956_v50 = vadd.f32 %v2884_v8, %v546_v35  ;;  %1332 = vmatpush1.bf16.msra.mxu0 %v2482_v18  ;;  %s2698_s14 = smov [#allocation2]  }
  0x29   : > { %v593_v44 = vmul.f32 1.442695, %v577_v32  ;;  %v595_v45 = vmul.f32 1.442695, %v578_v33  ;;  %v597_v46 = vmul.f32 1.442695, %v579_v34  ;;  %v547_v51 = vmul.f32 %v2869_v5, %v525_v36  ;;  %1333 = vmatprep.subr.bf16.mxu0 %v2696_v2 }
  0x2a   : > { %v599_v49 = vmul.f32 1.442695, %v580_v40  ;;  %v548_v52 = vmul.f32 %v2869_v5, %v526_v37  ;;  %v677_v53 = vmul.f32 %v2869_v5, %v673_v47  ;;  %v678_v54 = vmul.f32 %v2869_v5, %v674_v48  ;;  %v2483_v22 = vld [vmem:[%s3972_s6] sm:$0xff]   ;;  %v532_v32 = vld [vmem:[%s2882_s25 + $0x78] sm:$0xff]  ;;  %v951_v34 = vld [vmem:[%s3971_s5 + $0x30] sm:$0xff] }
  0x2b   : > { %2520 = vpow2.f32 %v593_v44  ;;  %v601_v55 = vmul.f32 1.442695, %v581_v41  ;;  %v603_v56 = vmul.f32 1.442695, %v582_v42  ;;  %v583_v57 = vsub.f32 0.0, %v2946_v43  ;;  %992 = vperm.xlu1 %2481, %v950_v58   ;;  %987 = vperm.xlu0 %2480, %v949_v59   ;;  %v952_v33 = vld [vmem:[%s3971_s5 + $0x38] sm:$0xff] }
  0x2c   : > { %2522 = vpow2.f32 %v595_v45  ;;  %v2971_v60 = vadd.f32 %v2884_v8, %v677_v53  ;;  %v2974_v61 = vadd.f32 %v2884_v8, %v678_v54  ;;  %v584_v0 = vsub.f32 0.0, %v2956_v50  ;;  %1504 = vmatpush1.bf16.msra.mxu1 %v2483_v22  ;;  %v2484_v40 = vld [vmem:[%s3972_s6 + $0x68] sm:$0xff]   ;;  %v772_v53 = vld [vmem:[%s3970_s4 + $0x40] sm:$0xff]  ;;  %v2486_v58 = vld [vmem:[%s3972_s6 + $0x70] sm:$0xff]   ;;  %s3232_s26 = scalar_select %p490_p0, 1, 0 }
  0x2d   : > { %2524 = vpow2.f32 %v597_v46  ;;  %v605_v1 = vmul.f32 1.442695, %v583_v57  ;;  %v2979_v3 = vadd.f32 %v2884_v8, %v547_v51  ;;  %v2994_v10 = vadd.f32 %v2884_v8, %v548_v52  ;;  %1505 = vmatprep.subr.bf16.mxu1 %v2696_v2  ;;  %v2485_v46 = vld [vmem:[%s3972_s6 + $0x8] sm:$0xff]   ;;  %v675_v51 = vld [vmem:[%s2951_s22 + $0x10] sm:$0xff]  ;;  %1334 = vmatpush1.bf16.msra.mxu0 %v2484_v40  ;;  %v676_v57 = vld [vmem:[%s2951_s22 + $0x18] sm:$0xff]  ;;  %s3826_s22 = scalar_lea.vmem [#allocation2], %s2213_s16 }
  0x2e   : > { %2526 = vpow2.f32 %v599_v49  ;;  %v685_v7 = vsub.f32 0.0, %v2971_v60  ;;  %v686_v9 = vsub.f32 0.0, %v2974_v61  ;;  %v607_v13 = vmul.f32 1.442695, %v584_v0  ;;  %1335 = vmatprep.subr.bf16.mxu0 %v2696_v2 }
  0x2f   : > { %2528 = vpow2.f32 %v601_v55  ;;  %v585_v14 = vsub.f32 0.0, %v2979_v3  ;;  %v549_v15 = vmul.f32 %v2869_v5, %v527_v62  ;;  %v586_v21 = vsub.f32 0.0, %v2994_v10  ;;  %821 = vperm.xlu1 %2481, %v771_v4   ;;  %816 = vperm.xlu0 %2480, %v770_v6   ;;  %v2487_v6 = vld [vmem:[%s3972_s6 + $0x10] sm:$0xff]  }
  0x30   : > { %2530 = vpow2.f32 %v603_v56  ;;  %v689_v19 = vmul.f32 1.442695, %v685_v7  ;;  %v691_v20 = vmul.f32 1.442695, %v686_v9  ;;  %v550_v27 = vmul.f32 %v2869_v5, %v528_v11  ;;  %1506 = vmatpush1.bf16.msra.mxu1 %v2485_v46  ;;  %v773_v9 = vld [vmem:[%s3970_s4 + $0x48] sm:$0xff] }
  0x31   : > { %2532 = vpow2.f32 %v605_v1  ;;  %v609_v26 = vmul.f32 1.442695, %v585_v14  ;;  %v3011_v31 = vadd.f32 %v2884_v8, %v549_v15  ;;  %v611_v35 = vmul.f32 1.442695, %v586_v21  ;;  %1507 = vmatprep.subr.bf16.mxu1 %v2696_v2  ;;  %1336 = vmatpush1.bf16.msra.mxu0 %v2486_v58  ;;  %v2489_v21 = vld [vmem:[%s3972_s6 + $0x18] sm:$0xff]  }
  0x32   : > { %2534 = vpow2.f32 %v607_v13  ;;  %v551_v36 = vmul.f32 %v2869_v5, %v529_v12  ;;  %v552_v37 = vmul.f32 %v2869_v5, %v530_v16  ;;  %v3024_v38 = vadd.f32 %v2884_v8, %v550_v27  ;;  %v2488_v16 = vld [vmem:[%s3972_s6 + $0x78] sm:$0xff]   ;;  %1337 = vmatprep.subr.bf16.mxu0 %v2696_v2 }
  0x33   : > { %2536 = vpow2.f32 %v689_v19  ;;  %v553_v39 = vmul.f32 %v2869_v5, %v531_v17  ;;  %v587_v42 = vsub.f32 0.0, %v3011_v31  ;;  %v554_v55 = vmul.f32 %v2869_v5, %v532_v32  ;;  %1002 = vperm.xlu1 %2481, %v952_v33   ;;  %997 = vperm.xlu0 %2480, %v951_v34  }
  0x34   : > { %2538 = vpow2.f32 %v691_v20  ;;  %v3032_v44 = vadd.f32 %v2884_v8, %v551_v36  ;;  %v3035_v45 = vadd.f32 %v2884_v8, %v552_v37  ;;  %v588_v49 = vsub.f32 0.0, %v3024_v38  ;;  %1508 = vmatpush1.bf16.msra.mxu1 %v2487_v6 }
  0x35   : > { %v2521_v41 = vpop.eup %2520  ;;  %2540 = vpow2.f32 %v609_v26  ;;  %v3048_v56 = vadd.f32 %v2884_v8, %v553_v39  ;;  %v3056_v59 = vshrl.u32 %v741_v63, 7  ;;  %v3066_v11 = vmul.f32 1.442695, %v587_v42  ;;  %1509 = vmatprep.subr.bf16.mxu1 %v2696_v2  ;;  %1338 = vmatpush1.bf16.msra.mxu0 %v2488_v16 }
  0x36   : > { %v2523_v47 = vpop.eup %2522  ;;  %v625_v48 = vadd.f32 1.0, %v2521_v41  ;;  %2542 = vpow2.f32 %v611_v35  ;;  %v589_v1 = vsub.f32 0.0, %v3032_v44  ;;  %v590_v4 = vsub.f32 0.0, %v3035_v45  ;;  %1339 = vmatprep.subr.bf16.mxu0 %v2696_v2 }
  0x37   : > { %v2525_v52 = vpop.eup %2524  ;;  %v626_v54 = vadd.f32 1.0, %v2523_v47  ;;  %v3068_v12 = vmul.f32 1.442695, %v588_v49  ;;  %v591_v15 = vsub.f32 0.0, %v3048_v56  ;;  %v679_v19 = vmul.f32 %v2869_v5, %v675_v51  ;;  %826 = vperm.xlu1 %2481, %v772_v53   ;;  %831 = vperm.xlu0 %2480, %v773_v9  }
  0x38   : > { %v2527_v62 = vpop.eup %2526  ;;  %2544 = vrcp.f32 %v625_v48  ;;  %v627_v0 = vadd.f32 1.0, %v2525_v52  ;;  %v680_v20 = vmul.f32 %v2869_v5, %v676_v57  ;;  %v617_v26 = vmul.f32 1.442695, %v589_v1  ;;  %v2490_v5 = vld [vmem:[%s3972_s6 + $0x80] sm:$0xff]   ;;  %1510 = vmatpush1.bf16.msra.mxu1 %v2489_v21  ;;  %v2493_v57 = vld [vmem:[%s3972_s6 + $0x28] sm:$0xff]  }
  0x39   : > { %v2529_v7 = vpop.eup %2528  ;;  %2546 = vrcp.f32 %v626_v54  ;;  %v628_v63 = vadd.f32 1.0, %v2527_v62  ;;  %v3081_v27 = vmul.f32 1.442695, %v590_v4  ;;  %v3084_v32 = vadd.f32 %v2884_v8, %v554_v55  ;;  %1511 = vmatprep.subr.bf16.mxu1 %v2696_v2  ;;  %v2492_v55 = vld [vmem:[%s3972_s6 + $0x88] sm:$0xff]   ;;  %1340 = vmatpush1.bf16.msra.mxu0 %v2490_v5 }
  0x3a   : > { %v2531_v13 = vpop.eup %2530  ;;  %2548 = vrcp.f32 %v627_v0  ;;  %v629_v14 = vadd.f32 1.0, %v2529_v7  ;;  %v3089_v34 = vmul.f32 1.442695, %v591_v15  ;;  %v3092_v35 = vadd.f32 %v2884_v8, %v679_v19  ;;  %1341 = vmatprep.subr.bf16.mxu0 %v2696_v2 }
  0x3b   : > { %v2533_v17 = vpop.eup %2532  ;;  %2550 = vrcp.f32 %v628_v63  ;;  %v630_v18 = vadd.f32 1.0, %v2531_v13  ;;  %v3095_v36 = vadd.f32 %v2884_v8, %v680_v20  ;;  %vm924_vm0 = vcmp.lt.s32.totalorder %v3056_v59, 7  ;;  %v2491_v8 = vld [vmem:[%s3972_s6 + $0x20] sm:$0xff]  }
  0x3c   : > { %v2535_v22 = vpop.eup %2534  ;;  %2552 = vrcp.f32 %v629_v14  ;;  %v631_v40 = vadd.f32 1.0, %v2533_v17  ;;  %vm743_vm1 = vcmp.lt.s32.totalorder %v3056_v59, 1  ;;  %v687_v46 = vsub.f32 0.0, %v3092_v35  ;;  %1512 = vmatpush1.bf16.msra.mxu1 %v2491_v8 }
  0x3d   : > { %v2537_v33 = vpop.eup %2536  ;;  %2554 = vrcp.f32 %v630_v18  ;;  %v688_v47 = vsub.f32 0.0, %v3095_v36  ;;  %v632_v49 = vadd.f32 1.0, %v2535_v22  ;;  %v592_v51 = vsub.f32 0.0, %v3084_v32  ;;  %1513 = vmatprep.subr.bf16.mxu1 %v2696_v2  ;;  %1342 = vmatpush1.bf16.msra.mxu0 %v2492_v55 }
  0x3e   : > { %v2539_v37 = vpop.eup %2538  ;;  %v697_v39 = vadd.f32 1.0, %v2537_v33  ;;  %v693_v54 = vmul.f32 1.442695, %v687_v46  ;;  %v711_v7 = vstv %s2991_s27  ;;  %1343 = vmatprep.subr.bf16.mxu0 %v2696_v2  ;;  %s2604_s27 = sshll.u32 %s2698_s14, 4  ;;  %s2605_s27 = int_to_ptr.vmem [resolvable:$false] %s2604_s27 }
  0x3f   : > { %v2541_v41 = vpop.eup %2540  ;;  %v698_v42 = vadd.f32 1.0, %v2539_v37  ;;  %v695_v1 = vmul.f32 1.442695, %v688_v47  ;;  %vm3133_vm2 = vcmp.eq.s32.totalorder %v711_v7, 1  ;;  %v3150_v21 = vmul.f32 1.442695, %v592_v51 }
  0x40   : > { %v2543_v48 = vpop.eup %2542  ;;  %2556 = vrcp.f32 %v697_v39  ;;  %v633_v52 = vadd.f32 1.0, %v2541_v41  ;;  %1514 = vmatpush1.bf16.msra.mxu1 %v2493_v57  ;;  %v2496_v39 = vld [vmem:[%s3972_s6 + $0x98] sm:$0xff]   ;;  %v954_v51 = vld [vmem:[%s3971_s5 + $0x48] sm:$0xff]  ;;  %s2606_s16 = scalar_lea.vmem %s2605_s27, 4096 }
  0x41   : > { %2558 = vrcp.f32 %v698_v42  ;;  %v634_v53 = vadd.f32 1.0, %v2543_v48  ;;  %1515 = vmatprep.subr.bf16.mxu1 %v2696_v2 }
  0x42   : > { %v2545_v58 = vpop.eup %2544  ;;  %2560 = vrcp.f32 %v631_v40 }
  0x43   : > { %v2547_v62 = vpop.eup %2546  ;;  %v3115_v0 = vmul.f32 %v2545_v58, %v2910_v23  ;;  %2562 = vpow2.f32 %v3066_v11  ;;  %v2494_v11 = vld [vmem:[%s3972_s6 + $0x90] sm:$0xff]  }
  0x44   : > { %v2549_v4 = vpop.eup %2548  ;;  %v658_v6 = vmul.f32 %v2547_v62, %v2913_v24  ;;  %2564 = vpow2.f32 %v3068_v12  ;;  %1344 = vmatpush1.bf16.msra.mxu0 %v2494_v11 }
  0x45   : > { %v2551_v9 = vpop.eup %2550  ;;  %v659_v63 = vmul.f32 %v2549_v4, %v2916_v25  ;;  %v906_v23 = vrot.slane %v3115_v0, 1  ;;  %v723_v13 = vrot.slane %v3115_v0, 7  ;;  %2566 = vrcp.f32 %v632_v49  ;;  %1345 = vmatprep.subr.bf16.mxu0 %v2696_v2 }
  0x46   : > { %v1096_v14 = vpack.c.bf16 %v658_v6, %v3115_v0  ;;  %v3128_v15 = vmul.f32 %v2551_v9, %v2921_v28  ;;  %v907_v24 = vrot.slane %v658_v6, 1  ;;  %v2553_v16 = vpop.eup %2552  ;;  %2568 = vpow2.f32 %v617_v26  ;;  %v2495_v28 = vld [vmem:[%s3972_s6 + $0x30] sm:$0xff]  }
  0x47   : > { %v908_v12 = vrot.slane %v659_v63, 1  ;;  %v724_v17 = vrot.slane %v658_v6, 7  ;;  %2570 = vrcp.f32 %v633_v52  ;;  %v2555_v20 = vpop.eup %2554  ;;  %v3163_v33 = vmul.f32 %v2553_v16, %v2924_v29  ;;  %1516 = vmatpush1.bf16.msra.mxu1 %v2495_v28  ;;  %v2497_v29 = vld [vmem:[%s3972_s6 + $0x38] sm:$0xff]   ;;  %v955_v0 = vld [vmem:[%s3971_s5 + $0x50] sm:$0xff] }
  0x48   : > { %1127 = vrot.lane.b32.xlu0 %v1096_v14, %s2697_s13  ;;  %v1097_v18 = vpack.c.bf16 %v3128_v15, %v659_v63  ;;  %v3147_v19 = vsel %vm924_vm0, %v906_v23, %v907_v24  ;;  %2572 = vrcp.f32 %v634_v53  ;;  %v725_v37 = vrot.slane %v659_v63, 7  ;;  %1517 = vmatprep.subr.bf16.mxu1 %v2696_v2  ;;  %v953_v63 = vld [vmem:[%s3971_s5 + $0x40] sm:$0xff]  ;;  %v774_v14 = vld [vmem:[%s3970_s4 + $0x50] sm:$0xff] }
  0x49   : > { %v3154_v22 = vsel %vm924_vm0, %v907_v24, %v908_v12  ;;  %v3160_v26 = vsel %vm743_vm1, %v723_v13, %v724_v17  ;;  %2574 = vpow2.f32 %v693_v54  ;;  %v726_v42 = vrot.slane %v3128_v15, 7  ;;  %1346 = vmatpush1.bf16.msra.mxu0 %v2496_v39 }
  0x4a   : > { %v2557_v5 = vpop.eup %2556  ;;  %2576 = vpow2.f32 %v695_v1  ;;  %v909_v46 = vrot.slane %v3128_v15, 1  ;;  %v3179_v8 = vsel %vm743_vm1, %v724_v17, %v725_v37  ;;  %v3202_v55 = vmul.f32 %v2555_v20, %v2927_v30  ;;  %1347 = vmatprep.subr.bf16.mxu0 %v2696_v2  ;;  %v2499_v30 = vld [vmem:[%s3972_s6 + $0x40] sm:$0xff]  }
  0x4b   : > { %v2559_v40 = vpop.eup %2558  ;;  %v705_v41 = vmul.f32 %v2557_v5, %v2971_v60  ;;  %v910_v60 = vrot.slane %v3163_v33, 1  ;;  %2578 = vpow2.f32 %v3081_v27  ;;  %v2498_v27 = vld [vmem:[%s3972_s6 + $0xa0] sm:$0xff]   ;;  %1518 = vmatpush1.bf16.msra.mxu1 %v2497_v29  ;;  %v727_v24 = vrot.slane %v3163_v33, 7 }
  0x4c   : > { %v706_v47 = vmul.f32 %v2559_v40, %v2974_v61  ;;  %1129 = vrot.lane.b32.xlu0 %v1097_v18, %s2697_s13  ;;  %v2561_v48 = vpop.eup %2560  ;;  %v3193_v61 = vsel %vm743_vm1, %v725_v37, %v726_v42  ;;  %v3197_v52 = vsel %vm924_vm0, %v908_v12, %v909_v46  ;;  %2580 = vpow2.f32 %v3089_v34  ;;  %1519 = vmatprep.subr.bf16.mxu1 %v2696_v2  ;;  %v2500_v18 = vld [vmem:[%s3972_s6 + $0xa8] sm:$0xff]  }
  0x4d   : > { %v3185_v49 = vsel %vm3133_vm2, %v705_v41, 0.0  ;;  %v2563_v53 = vpop.eup %2562  ;;  %v3225_v15 = vsel %vm924_vm0, %v909_v46, %v910_v60  ;;  %v3247_v12 = vmul.f32 %v2561_v48, %v2946_v43  ;;  %1348 = vmatpush1.bf16.msra.mxu0 %v2498_v27  ;;  %v1098_v20 = vpack.c.bf16 %v3202_v55, %v3163_v33  ;;  %v2501_v37 = vld [vmem:[%s3972_s6 + $0x48] sm:$0xff]   ;;  %v775_v33 = vld [vmem:[%s3970_s4 + $0x58] sm:$0xff] }
  0x4e   : > { %v714_v54 = vsel %vm3133_vm2, %v706_v47, 0.0  ;;  %v721_v57 = vrot.slane %v3185_v49, 7  ;;  %v904_v58 = vrot.slane %v3185_v49, 1  ;;  %v2565_v62 = vpop.eup %2564  ;;  %v635_v4 = vadd.f32 1.0, %v2563_v53  ;;  %1349 = vmatprep.subr.bf16.mxu0 %v2696_v2 }
  0x4f   : > { %v1095_v1 = vpack.c.bf16 %v714_v54, %v3185_v49  ;;  %v722_v6 = vrot.slane %v714_v54, 7  ;;  %v905_v7 = vrot.slane %v714_v54, 1  ;;  %v2567_v9 = vpop.eup %2566  ;;  %v636_v17 = vadd.f32 1.0, %v2565_v62  ;;  %1520 = vmatpush1.bf16.msra.mxu1 %v2499_v30 }
  0x50   : > { %1012 = vperm.xlu0 %2480, %v954_v51   ;;  %v2569_v11 = vpop.eup %2568  ;;  %2582 = vrcp.f32 %v635_v4  ;;  %v3273_v5 = vsel %vm743_vm1, %v726_v42, %v727_v24  ;;  %v664_v40 = vmul.f32 %v2567_v9, %v2956_v50  ;;  %1521 = vmatprep.subr.bf16.mxu1 %v2696_v2  ;;  %v912_v29 = vrot.slane %v3247_v12, 1  ;;  %v2502_v42 = vld [vmem:[%s3972_s6 + $0xb0] sm:$0xff]  }
  0x51   : > { %1125 = vrot.lane.b32.xlu1 %v1095_v1, %s2697_s13  ;;  %v3238_v34 = vsel %vm743_vm1, %v722_v6, %v723_v13  ;;  %v3244_v16 = vsel %vm743_vm1, %v721_v57, %v722_v6  ;;  %v2571_v25 = vpop.eup %2570  ;;  %v3253_v28 = vsel %vm924_vm0, %v905_v7, %v906_v23  ;;  %v3259_v13 = vsel %vm924_vm0, %v904_v58, %v905_v7  ;;  %v2504_v7 = vld [vmem:[%s3972_s6 + $0xb8] sm:$0xff]  }
  0x52   : > { %v2573_v43 = vpop.eup %2572  ;;  %2584 = vpow2.f32 %v3150_v21  ;;  %v728_v23 = vrot.slane %v3202_v55, 7  ;;  %v637_v41 = vadd.f32 1.0, %v2569_v11  ;;  %v911_v21 = vrot.slane %v3202_v55, 1  ;;  %1350 = vmatpush1.bf16.msra.mxu0 %v2500_v18  ;;  %v2503_v55 = vld [vmem:[%s3972_s6 + $0x50] sm:$0xff]  }
  0x53   : > { %v2575_v39 = vpop.eup %2574  ;;  %v3287_v47 = vmul.f32 %v2571_v25, %v2979_v3  ;;  %v729_v51 = vrot.slane %v3247_v12, 7  ;;  %2586 = vrcp.f32 %v636_v17  ;;  %1522 = vmatpush1.bf16.msra.mxu1 %v2501_v37  ;;  %1351 = vmatprep.subr.bf16.mxu0 %v2696_v2  ;;  %v730_v1 = vrot.slane %v664_v40, 7 }
  0x54   : > { %836 = vperm.xlu0 %2480, %v774_v14   ;;  %v2577_v46 = vpop.eup %2576  ;;  %v699_v48 = vadd.f32 1.0, %v2575_v39  ;;  %v3291_v50 = vsel %vm743_vm1, %v727_v24, %v728_v23  ;;  %v3296_v54 = vsel %vm924_vm0, %v911_v21, %v912_v29  ;;  %v3302_v3 = vsel %vm924_vm0, %v910_v60, %v911_v21  ;;  %1523 = vmatprep.subr.bf16.mxu1 %v2696_v2  ;;  %v956_v39 = vld [vmem:[%s3971_s5 + $0x58] sm:$0xff] }
  0x55   : > { %1007 = vperm.xlu1 %2481, %v953_v63   ;;  %v700_v53 = vadd.f32 1.0, %v2577_v46  ;;  %v2579_v27 = vpop.eup %2578  ;;  %v3310_v62 = vsel %vm743_vm1, %v728_v23, %v729_v51  ;;  %v913_v4 = vrot.slane %v664_v40, 1  ;;  %v1099_v60 = vpack.c.bf16 %v664_v40, %v3247_v12  ;;  %v777_v23 = vld [vmem:[%s3970_s4 + $0x68] sm:$0xff] }
  0x56   : > { %2588 = vrcp.f32 %v699_v48  ;;  %v3317_v6 = vmul.f32 %v2573_v43, %v2994_v10  ;;  %v914_v30 = vrot.slane %v3287_v47, 1  ;;  %v3327_v9 = vsel %vm743_vm1, %v729_v51, %v730_v1  ;;  %v2505_v10 = vld [vmem:[%s3972_s6 + $0x58] sm:$0xff]   ;;  %v2581_v24 = vpop.eup %2580  ;;  %1352 = vmatpush1.bf16.msra.mxu0 %v2502_v42  ;;  %v958_v48 = vld [vmem:[%s3971_s5 + $0x68] sm:$0xff] }
  0x57   : > { %2590 = vrcp.f32 %v700_v53  ;;  %v3334_v63 = vsel %vm924_vm0, %v912_v29, %v913_v4  ;;  %v731_v14 = vrot.slane %v3287_v47, 7  ;;  %v638_v11 = vadd.f32 1.0, %v2579_v27  ;;  %1524 = vmatpush1.bf16.msra.mxu1 %v2503_v55  ;;  %1353 = vmatprep.subr.bf16.mxu0 %v2696_v2  ;;  %v776_v53 = vld [vmem:[%s3970_s4 + $0x60] sm:$0xff] }
  0x58   : > { %1017 = vperm.xlu0 %2480, %v955_v0   ;;  %2592 = vrcp.f32 %v637_v41  ;;  %v3339_v25 = vsel %vm924_vm0, %v913_v4, %v914_v30  ;;  %v732_v12 = vrot.slane %v3317_v6, 7  ;;  %1525 = vmatprep.subr.bf16.mxu1 %v2696_v2  ;;  %v915_v37 = vrot.slane %v3317_v6, 1 }
  0x59   : > { %1131 = vrot.lane.b32.xlu1 %v1098_v20, %s2697_s13  ;;  %v3345_v18 = vsel %vm743_vm1, %v730_v1, %v731_v14  ;;  %2594 = vrcp.f32 %v638_v11  ;;  %v639_v41 = vadd.f32 1.0, %v2581_v24 }
  0x5a   : > { %v2583_v17 = vpop.eup %2582  ;;  %v3354_v20 = vsel %vm743_vm1, %v731_v14, %v732_v12  ;;  %1354 = vmatpush1.bf16.msra.mxu0 %v2504_v7  ;;  %v3368_v21 = vsel %vm924_vm0, %v914_v30, %v915_v37 }
  0x5b   : > { %v3349_v43 = vmul.f32 %v2583_v17, %v3011_v31  ;;  %v717_v31 = vstv %s3232_s26  ;;  %1526 = vmatpush1.bf16.msra.mxu1 %v2505_v10  ;;  %1700 = vmatprep.subr.bf16.mxu0 %v2696_v2  ;;  %2596 = vrcp.f32 %v639_v41 }
  0x5c   : > { %1133 = vrot.lane.b32.xlu0 %v1099_v60, %s2697_s13  ;;  %v2585_v0 = vpop.eup %2584  ;;  %2381 = vmatprep.subr.bf16.mxu1 %v2696_v2  ;;  %vm718_vm3 = vcmp.eq.s32.totalorder %v717_v31, 1 }
  0x5d   : > { %841 = vperm.xlu1 %2481, %v775_v33   ;;  %v916_v40 = vrot.slane %v3349_v43, 1  ;;  %v2587_v29 = vpop.eup %2586  ;;  %v733_v27 = vrot.slane %v3349_v43, 7  ;;  %v640_v4 = vadd.f32 1.0, %v2585_v0 }
  0x5e   : > { %v668_v1 = vmul.f32 %v2587_v29, %v3024_v38 }
  0x5f   : > { %v3373_v42 = vsel %vm924_vm0, %v915_v37, %v916_v40  ;;  %v3389_v30 = vsel %vm743_vm1, %v732_v12, %v733_v27  ;;  %2598 = vrcp.f32 %v640_v4 }
  0x60   : > { %851 = vperm.xlu0 %2480, %v777_v23   ;;  %v2589_v46 = vpop.eup %2588  ;;  %v734_v38 = vrot.slane %v668_v1, 7  ;;  %v917_v11 = vrot.slane %v668_v1, 1 }
  0x61   : > { %1022 = vperm.xlu1 %2481, %v956_v39   ;;  %v2591_v51 = vpop.eup %2590  ;;  %v707_v55 = vmul.f32 %v2589_v46, %v3092_v35  ;;  %v778_v35 = vld [vmem:[%s3970_s4 + $0x70] sm:$0xff] }
  0x62   : > { %v708_v33 = vmul.f32 %v2591_v51, %v3095_v36  ;;  %v2593_v60 = vpop.eup %2592  ;;  %v957_v36 = vld [vmem:[%s3971_s5 + $0x60] sm:$0xff]  ;;  %v3405_v17 = vsel %vm743_vm1, %v733_v27, %v734_v38  ;;  %v3417_v23 = vsel %vm924_vm0, %v916_v40, %v917_v11  ;;  %v959_v39 = vld [vmem:[%s3971_s5 + $0x70] sm:$0xff]  ;;  %v960_v27 = vld [vmem:[%s3971_s5 + $0x78] sm:$0xff] }
  0x63   : > { %v3385_v7 = vsel %vm718_vm3, %v707_v55, 0.0  ;;  %v669_v12 = vmul.f32 %v2593_v60, %v3032_v44  ;;  %v2595_v37 = vpop.eup %2594  ;;  %v1100_v44 = vpack.c.bf16 %v3317_v6, %v3287_v47  ;;  %v779_v47 = vld [vmem:[%s3970_s4 + $0x78] sm:$0xff]  ;;  %v962_v60 = vld [vmem:[%s3971_s5 + $0x88] sm:$0xff] }
  0x64   : > { %1032 = vperm.xlu0 %2480, %v958_v48   ;;  %v3394_v10 = vsel %vm718_vm3, %v708_v33, 0.0  ;;  %v670_v40 = vmul.f32 %v2595_v37, %v3035_v45  ;;  %v961_v37 = vld [vmem:[%s3971_s5 + $0x80] sm:$0xff] }
  0x65   : > { %846 = vperm.xlu1 %2481, %v776_v53   ;;  %v1104_v14 = vpack.c.bf16 %v3394_v10, %v3385_v7  ;;  %v740_v24 = vrot.slane %v3394_v10, 7  ;;  %v918_v31 = vrot.slane %v669_v12, 1  ;;  %v2597_v29 = vpop.eup %2596  ;;  %v735_v46 = vrot.slane %v669_v12, 7  ;;  %v781_v53 = vld [vmem:[%s3970_s4 + $0x88] sm:$0xff] }
  0x66   : > { %v736_v6 = vrot.slane %v670_v40, 7  ;;  %v671_v51 = vmul.f32 %v2597_v29, %v3048_v56  ;;  %v919_v55 = vrot.slane %v670_v40, 1  ;;  %v783_v29 = vld [vmem:[%s3970_s4 + $0x98] sm:$0xff] }
  0x67   : > { %v3413_v0 = vsel %vm743_vm1, %v740_v24, %v721_v57  ;;  %v3426_v41 = vsel %vm924_vm0, %v917_v11, %v918_v31  ;;  %v1101_v57 = vpack.c.bf16 %v668_v1, %v3349_v43  ;;  %v3436_v48 = vsel %vm743_vm1, %v734_v38, %v735_v46 }
  0x68   : > { %856 = vperm.xlu0 %2480, %v778_v35   ;;  %v3442_v45 = vsel %vm743_vm1, %v735_v46, %v736_v6  ;;  %v920_v1 = vrot.slane %v671_v51, 1  ;;  %v3452_v4 = vsel %vm924_vm0, %v918_v31, %v919_v55  ;;  %v780_v35 = vld [vmem:[%s3970_s4 + $0x80] sm:$0xff]  ;;  %v737_v38 = vrot.slane %v671_v51, 7 }
  0x69   : > { %1027 = vperm.xlu1 %2481, %v957_v36   ;;  %v2599_v43 = vpop.eup %2598  ;;  %v922_v46 = vrot.slane %v3385_v7, 1 }
  0x6a   : > { %v672_v56 = vmul.f32 %v2599_v43, %v3084_v32  ;;  %v3457_v33 = vsel %vm924_vm0, %v919_v55, %v920_v1  ;;  %v3467_v11 = vsel %vm743_vm1, %v736_v6, %v737_v38  ;;  %v964_v6 = vld [vmem:[%s3971_s5 + $0x98] sm:$0xff]  ;;  %v923_v55 = vrot.slane %v3394_v10, 1 }
  0x6c   : > { %1037 = vperm.xlu0 %2480, %v959_v39   ;;  %v1103_v36 = vpack.c.bf16 %v672_v56, %v671_v51  ;;  %v738_v32 = vrot.slane %v672_v56, 7 }
  0x6d   : > { %1135 = vrot.lane.b32.xlu1 %v1100_v44, %s2697_s13  ;;  %v921_v44 = vrot.slane %v672_v56, 1 }
  0x6e   : > { %v3474_v39 = vsel %vm743_vm1, %v737_v38, %v738_v32 }
  0x6f   : > { %v3479_v31 = vsel %vm924_vm0, %v920_v1, %v921_v44  ;;  %v3519_v1 = vsel %vm924_vm0, %v923_v55, %v904_v58 }
  0x70   : > { %1137 = vrot.lane.b32.xlu0 %v1101_v57, %s2697_s13  ;;  %v1102_v57 = vpack.c.bf16 %v670_v40, %v669_v12  ;;  %v782_v12 = vld [vmem:[%s3970_s4 + $0x90] sm:$0xff]  ;;  %v739_v40 = vrot.slane %v3385_v7, 7 }
  0x71   : > { %861 = vperm.xlu1 %2481, %v779_v47   ;;  %v3487_v47 = vsel %vm924_vm0, %v921_v44, %v922_v46 }
  0x72   : > { %v3499_v51 = vsel %vm743_vm1, %v738_v32, %v739_v40  ;;  %v3505_v43 = vsel %vm743_vm1, %v739_v40, %v740_v24 }
  0x74   : > { %871 = vperm.xlu0 %2480, %v781_v53   ;;  %v963_v53 = vld [vmem:[%s3971_s5 + $0x90] sm:$0xff] }
  0x75   : > { %1042 = vperm.xlu1 %2481, %v960_v27   ;;  %v3513_v27 = vsel %vm924_vm0, %v922_v46, %v923_v55 }
  0x78   : > { %1052 = vperm.xlu0 %2480, %v962_v60  }
  0x79   : > { %866 = vperm.xlu1 %2481, %v780_v35  }
  0x7c   : > { %1141 = vrot.lane.b32.xlu0 %v1103_v36, %s2697_s13 }
  0x7d   : > { %1047 = vperm.xlu1 %2481, %v961_v37  }
  0x80   : > { %881 = vperm.xlu0 %2480, %v783_v29  }
  0x81   : > { %1139 = vrot.lane.b32.xlu1 %v1102_v57, %s2697_s13 }
  0x84   : > { %1062 = vperm.xlu0 %2480, %v964_v6  }
  0x85   : > { %876 = vperm.xlu1 %2481, %v782_v12  }
  0x89   : > { %1057 = vperm.xlu1 %2481, %v963_v53  }
  0x8d   : > { %1143 = vrot.lane.b32.xlu1 %v1104_v14, %s2697_s13  ;;  %s2347_s13 = sshll.u32 %s2682_s21, 5 }
  0x8e   : > { %s2066_s17 = sadd.s32 %s2347_s13, %s2839_s12  ;;  %s2069_s12 = sshll.u32 %s3826_s22, 4  ;;  %s3905_s12 = int_to_ptr.vmem [resolvable:$true] %s2069_s12 }
  0x8f   : > { %s2348_s21 = sshll.u32 %s2066_s17, 7  ;;  %p2607_p6 = scmp.lt.s32.totalorder %s3905_s12, %s2605_s27 }
  0x90   : > { %s3902_s26 = scalar_lea.hbm %s3977_s11, %s2348_s21 }
  0x96   : > { %v978_v24 = vpop.permute.xlu1 %977  ;;  %v797_v56 = vpop.permute.xlu0 %796 }
  0x97   : > { %v1067_v60 = vmul.f32 %v978_v24, %v3147_v19  ;;  %v886_v35 = vmul.f32 %v797_v56, %v3238_v34 }
  0x9a   : > { %v983_v38 = vpop.permute.xlu1 %982  ;;  %v802_v36 = vpop.permute.xlu0 %801 }
  0x9b   : > { %v1068_v32 = vmul.f32 %v983_v38, %v3154_v22  ;;  %v887_v49 = vmul.f32 %v802_v36, %v3160_v26 }
  0x9d   : > { %v1086_v59 = vpack.c.bf16 %v887_v49, %v886_v35  ;;  %v1106_v58 = vpack.c.bf16 %v1068_v32, %v1067_v60 }
  0x9e   : > { %v792_v37 = vpop.permute.xlu1 %791  ;;  %v787_v44 = vpop.permute.xlu0 %786 }
  0x9f   : > { %v885_v7 = vmul.f32 %v792_v37, %v3244_v16  ;;  %v884_v10 = vmul.f32 %v787_v44, %v3413_v0  ;;  %2261 = vmatprep.mubr.msk.bf16.mxu0 %vm1145_vm4, %v1106_v58 }
  0xa1   : > { %v1085_v19 = vpack.c.bf16 %v885_v7, %v884_v10  ;;  %v2508_v10 = vld [vmem:[%s3972_s6 + $0xd0] sm:$0xff]  }
  0xa2   : > { %v973_v14 = vpop.permute.xlu1 %972  ;;  %v968_v34 = vpop.permute.xlu0 %967 }
  0xa3   : > { %v1066_v57 = vmul.f32 %v973_v14, %v3253_v28  ;;  %v1065_v22 = vmul.f32 %v968_v34, %v3259_v13  ;;  %v2510_v14 = vld [vmem:[%s3972_s6 + $0xe0] sm:$0xff]  }
  0xa5   : > { %v1105_v29 = vpack.c.bf16 %v1066_v57, %v1065_v22 }
  0xa6   : > { %v812_v26 = vpop.permute.xlu1 %811  ;;  %v807_v46 = vpop.permute.xlu0 %806 }
  0xa7   : > { %v889_v6 = vmul.f32 %v812_v26, %v3193_v61  ;;  %v888_v12 = vmul.f32 %v807_v46, %v3179_v8  ;;  %2281 = vmatprep.mubr.msk.bf16.mxu1 %vm1145_vm4, %v1105_v29  ;;  %v2511_v26 = vld [vmem:[%s3972_s6 + $0xe8] sm:$0xff]  }
  0xa9   : > { %v1087_v16 = vpack.c.bf16 %v889_v6, %v888_v12  ;;  %v2512_v12 = vld [vmem:[%s3972_s6 + $0xf0] sm:$0xff]  }
  0xaa   : > { %v993_v0 = vpop.permute.xlu1 %992  ;;  %v988_v40 = vpop.permute.xlu0 %987 }
  0xab   : > { %v1070_v53 = vmul.f32 %v993_v0, %v3225_v15  ;;  %v1069_v55 = vmul.f32 %v988_v40, %v3197_v52 }
  0xad   : > { %v3539_v24 = vpack.c.bf16 %v1070_v53, %v1069_v55 }
  0xae   : > { %v822_v28 = vpop.permute.xlu1 %821  ;;  %v817_v13 = vpop.permute.xlu0 %816 }
  0xaf   : > { %v3542_v56 = vmul.f32 %v822_v28, %v3291_v50  ;;  %v3545_v61 = vmul.f32 %v817_v13, %v3273_v5 }
  0xb1   : > { %v1088_v8 = vpack.c.bf16 %v3542_v56, %v3545_v61 }
  0xb2   : > { %v1003_v60 = vpop.permute.xlu1 %1002  ;;  %v998_v35 = vpop.permute.xlu0 %997 }
  0xb3   : > { %v1072_v38 = vmul.f32 %v1003_v60, %v3296_v54  ;;  %v1071_v15 = vmul.f32 %v998_v35, %v3302_v3  ;;  %v2506_v54 = vld [vmem:[%s3972_s6 + $0xc0] sm:$0xff]  }
  0xb5   : > { %v3551_v52 = vpack.c.bf16 %v1072_v38, %v1071_v15 }
  0xb6   : > { %v827_v36 = vpop.permute.xlu1 %826  ;;  %v832_v32 = vpop.permute.xlu0 %831 }
  0xb7   : > { %v3554_v49 = vmul.f32 %v827_v36, %v3310_v62  ;;  %v3557_v50 = vmul.f32 %v832_v32, %v3327_v9 }
  0xb9   : > { %v1089_v5 = vpack.c.bf16 %v3557_v50, %v3554_v49  ;;  %v2516_v50 = vld [vmem:[%s3972_s6 + $0x110] sm:$0xff]  }
  0xba   : > { %v1128_v37 = vpop.permute.xlu0 %1127 }
  0xbb   : > { %v1152_v44 = vsel %vm1145_vm4, %v1086_v59, %v1128_v37  ;;  %v2507_v59 = vld [vmem:[%s3972_s6 + $0xc8] sm:$0xff]  }
  0xbc   : > { %1364 = vmatmul.mubr.bf16.vlgmr.msra.gmra.mrb[0].mxu0 %v1152_v44 }
  0xbd   : > { %2262 = vmatprep.mubr.msk.bf16.mxu0 %vm1145_vm4, %v3539_v24  ;;  %1701 = vmatpush1.bf16.msra.mxu0 %v2506_v54 }
  0xbe   : > { %1702 = vmatprep.subr.bf16.mxu0 %v2696_v2  ;;  %v1130_v9 = vpop.permute.xlu0 %1129 }
  0xbf   : > { %v3575_v7 = vsel %vm1145_vm4, %v1087_v16, %v1130_v9 }
  0xc1   : > { %1703 = vmatpush1.bf16.msra.mxu0 %v2507_v59 }
  0xc2   : > { %1704 = vmatprep.subr.bf16.mxu0 %v2696_v2 }
  0xc3   : > { %v1126_v3 = vpop.permute.xlu1 %1125 }
  0xc4   : > { %v1148_v62 = vsel %vm1145_vm4, %v1085_v19, %v1126_v3  ;;  %1372 = vmatmul.mubr.bf16.gmra.mrb[4].mxu0 %v3575_v7 }
  0xc5   : > { %1536 = vmatmul.mubr.bf16.vlgmr.msra.gmra.mrb[0].mxu1 %v1148_v62  ;;  %2263 = vmatprep.mubr.msk.bf16.mxu0 %vm1145_vm4, %v3551_v52 }
  0xc6   : > { %2282 = vmatprep.mubr.msk.bf16.mxu1 %vm1145_vm4, %v1106_v58  ;;  %2393 = vmatpush1.bf16.msra.mxu1 %v2506_v54  ;;  %v2509_v58 = vld [vmem:[%s3972_s6 + $0xd8] sm:$0xff]  }
  0xc7   : > { %2382 = vmatprep.subr.bf16.mxu1 %v2696_v2  ;;  %1705 = vmatpush1.bf16.msra.mxu0 %v2508_v10 }
  0xc8   : > { %1706 = vmatprep.subr.bf16.mxu0 %v2696_v2 }
  0xca   : > { %2394 = vmatpush1.bf16.msra.mxu1 %v2507_v59  ;;  %v2518_v59 = vld [vmem:[%s3975_s9] sm:$0xff]  }
  0xcb   : > { %2383 = vmatprep.subr.bf16.mxu1 %v2696_v2  ;;  %1707 = vmatpush1.bf16.msra.mxu0 %v2509_v58 }
  0xcc   : > { %1708 = vmatprep.subr.bf16.mxu0 %v2696_v2 }
  0xcd   : > { %1544 = vmatmul.mubr.bf16.gmra.mrb[4].mxu1 %v1152_v44 }
  0xce   : > { %2283 = vmatprep.mubr.msk.bf16.mxu1 %vm1145_vm4, %v3539_v24  ;;  %2395 = vmatpush1.bf16.msra.mxu1 %v2508_v10 }
  0xcf   : > { %v1013_v19 = vpop.permute.xlu0 %1012  ;;  %2384 = vmatprep.subr.bf16.mxu1 %v2696_v2  ;;  %1709 = vmatpush1.bf16.msra.mxu0 %v2510_v14 }
  0xd0   : > { %v1074_v34 = vmul.f32 %v1013_v19, %v3339_v25  ;;  %1710 = vmatprep.subr.bf16.mxu0 %v2696_v2 }
  0xd2   : > { %2396 = vmatpush1.bf16.msra.mxu1 %v2509_v58 }
  0xd3   : > { %v837_v57 = vpop.permute.xlu0 %836  ;;  %2385 = vmatprep.subr.bf16.mxu1 %v2696_v2  ;;  %1711 = vmatpush1.bf16.msra.mxu0 %v2511_v26 }
  0xd4   : > { %v1008_v22 = vpop.permute.xlu1 %1007  ;;  %1712 = vmatprep.subr.bf16.mxu0 %v2696_v2  ;;  %v894_v16 = vmul.f32 %v837_v57, %v3345_v18  ;;  %v2513_v18 = vld [vmem:[%s3972_s6 + $0xf8] sm:$0xff]  }
  0xd5   : > { %v1073_v29 = vmul.f32 %v1008_v22, %v3334_v63  ;;  %1552 = vmatmul.mubr.bf16.gmra.mrb[8].mxu1 %v3575_v7 }
  0xd6   : > { %2284 = vmatprep.mubr.msk.bf16.mxu1 %vm1145_vm4, %v3551_v52  ;;  %2397 = vmatpush1.bf16.msra.mxu1 %v2510_v14 }
  0xd7   : > { %v3606_v25 = vpack.c.bf16 %v1074_v34, %v1073_v29  ;;  %v1018_v46 = vpop.permute.xlu0 %1017  ;;  %2386 = vmatprep.subr.bf16.mxu1 %v2696_v2  ;;  %1713 = vmatpush1.bf16.msra.mxu0 %v2512_v12 }
  0xd8   : > { %v1132_v6 = vpop.permute.xlu1 %1131  ;;  %1714 = vmatprep.subr.bf16.mxu0 %v2696_v2  ;;  %v1075_v28 = vmul.f32 %v1018_v46, %v3368_v21  ;;  %v2514_v21 = vld [vmem:[%s3972_s6 + $0x100] sm:$0xff]  }
  0xd9   : > { %v3614_v63 = vsel %vm1145_vm4, %v1088_v8, %v1132_v6 }
  0xda   : > { %1380 = vmatmul.mubr.bf16.gmra.mrb[8].mxu0 %v3614_v63  ;;  %2398 = vmatpush1.bf16.msra.mxu1 %v2511_v26 }
  0xdb   : > { %2264 = vmatprep.mubr.msk.bf16.mxu0 %vm1145_vm4, %v3606_v25  ;;  %v1134_v0 = vpop.permute.xlu0 %1133  ;;  %2387 = vmatprep.subr.bf16.mxu1 %v2696_v2 }
  0xdc   : > { %v842_v40 = vpop.permute.xlu1 %841  ;;  %1715 = vmatpush1.bf16.msra.mxu0 %v2513_v18 }
  0xdd   : > { %v895_v53 = vmul.f32 %v842_v40, %v3354_v20  ;;  %1560 = vmatmul.mubr.bf16.gmra.mrb[12].mxu1 %v3614_v63  ;;  %v3637_v20 = vsel %vm1145_vm4, %v1089_v5, %v1134_v0  ;;  %1716 = vmatprep.subr.bf16.mxu0 %v2696_v2 }
  0xde   : > { %2285 = vmatprep.mubr.msk.bf16.mxu1 %vm1145_vm4, %v3606_v25  ;;  %2399 = vmatpush1.bf16.msra.mxu1 %v2512_v12 }
  0xdf   : > { %v1090_v55 = vpack.c.bf16 %v895_v53, %v894_v16  ;;  %v852_v13 = vpop.permute.xlu0 %851  ;;  %2388 = vmatprep.subr.bf16.mxu1 %v2696_v2 }
  0xe0   : > { %v1023_v56 = vpop.permute.xlu1 %1022  ;;  %v897_v60 = vmul.f32 %v852_v13, %v3405_v17  ;;  %1717 = vmatpush1.bf16.msra.mxu0 %v2514_v21  ;;  %v2515_v17 = vld [vmem:[%s3972_s6 + $0x108] sm:$0xff]  }
  0xe1   : > { %v1076_v61 = vmul.f32 %v1023_v56, %v3373_v42  ;;  %1718 = vmatprep.subr.bf16.mxu0 %v2696_v2 }
  0xe2   : > { %1388 = vmatmul.mubr.bf16.gmra.mrb[12].mxu0 %v3637_v20  ;;  %2400 = vmatpush1.bf16.msra.mxu1 %v2513_v18 }
  0xe3   : > { %v3646_v8 = vpack.c.bf16 %v1076_v61, %v1075_v28  ;;  %v1033_v35 = vpop.permute.xlu0 %1032  ;;  %2389 = vmatprep.subr.bf16.mxu1 %v2696_v2  ;;  %v2519_v28 = vld [vmem:[%s3975_s9 + $0x8] sm:$0xff]  }
  0xe4   : > { %v847_v38 = vpop.permute.xlu1 %846  ;;  %v1078_v36 = vmul.f32 %v1033_v35, %v3426_v41  ;;  %1719 = vmatpush1.bf16.msra.mxu0 %v2515_v17  ;;  %v1840_v35 = vld [vmem:[%s3726_s15 + $0x20] sm:$0xff] }
  0xe5   : > { %v896_v42 = vmul.f32 %v847_v38, %v3389_v30  ;;  %2265 = vmatprep.mubr.msk.bf16.mxu0 %vm1145_vm4, %v3646_v8  ;;  %1568 = vmatmul.mubr.bf16.gmra.mrb[16].mxu1 %v3637_v20  ;;  %v1841_v38 = vld [vmem:[%s3726_s15 + $0x28] sm:$0xff] }
  0xe6   : > { %2286 = vmatprep.mubr.msk.bf16.mxu1 %vm1145_vm4, %v3646_v8  ;;  %2401 = vmatpush1.bf16.msra.mxu1 %v2514_v21 }
  0xe7   : > { %v1091_v15 = vpack.c.bf16 %v897_v60, %v896_v42  ;;  %v857_v32 = vpop.permute.xlu0 %856  ;;  %2390 = vmatprep.subr.bf16.mxu1 %v2696_v2  ;;  %1720 = vmatprep.subr.bf16.mxu0 %v2696_v2  ;;  %v1839_v60 = vld [vmem:[%s3726_s15 + $0x18] sm:$0xff] }
  0xe8   : > { %v1028_v30 = vpop.permute.xlu1 %1027  ;;  %1721 = vmatpush1.bf16.msra.mxu0 %v2516_v50  ;;  %v898_v54 = vmul.f32 %v857_v32, %v3436_v48 }
  0xe9   : > { %v1077_v49 = vmul.f32 %v1028_v30, %v3417_v23  ;;  %1722 = vmatprep.subr.bf16.mxu0 %v2696_v2  ;;  %v2517_v23 = vld [vmem:[%s3972_s6 + $0x118] sm:$0xff]  }
  0xea   : > { %2402 = vmatpush1.bf16.msra.mxu1 %v2515_v17  ;;  %v1854_v17 = vpack.c.bf16 %v1841_v38, %v1840_v35 }
  0xeb   : > { %v3667_v5 = vpack.c.bf16 %v1078_v36, %v1077_v49  ;;  %v1038_v37 = vpop.permute.xlu0 %1037  ;;  %2391 = vmatprep.subr.bf16.mxu1 %v2696_v2  ;;  %v1845_v36 = vld [vmem:[%s3726_s15 + $0x48] sm:$0xff]  ;;  %v1848_v49 = vld [vmem:[%s3726_s15 + $0x60] sm:$0xff] }
  0xec   : > { %v1136_v41 = vpop.permute.xlu1 %1135  ;;  %1723 = vmatpush1.bf16.msra.mxu0 %v2517_v23  ;;  %v1079_v48 = vmul.f32 %v1038_v37, %v3452_v4 }
  0xed   : > { %v3671_v44 = vsel %vm1145_vm4, %v1090_v55, %v1136_v41 }
  0xee   : > { %1396 = vmatmul.mubr.bf16.gmra.mrb[16].mxu0 %v3671_v44  ;;  %1576 = vmatmul.mubr.bf16.gmra.mrb[20].mxu1 %v3671_v44 }
  0xef   : > { %2266 = vmatprep.mubr.msk.bf16.mxu0 %vm1145_vm4, %v3667_v5  ;;  %2287 = vmatprep.mubr.msk.bf16.mxu1 %vm1145_vm4, %v3667_v5  ;;  %v1138_v3 = vpop.permute.xlu0 %1137 }
  0xf0   : > { %v862_v62 = vpop.permute.xlu1 %861  ;;  %2403 = vmatpush1.bf16.msra.mxu1 %v2516_v50  ;;  %v3691_v58 = vsel %vm1145_vm4, %v1091_v15, %v1138_v3  ;;  %v1844_v15 = vld [vmem:[%s3726_s15 + $0x40] sm:$0xff]  ;;  %v1849_v50 = vld [vmem:[%s3726_s15 + $0x68] sm:$0xff] }
  0xf1   : > { %v899_v9 = vmul.f32 %v862_v62, %v3442_v45  ;;  %2392 = vmatprep.subr.bf16.mxu1 %v2696_v2  ;;  %v1856_v30 = vpack.c.bf16 %v1845_v36, %v1844_v15  ;;  %v1858_v41 = vpack.c.bf16 %v1849_v50, %v1848_v49 }
  0xf3   : > { %v1092_v10 = vpack.c.bf16 %v899_v9, %v898_v54  ;;  %v872_v19 = vpop.permute.xlu0 %871 }
  0xf4   : > { %v1043_v14 = vpop.permute.xlu1 %1042  ;;  %2404 = vmatpush1.bf16.msra.mxu1 %v2517_v23  ;;  %v901_v45 = vmul.f32 %v872_v19, %v3474_v39  ;;  %v1851_v23 = vld [vmem:[%s3726_s15 + $0x78] sm:$0xff] }
  0xf5   : > { %v1080_v34 = vmul.f32 %v1043_v14, %v3457_v33  ;;  %2361 = vmatprep.subr.bf16.mxu1 %v2518_v59 }
  0xf6   : > { %1404 = vmatmul.mubr.bf16.gmra.mrb[20].mxu0 %v3691_v58  ;;  %1584 = vmatmul.mubr.bf16.gmra.mrb[24].mxu1 %v3691_v58 }
  0xf7   : > { %v3696_v2 = vpack.c.bf16 %v1080_v34, %v1079_v48  ;;  %v1053_v57 = vpop.permute.xlu0 %1052 }
  0xf8   : > { %v867_v22 = vpop.permute.xlu1 %866  ;;  %v1082_v29 = vmul.f32 %v1053_v57, %v3487_v47 }
  0xf9   : > { %v900_v4 = vmul.f32 %v867_v22, %v3467_v11  ;;  %2267 = vmatprep.mubr.msk.bf16.mxu0 %vm1145_vm4, %v3696_v2  ;;  %2288 = vmatprep.mubr.msk.bf16.mxu1 %vm1145_vm4, %v3696_v2 }
  0xfb   : > { %v1093_v33 = vpack.c.bf16 %v901_v45, %v900_v4  ;;  %v1142_v26 = vpop.permute.xlu0 %1141 }
  0xfc   : > { %v1048_v46 = vpop.permute.xlu1 %1047 }
  0xfd   : > { %v1081_v6 = vmul.f32 %v1048_v46, %v3479_v31  ;;  %v1180_v56 = vsel %vm1145_vm4, %v1093_v33, %v1142_v26 }
  0xff   : > { %v1113_v12 = vpack.c.bf16 %v1082_v29, %v1081_v6  ;;  %v882_v16 = vpop.permute.xlu0 %881 }
 0x100   : > { %v1140_v39 = vpop.permute.xlu1 %1139  ;;  %v903_v11 = vmul.f32 %v882_v16, %v3505_v43  ;;  %v1836_v43 = vld [vmem:[%s3726_s15] sm:$0xff] }
 0x101   : > { %v3707_v0 = vsel %vm1145_vm4, %v1092_v10, %v1140_v39 }
 0x102   : > { %1412 = vmatmul.mubr.bf16.gmra.mrb[24].mxu0 %v3707_v0  ;;  %1592 = vmatmul.mubr.bf16.gmra.mrb[28].mxu1 %v3707_v0 }
 0x103   : > { %2268 = vmatprep.mubr.msk.bf16.mxu0 %vm1145_vm4, %v1113_v12  ;;  %2331 = vmatprep.mubr.msk.bf16.mxu1 %vm1145_vm4, %v1113_v12  ;;  %v1063_v40 = vpop.permute.xlu0 %1062 }
 0x104   : > { %v877_v47 = vpop.permute.xlu1 %876  ;;  %v1084_v18 = vmul.f32 %v1063_v40, %v3519_v1 }
 0x105   : > { %v902_v31 = vmul.f32 %v877_v47, %v3499_v51 }
 0x107   : > { %v1094_v53 = vpack.c.bf16 %v903_v11, %v902_v31 }
 0x108   : > { %v1058_v55 = vpop.permute.xlu1 %1057 }
 0x109   : > { %v1083_v13 = vmul.f32 %v1058_v55, %v3513_v27  ;;  %v1837_v27 = vld [vmem:[%s3726_s15 + $0x8] sm:$0xff] }
 0x10a   : > { %1420 = vmatmul.mubr.bf16.gmra.mrb[28].mxu0 %v1180_v56  ;;  %1781 = vmatmul.mubr.bf16.vlgmr.msra.gmra.mrb[32].mxu1 %v1180_v56  ;;  %v1852_v61 = vpack.c.bf16 %v1837_v27, %v1836_v43 }
 0x10b   : > { %v1114_v51 = vpack.c.bf16 %v1084_v18, %v1083_v13  ;;  %2325 = vmatprep.mubr.msk.bf16.mxu0 %vm1145_vm4, %v3539_v24  ;;  %2362 = vmatpush3.bf16.msra.mxu1 %v2518_v59  ;;  %v1838_v24 = vld [vmem:[%s3726_s15 + $0x10] sm:$0xff] }
 0x10c   : > { %2363 = vmatprep.subr.bf16.mxu1 %v2519_v28  ;;  %v1144_v1 = vpop.permute.xlu1 %1143  ;;  %v1853_v42 = vpack.c.bf16 %v1839_v60, %v1838_v24 }
 0x10d   : > { %2332 = vmatprep.mubr.msk.bf16.mxu1 %vm1145_vm4, %v1114_v51  ;;  %v1184_v21 = vsel %vm1145_vm4, %v1094_v53, %v1144_v1 }
 0x10f   : > { %2364 = vmatpush3.bf16.msra.mxu1 %v2519_v28 }
 0x112   : > { %1733 = vmatmul.mubr.bf16.vlgmr.msra.gmra.mrb[32].mxu0 %v3575_v7  ;;  %1789 = vmatmul.mubr.bf16.gmra.mrb[36].mxu1 %v1184_v21  ;;  %v1843_v7 = vld [vmem:[%s3726_s15 + $0x38] sm:$0xff] }
 0x113   : > { %2326 = vmatprep.mubr.msk.bf16.mxu0 %vm1145_vm4, %v3551_v52  ;;  %2365 = vmatprep.mubr.msk.bf16.mxu1 %vm1876_vm5, %v1852_v61  ;;  %v1842_v52 = vld [vmem:[%s3726_s15 + $0x30] sm:$0xff] }
 0x114   : > { %v1855_v32 = vpack.c.bf16 %v1843_v7, %v1842_v52 }
 0x11a   : > { %1741 = vmatmul.mubr.bf16.gmra.mrb[36].mxu0 %v3614_v63  ;;  %2366 = vmatmul.mubr.msk.bf16.vlgmr.msra.gmra.mrb[40].mxu1 %vm1876_vm5, %v1853_v42  ;;  %v1847_v63 = vld [vmem:[%s3726_s15 + $0x58] sm:$0xff] }
 0x11b   : > { %2327 = vmatprep.mubr.msk.bf16.mxu0 %vm1145_vm4, %v3606_v25  ;;  %2369 = vmatprep.mubr.msk.bf16.mxu1 %vm1876_vm5, %v1854_v17  ;;  %v1846_v25 = vld [vmem:[%s3726_s15 + $0x50] sm:$0xff] }
 0x11c   : > { %v1857_v37 = vpack.c.bf16 %v1847_v63, %v1846_v25 }
 0x122   : > { %1749 = vmatmul.mubr.bf16.gmra.mrb[40].mxu0 %v3637_v20  ;;  %2370 = vmatmul.mubr.msk.bf16.gmra.mrb[44].mxu1 %vm1876_vm5, %v1855_v32  ;;  %v1850_v20 = vld [vmem:[%s3726_s15 + $0x70] sm:$0xff]  ;;  %s2600_s15 = scalar_lea.vmem %s3905_s12, 2048 }
 0x123   : > { %2328 = vmatprep.mubr.msk.bf16.mxu0 %vm1145_vm4, %v3646_v8  ;;  %2373 = vmatprep.mubr.msk.bf16.mxu1 %vm1876_vm5, %v1856_v30  ;;  %v1859_v8 = vpack.c.bf16 %v1851_v23, %v1850_v20  ;;  %p2601_p2 = scmp.ne.s32.totalorder %s3905_s12, %s2600_s15  ;;  %p2608_p7 = scmp.lt.s32.totalorder %s2606_s16, %s2600_s15 }
 0x125   : > { %p2602_p4 = pnand %p2601_p2, %p2812_p3  ;;  %p2609_p9 = por %p2608_p7, %p2607_p6 }
 0x127   : > { %p2603_p5 = pneg %p2602_p4 }
 0x129   : > { %p2610_p10 = pnand %p2609_p9, %p2603_p5 }
 0x12a   : > { %1757 = vmatmul.mubr.bf16.gmra.mrb[44].mxu0 %v3671_v44  ;;  %2374 = vmatmul.mubr.msk.bf16.gmra.mrb[48].mxu1 %vm1876_vm5, %v1857_v37 }
 0x12b   : > { %2329 = vmatprep.mubr.msk.bf16.mxu0 %vm1145_vm4, %v3667_v5  ;;  %2377 = vmatprep.mubr.msk.bf16.mxu1 %vm1876_vm5, %v1858_v41 }
 0x132   : > { %1765 = vmatmul.mubr.bf16.gmra.mrb[48].mxu0 %v3691_v58  ;;  %2378 = vmatmul.mubr.msk.bf16.gmra.mrb[52].mxu1 %vm1876_vm5, %v1859_v8 }
 0x133   : > { %2330 = vmatprep.mubr.msk.bf16.mxu0 %vm1145_vm4, %v3696_v2 }
 0x13a   : > { %1773 = vmatmul.mubr.bf16.gmra.mrb[52].mxu0 %v3707_v0 }
 0x18f   : > { %v1365_v44 = vpop.f32.mrb[0].mxu0 }
 0x190   : > { %v1367_v54 = vpop.f32.mrb[1].mxu0 }
 0x191   : > { %v1368_v3 = vpop.f32.mrb[2].mxu0 }
 0x192   : > { %v1370_v62 = vpop.f32.mrb[3].mxu0 }
 0x197   : > { %v1373_v58 = vpop.f32.mrb[4].mxu0 }
 0x198   : > { %v1537_v9 = vpop.f32.mrb[0].mxu1  ;;  %v1375_v14 = vpop.f32.mrb[5].mxu0 }
 0x199   : > { %v3772_v5 = vadd.f32 %v1537_v9, %v1365_v44  ;;  %v1539_v59 = vpop.f32.mrb[1].mxu1  ;;  %v1376_v34 = vpop.f32.mrb[6].mxu0 }
 0x19a   : > { %v1540_v10 = vpop.f32.mrb[2].mxu1  ;;  %v1378_v45 = vpop.f32.mrb[7].mxu0 }
 0x19b   : > { %v3774_v48 = vadd.f32 %v1540_v10, %v1368_v3  ;;  %v1542_v19 = vpop.f32.mrb[3].mxu1 }
 0x1a0   : > { %v1545_v57 = vpop.f32.mrb[4].mxu1 }
 0x1a1   : > { %v3776_v2 = vadd.f32 %v1545_v57, %v1373_v58  ;;  %v1547_v22 = vpop.f32.mrb[5].mxu1 }
 0x1a2   : > { %v1548_v4 = vpop.f32.mrb[6].mxu1 }
 0x1a3   : > { %v3778_v33 = vadd.f32 %v1548_v4, %v1376_v34  ;;  %v1550_v29 = vpop.f32.mrb[7].mxu1 }
 0x1a8   : > { %v1553_v26 = vpop.f32.mrb[8].mxu1 }
 0x1a9   : > { %v1555_v46 = vpop.f32.mrb[9].mxu1 }
 0x1aa   : > { %v1556_v6 = vpop.f32.mrb[10].mxu1 }
 0x1ab   : > { %v1558_v12 = vpop.f32.mrb[11].mxu1 }
 0x1ad   : > { %v1381_v16 = vpop.f32.mrb[8].mxu0 }
 0x1ae   : > { %v3780_v39 = vadd.f32 %v1553_v26, %v1381_v16  ;;  %v1383_v0 = vpop.f32.mrb[9].mxu0 }
 0x1af   : > { %v1384_v11 = vpop.f32.mrb[10].mxu0 }
 0x1b0   : > { %v3782_v47 = vadd.f32 %v1556_v6, %v1384_v11  ;;  %v1386_v40 = vpop.f32.mrb[11].mxu0  ;;  %v1561_v31 = vpop.f32.mrb[12].mxu1 }
 0x1b1   : > { %v1563_v53 = vpop.f32.mrb[13].mxu1 }
 0x1b2   : > { %v1564_v18 = vpop.f32.mrb[14].mxu1 }
 0x1b3   : > { %v1566_v55 = vpop.f32.mrb[15].mxu1 }
 0x1b5   : > { %v1389_v28 = vpop.f32.mrb[12].mxu0 }
 0x1b6   : > { %v3784_v13 = vadd.f32 %v1561_v31, %v1389_v28  ;;  %v1391_v56 = vpop.f32.mrb[13].mxu0 }
 0x1b7   : > { %v1392_v51 = vpop.f32.mrb[14].mxu0 }
 0x1b8   : > { %v3786_v43 = vadd.f32 %v1564_v18, %v1392_v51  ;;  %v1394_v27 = vpop.f32.mrb[15].mxu0  ;;  %v1569_v1 = vpop.f32.mrb[16].mxu1 }
 0x1b9   : > { %v1571_v61 = vpop.f32.mrb[17].mxu1 }
 0x1ba   : > { %v1572_v21 = vpop.f32.mrb[18].mxu1 }
 0x1bb   : > { %v1574_v24 = vpop.f32.mrb[19].mxu1 }
 0x1c1   : > { %v1397_v60 = vpop.f32.mrb[16].mxu0  ;;  %v1577_v35 = vpop.f32.mrb[20].mxu1 }
 0x1c2   : > { %v3788_v38 = vadd.f32 %v1569_v1, %v1397_v60  ;;  %v1399_v42 = vpop.f32.mrb[17].mxu0  ;;  %v1579_v17 = vpop.f32.mrb[21].mxu1 }
 0x1c3   : > { %v1400_v52 = vpop.f32.mrb[18].mxu0  ;;  %v1580_v7 = vpop.f32.mrb[22].mxu1 }
 0x1c4   : > { %v3790_v15 = vadd.f32 %v1572_v21, %v1400_v52  ;;  %v1402_v36 = vpop.f32.mrb[19].mxu0  ;;  %v1582_v32 = vpop.f32.mrb[23].mxu1  ;;  %v3810_v21 = vld [vmem:[%s3973_s7] ss:$0 sm:$0xff] }
 0x1c9   : > { %v1405_v30 = vpop.f32.mrb[20].mxu0  ;;  %v1585_v25 = vpop.f32.mrb[24].mxu1 }
 0x1ca   : > { %v3792_v63 = vadd.f32 %v1577_v35, %v1405_v30  ;;  %v1407_v49 = vpop.f32.mrb[21].mxu0  ;;  %v1587_v50 = vpop.f32.mrb[25].mxu1 }
 0x1cb   : > { %v1408_v37 = vpop.f32.mrb[22].mxu0  ;;  %v1588_v41 = vpop.f32.mrb[26].mxu1 }
 0x1cc   : > { %v3794_v20 = vadd.f32 %v1580_v7, %v1408_v37  ;;  %v1410_v23 = vpop.f32.mrb[23].mxu0  ;;  %v1590_v8 = vpop.f32.mrb[27].mxu1 }
 0x1d5   : > { %v1413_v44 = vpop.f32.mrb[24].mxu0  ;;  %v1593_v54 = vpop.f32.mrb[28].mxu1 }
 0x1d6   : > { %v1586_v3 = vadd.f32 %v1585_v25, %v1413_v44  ;;  %v1415_v62 = vpop.f32.mrb[25].mxu0  ;;  %v1595_v9 = vpop.f32.mrb[29].mxu1 }
 0x1d7   : > { %v1416_v59 = vpop.f32.mrb[26].mxu0  ;;  %v1596_v10 = vpop.f32.mrb[30].mxu1 }
 0x1d8   : > { %v1589_v19 = vadd.f32 %v1588_v41, %v1416_v59  ;;  %v1418_v58 = vpop.f32.mrb[27].mxu0  ;;  %v1598_v14 = vpop.f32.mrb[31].mxu1 }
 0x1dd   : > { %v1421_v34 = vpop.f32.mrb[28].mxu0  ;;  %v1782_v45 = vpop.f32.mrb[32].mxu1 }
 0x1de   : > { %v1594_v57 = vadd.f32 %v1593_v54, %v1421_v34  ;;  %v3796_v22 = vadd.f32 %v1782_v45, %v1586_v3  ;;  %v1423_v4 = vpop.f32.mrb[29].mxu0  ;;  %v1784_v29 = vpop.f32.mrb[33].mxu1 }
 0x1df   : > { %v1424_v26 = vpop.f32.mrb[30].mxu0  ;;  %v1785_v46 = vpop.f32.mrb[34].mxu1 }
 0x1e0   : > { %v1597_v6 = vadd.f32 %v1596_v10, %v1424_v26  ;;  %v3798_v12 = vadd.f32 %v1785_v46, %v1589_v19  ;;  %v1426_v16 = vpop.f32.mrb[31].mxu0  ;;  %v1787_v0 = vpop.f32.mrb[35].mxu1 }
 0x1e5   : > { %v1734_v11 = vpop.f32.mrb[32].mxu0  ;;  %v1790_v40 = vpop.f32.mrb[36].mxu1 }
 0x1e6   : > { %v1797_v31 = vadd.f32 %v1734_v11, %v3772_v5  ;;  %v3801_v53 = vadd.f32 %v1790_v40, %v1594_v57  ;;  %v1736_v18 = vpop.f32.mrb[33].mxu0  ;;  %v1792_v55 = vpop.f32.mrb[37].mxu1 }
 0x1e7   : > { %v1737_v28 = vpop.f32.mrb[34].mxu0  ;;  %v1793_v56 = vpop.f32.mrb[38].mxu1 }
 0x1e8   : > { %v1798_v51 = vadd.f32 %v1737_v28, %v3774_v48  ;;  %v3804_v27 = vadd.f32 %v1793_v56, %v1597_v6  ;;  %v1739_v1 = vpop.f32.mrb[35].mxu0  ;;  %v1795_v61 = vpop.f32.mrb[39].mxu1  ;;  %v1820_v60 = vadd.f32 %v3810_v21, %v1797_v31  ;;  %v3819_v48 = vld [vmem:[%s3976_s10] ss:$0 sm:$0xff] }
 0x1ea   : > { %v1821_v32 = vadd.f32 %v3810_v21, %v1798_v51 }
 0x1ed   : > { %v1742_v24 = vpop.f32.mrb[36].mxu0  ;;  %v2367_v5 = vpop.f32.mrb[40].mxu1 }
 0x1ee   : > { %v1799_v35 = vadd.f32 %v1742_v24, %v3776_v2  ;;  %v1744_v42 = vpop.f32.mrb[37].mxu0  ;;  %v1935_v17 = vpop.f32.mrb[41].mxu1 }
 0x1ef   : > { %v1998_v52 = vadd.f32 %v1935_v17, %v1820_v60  ;;  %v1745_v7 = vpop.f32.mrb[38].mxu0  ;;  %v2368_v36 = vpop.f32.mrb[42].mxu1 }
 0x1f0   : > { %v1822_v30 = vadd.f32 %v3810_v21, %v1799_v35  ;;  %v1800_v25 = vadd.f32 %v1745_v7, %v3778_v33  ;;  %v1747_v49 = vpop.f32.mrb[39].mxu0  ;;  %v1938_v50 = vpop.f32.mrb[43].mxu1  ;;  %v1832_v35 = vadd.f32 %v3810_v21, %v3796_v22  ;;  %v1833_v22 = vadd.f32 %v3810_v21, %v3798_v12 }
 0x1f1   : > { %v2021_v2 = vadd.f32 %v3819_v48, %v1998_v52  ;;  %v1999_v37 = vadd.f32 %v1938_v50, %v1821_v32 }
 0x1f2   : > { %v2000_v41 = vadd.f32 %v2367_v5, %v1822_v30  ;;  %v1823_v23 = vadd.f32 %v3810_v21, %v1800_v25 }
 0x1f3   : > { %2037 = vst.msk [vmem:[%s3826_s22] sm:$0xff] %vm1145_vm4, %v2021_v2  ;;  %v2022_v8 = vadd.f32 %v3819_v48, %v1999_v37 }
 0x1f4   : > { %v2023_v33 = vadd.f32 %v3819_v48, %v2000_v41  ;;  %v2001_v44 = vadd.f32 %v2368_v36, %v1823_v23  ;;  %v1835_v36 = vadd.f32 %v3810_v21, %v3804_v27 }
 0x1f5   : > { %2038 = vst.msk [vmem:[%s3826_s22 + $0x8] sm:$0xff] %vm1145_vm4, %v2022_v8  ;;  %v1750_v54 = vpop.f32.mrb[40].mxu0  ;;  %v2371_v3 = vpop.f32.mrb[44].mxu1 }
 0x1f6   : > { %2039 = vst.msk [vmem:[%s3826_s22 + $0x10] sm:$0xff] %vm1145_vm4, %v2023_v33  ;;  %v2024_v62 = vadd.f32 %v3819_v48, %v2001_v44  ;;  %v1801_v9 = vadd.f32 %v1750_v54, %v3780_v39  ;;  %v1752_v59 = vpop.f32.mrb[41].mxu0  ;;  %v1951_v10 = vpop.f32.mrb[45].mxu1 }
 0x1f7   : > { %v1753_v19 = vpop.f32.mrb[42].mxu0  ;;  %v2372_v58 = vpop.f32.mrb[46].mxu1 }
 0x1f8   : > { %2040 = vst.msk [vmem:[%s3826_s22 + $0x18] sm:$0xff] %vm1145_vm4, %v2024_v62  ;;  %v1802_v14 = vadd.f32 %v1753_v19, %v3782_v47  ;;  %v1755_v34 = vpop.f32.mrb[43].mxu0  ;;  %v1824_v45 = vadd.f32 %v3810_v21, %v1801_v9  ;;  %v1954_v57 = vpop.f32.mrb[47].mxu1 }
 0x1fa   : > { %v2002_v4 = vadd.f32 %v1951_v10, %v1824_v45  ;;  %v1825_v29 = vadd.f32 %v3810_v21, %v1802_v14 }
 0x1fc   : > { %v2025_v26 = vadd.f32 %v3819_v48, %v2002_v4  ;;  %v2003_v39 = vadd.f32 %v1954_v57, %v1825_v29 }
 0x1fd   : > { %v1758_v46 = vpop.f32.mrb[44].mxu0  ;;  %v3844_v6 = vpop.f32.mrb[48].mxu1 }
 0x1fe   : > { %2041 = vst.msk [vmem:[%s3826_s22 + $0x20] sm:$0xff] %vm1145_vm4, %v2025_v26  ;;  %v2026_v16 = vadd.f32 %v3819_v48, %v2003_v39  ;;  %v1803_v47 = vadd.f32 %v1758_v46, %v3784_v13  ;;  %v1760_v0 = vpop.f32.mrb[45].mxu0  ;;  %v1967_v11 = vpop.f32.mrb[49].mxu1  ;;  %v1834_v13 = vadd.f32 %v3810_v21, %v3801_v53 }
 0x1ff   : > { %v1761_v40 = vpop.f32.mrb[46].mxu0  ;;  %v2376_v31 = vpop.f32.mrb[50].mxu1 }
 0x200   : > { %2042 = vst.msk [vmem:[%s3826_s22 + $0x28] sm:$0xff] %vm1145_vm4, %v2026_v16  ;;  %v1826_v18 = vadd.f32 %v3810_v21, %v1803_v47  ;;  %v1804_v55 = vadd.f32 %v1761_v40, %v3786_v43  ;;  %v1763_v28 = vpop.f32.mrb[47].mxu0  ;;  %v1970_v56 = vpop.f32.mrb[51].mxu1 }
 0x202   : > { %v2004_v51 = vadd.f32 %v2371_v3, %v1826_v18  ;;  %v1827_v1 = vadd.f32 %v3810_v21, %v1804_v55 }
 0x204   : > { %v2027_v61 = vadd.f32 %v3819_v48, %v2004_v51  ;;  %v2005_v24 = vadd.f32 %v2372_v58, %v1827_v1 }
 0x205   : > { %v1766_v5 = vpop.f32.mrb[48].mxu0  ;;  %v2379_v60 = vpop.f32.mrb[52].mxu1 }
 0x206   : > { %2043 = vst.msk [vmem:[%s3826_s22 + $0x30] sm:$0xff] %vm1145_vm4, %v2027_v61  ;;  %v2028_v43 = vadd.f32 %v3819_v48, %v2005_v24  ;;  %v1805_v42 = vadd.f32 %v1766_v5, %v3788_v38  ;;  %v2012_v17 = vadd.f32 %v2379_v60, %v1834_v13  ;;  %v1768_v52 = vpop.f32.mrb[49].mxu0  ;;  %v1983_v7 = vpop.f32.mrb[53].mxu1 }
 0x207   : > { %v2010_v32 = vadd.f32 %v1983_v7, %v1832_v35  ;;  %v1769_v53 = vpop.f32.mrb[50].mxu0  ;;  %v2380_v30 = vpop.f32.mrb[54].mxu1 }
 0x208   : > { %2044 = vst.msk [vmem:[%s3826_s22 + $0x38] sm:$0xff] %vm1145_vm4, %v2028_v43  ;;  %v1828_v25 = vadd.f32 %v3810_v21, %v1805_v42  ;;  %v2035_v38 = vadd.f32 %v3819_v48, %v2012_v17  ;;  %v1806_v49 = vadd.f32 %v1769_v53, %v3790_v15  ;;  %v2013_v50 = vadd.f32 %v2380_v30, %v1835_v36  ;;  %v1771_v27 = vpop.f32.mrb[51].mxu0  ;;  %v1986_v2 = vpop.f32.mrb[55].mxu1 }
 0x209   : > { %v2033_v37 = vadd.f32 %v3819_v48, %v2010_v32  ;;  %v2011_v41 = vadd.f32 %v1986_v2, %v1833_v22 }
 0x20a   : > { %v2006_v23 = vadd.f32 %v1967_v11, %v1828_v25  ;;  %2051 = vst.msk [vmem:[%s3826_s22 + $0x70] sm:$0xff] %vm1145_vm4, %v2035_v38  ;;  %v1829_v12 = vadd.f32 %v3810_v21, %v1806_v49  ;;  %v2036_v8 = vadd.f32 %v3819_v48, %v2013_v50 }
 0x20b   : > { %2049 = vst.msk [vmem:[%s3826_s22 + $0x60] sm:$0xff] %vm1145_vm4, %v2033_v37  ;;  %v2034_v15 = vadd.f32 %v3819_v48, %v2011_v41 }
 0x20c   : > { %v2029_v33 = vadd.f32 %v3819_v48, %v2006_v23  ;;  %v2007_v44 = vadd.f32 %v1970_v56, %v1829_v12  ;;  %2052 = vst.msk [vmem:[%s3826_s22 + $0x78] sm:$0xff] %vm1145_vm4, %v2036_v8 }
 0x20d   : > { %2050 = vst.msk [vmem:[%s3826_s22 + $0x68] sm:$0xff] %vm1145_vm4, %v2034_v15  ;;  %v1774_v54 = vpop.f32.mrb[52].mxu0 }
 0x20e   : > { %2045 = vst.msk [vmem:[%s3826_s22 + $0x40] sm:$0xff] %vm1145_vm4, %v2029_v33  ;;  %v2030_v3 = vadd.f32 %v3819_v48, %v2007_v44  ;;  %v1807_v62 = vadd.f32 %v1774_v54, %v3792_v63  ;;  %v1776_v9 = vpop.f32.mrb[53].mxu0 }
 0x20f   : > { %v1777_v59 = vpop.f32.mrb[54].mxu0 }
 0x210   : > { %2046 = vst.msk [vmem:[%s3826_s22 + $0x48] sm:$0xff] %vm1145_vm4, %v2030_v3  ;;  %v1830_v10 = vadd.f32 %v3810_v21, %v1807_v62  ;;  %v1808_v19 = vadd.f32 %v1777_v59, %v3794_v20  ;;  %v1779_v58 = vpop.f32.mrb[55].mxu0 }
 0x212   : > { %v2008_v14 = vadd.f32 %v3844_v6, %v1830_v10  ;;  %v1831_v34 = vadd.f32 %v3810_v21, %v1808_v19 }
 0x214   : > { %v2031_v63 = vadd.f32 %v3819_v48, %v2008_v14  ;;  %v2009_v45 = vadd.f32 %v2376_v31, %v1831_v34 }
 0x216   : > { %2047 = vst.msk [vmem:[%s3826_s22 + $0x50] sm:$0xff] %vm1145_vm4, %v2031_v63  ;;  %v2032_v20 = vadd.f32 %v3819_v48, %v2009_v45 }
 0x218   : > { %2048 = vst.msk [vmem:[%s3826_s22 + $0x58] sm:$0xff] %vm1145_vm4, %v2032_v20 }
 0x219   : > { %2613 = shalt.err (!%p2610_p10)
}
 0x21a   : > { %s2614_s29 = scalar_lea.hbm %s3902_s26, 2048  ;;  %s2618_s22 = scalar_lea.hbm %s3977_s11, 8192 }
 0x21b   : > { %p2615_p11 = scmp.ne.s32.totalorder %s3902_s26, %s2614_s29  ;;  %p2619_p0 = scmp.lt.u32.totalorder %s3902_s26, %s3977_s11 }
 0x21c   : > { %p2620_p1 = scmp.lt.u32.totalorder %s2618_s22, %s2614_s29  ;;  %p2622_p4 = scmp.lt.u32.totalorder %s2614_s29, %s3902_s26 }
 0x21d   : > { %p2616_p12 = pnand %p2615_p11, %p2812_p3 }
 0x21e   : > { %p2621_p2 = por %p2620_p1, %p2619_p0 }
 0x21f   : > { %p2617_p13 = pneg %p2616_p12 }
 0x220   : > { %p2623_p5 = por %p2622_p4, %p2621_p2 }
 0x222   : > { %p2624_p6 = pnand %p2623_p5, %p2617_p13 }
 0x224   : > { %2627 = shalt.err (!%p2624_p6)
}
 0x225   : > { %s2699_s21 = smov 128   ;;  %s2700_s25 = smov 8  }
 0x226   : > { %2405 = dma.vmem_to_hbm [thread:$0]  (%p2812_p3), %s3905_s12, 2048, %s3902_s26, %s3914_s20, %s2699_s21, %s2699_s21, %s2700_s25  }
 0x227 PF: > { %s3997_s28 = sld [smem:[#allocation5_spill]]  ;;  %p2411_p7 = scmp.ge.s32.totalorder %s2694_s24, 2 }
 0x229   : > { %p2408_p9 = pnand %p2411_p7, %p2821_p8 }
 0x22d   : > { %s2084_s14 = sand.u32 1, %s3997_s28  }
 0x22e   : > { %s2085_s27 = scalar_lea.sflag [#allocation3], %s2084_s14 }
 0x22f   : > { %2661 = dma.done.wait (!%p2408_p9), %s2085_s27, 2048  }
 0x230   : > { %2663 = vsyncadd (!%p2408_p9), %s2085_s27, 4294965248  ;;  %s24_s24 = sadd.s32 1, %s2694_s24   ;;  %s3999_s16 = sld [smem:[#allocation6_spill]] }
 0x231   : > { %p21_p10 = scmp.ge.s32.totalorder %s24_s24, 6   ;;  %s4000_s19 = sld [smem:[#allocation12_spill]] }
 0x232   : > { %s4001_s20 = sld [smem:[#allocation7_spill]]  ;;  %s4002_s21 = sld [smem:[#allocation8_spill]] }
 0x233   : > { %s4003_s22 = sld [smem:[#allocation9_spill]]  ;;  %s4004_s23 = sld [smem:[#allocation10_spill]] }
 0x234   : > { %s4005_s17 = smov %s2670_s18  ;;  %23 = sbr.rel (!%p21_p10) target bundleno = 5 (0x5), region = 113 }
 0x236   : > { %s4006_s18 = smov %s3999_s16 }
 0x23b   :  { %2090 = vsyncpa [#allocation3], 1 }
 0x23c   :  { %2092 = vsyncpa [#allocation3 + $0x1], 1 }

</bundles_post_ra>
